<compile_context>
chip_gen: v7x
topology: tpu7x:2x2x1
jax: 0.10.0
libtpu: 0.0.40
codegen_flags: <defaults>
</compile_context>

<pallas_src>
import math
import functools

import jax
import jax.numpy as jnp
from jax.experimental import pallas as pl
from jax.experimental.pallas import tpu as pltpu


def _round_up(x, m):
    return ((x + m - 1) // m) * m


# --------------------------- fused decoder kernel ---------------------------

def make_decoder_kernel(n_layers, n_heads, bb, T, S_pad, H, O_pad):
    D = H // n_heads
    M = bb * T
    inv_scale = 1.0 / math.sqrt(D)
    eps = 1e-5

    def dot(a, b):
        return jnp.dot(a, b, preferred_element_type=jnp.float32)

    def layer_norm(v, g, b_):
        mu = jnp.mean(v, axis=-1, keepdims=True)
        var = jnp.mean((v - mu) * (v - mu), axis=-1, keepdims=True)
        return (v - mu) * jax.lax.rsqrt(var + eps) * g + b_

    def softmax_last(e):
        m = jnp.max(e, axis=-1, keepdims=True)
        p = jnp.exp(e - m)
        return p / jnp.sum(p, axis=-1, keepdims=True)

    def kernel(x_ref, enc_ref, tmask_ref, smask_ref,
               sa_wqkv_ref, sa_bqkv_ref, sa_wo_ref, sa_bo_ref,
               ln1_g_ref, ln1_b_ref,
               ca_wq_ref, ca_bq_ref, ca_wkv_ref, ca_bkv_ref,
               ca_wo_ref, ca_bo_ref, ln2_g_ref, ln2_b_ref,
               ff_w1_ref, ff_b1_ref, ff_w2_ref, ff_b2_ref,
               ln3_g_ref, ln3_b_ref,
               fc_w_ref, fc_b_ref,
               out_ref, attn_ref, act_ref):
        l = pl.program_id(1)
        is_last = l == pl.num_programs(1) - 1

        # ---- carry activations in VMEM scratch across the layer grid axis
        @pl.when(l == 0)
        def _():
            act_ref[...] = x_ref[...].reshape(M, H)

        x = act_ref[...]                       # (M, H), M = bb*T
        tmask = tmask_ref[...]                 # (bb, T, T)      additive mask
        smask = smask_ref[...]                 # (bb, T, S_pad)  additive mask

        # ---------------- self-attention (packed QKV, batched M) ------------
        qkv = dot(x, sa_wqkv_ref[0]) + sa_bqkv_ref[0]          # (M, 3H)
        qkv3 = qkv.reshape(bb, T, 3 * H)
        ctxs = []
        for h in range(n_heads):
            qh = qkv3[:, :, h * D:(h + 1) * D]
            kh = qkv3[:, :, H + h * D:H + (h + 1) * D]
            vh = qkv3[:, :, 2 * H + h * D:2 * H + (h + 1) * D]
            e = jnp.einsum('bqd,bkd->bqk', qh, kh,
                           preferred_element_type=jnp.float32) * inv_scale + tmask
            a = softmax_last(e)                                # dropout: eval id
            ctxs.append(jnp.einsum('bqk,bkd->bqd', a, vh,
                                   preferred_element_type=jnp.float32).reshape(M, D))
        ctx = jnp.concatenate(ctxs, axis=-1)                   # (M, H)
        sa_out = dot(ctx, sa_wo_ref[0]) + sa_bo_ref[0]
        x = layer_norm(x + sa_out, ln1_g_ref[0], ln1_b_ref[0])

        # ---------------- encoder (cross) attention (packed KV) -------------
        q = dot(x, ca_wq_ref[0]) + ca_bq_ref[0]                # (M, H)
        q3 = q.reshape(bb, T, H)
        enc_flat = enc_ref[...].reshape(bb * S_pad, H)
        kv = dot(enc_flat, ca_wkv_ref[0]) + ca_bkv_ref[0]      # (bb*S_pad, 2H)
        kv3 = kv.reshape(bb, S_pad, 2 * H)
        ctxs = []
        for h in range(n_heads):
            qh = q3[:, :, h * D:(h + 1) * D]
            kh = kv3[:, :, h * D:(h + 1) * D]
            vh = kv3[:, :, H + h * D:H + (h + 1) * D]
            e = jnp.einsum('bqd,bkd->bqk', qh, kh,
                           preferred_element_type=jnp.float32) * inv_scale + smask
            a = softmax_last(e)                                # (bb, T, S_pad)

            @pl.when(is_last)
            def _(a=a, h=h):
                attn_ref[h] = a                                # lane-dense store

            ctxs.append(jnp.einsum('bqk,bkd->bqd', a, vh,
                                   preferred_element_type=jnp.float32).reshape(M, D))
        ctx = jnp.concatenate(ctxs, axis=-1)
        ca_out = dot(ctx, ca_wo_ref[0]) + ca_bo_ref[0]
        x = layer_norm(x + ca_out, ln2_g_ref[0], ln2_b_ref[0])

        # ---------------- position-wise feed-forward -------------------------
        ff = jnp.maximum(dot(x, ff_w1_ref[0]) + ff_b1_ref[0], 0.0)
        ff = dot(ff, ff_w2_ref[0]) + ff_b2_ref[0]
        x = layer_norm(x + ff, ln3_g_ref[0], ln3_b_ref[0])

        act_ref[...] = x

        # ---------------- final vocab projection (lane-dense, padded) --------
        @pl.when(is_last)
        def _():
            logits = dot(x, fc_w_ref[...]) + fc_b_ref[...]     # (M, O_pad)
            out_ref[...] = logits.reshape(bb, T, O_pad)

    return kernel


# --------------------------- parameter packing -------------------------------

def pack_params(raw):
    """One-time repack of PyTorch-layout params into kernel layout."""
    layers = raw["layers"]
    L = len(layers)
    H = raw["tok_embedding"].shape[1]
    O = raw["fc_w"].shape[0]
    O_pad = _round_up(O, 128)

    def stack(fn):
        return jnp.stack([fn(layers[l]) for l in range(L)], axis=0)

    packed = {
        "tok_embedding": raw["tok_embedding"],
        "pos_embedding": raw["pos_embedding"],
        "sa_wqkv": stack(lambda p: jnp.concatenate(
            [p["sa_wq"].T, p["sa_wk"].T, p["sa_wv"].T], axis=1)),
        "sa_bqkv": stack(lambda p: jnp.concatenate(
            [p["sa_bq"], p["sa_bk"], p["sa_bv"]]).reshape(1, 3 * H)),
        "sa_wo": stack(lambda p: p["sa_wo"].T),
        "sa_bo": stack(lambda p: p["sa_bo"].reshape(1, H)),
        "ln1_g": stack(lambda p: p["ln1_g"].reshape(1, H)),
        "ln1_b": stack(lambda p: p["ln1_b"].reshape(1, H)),
        "ca_wq": stack(lambda p: p["ca_wq"].T),
        "ca_bq": stack(lambda p: p["ca_bq"].reshape(1, H)),
        "ca_wkv": stack(lambda p: jnp.concatenate(
            [p["ca_wk"].T, p["ca_wv"].T], axis=1)),
        "ca_bkv": stack(lambda p: jnp.concatenate(
            [p["ca_bk"], p["ca_bv"]]).reshape(1, 2 * H)),
        "ca_wo": stack(lambda p: p["ca_wo"].T),
        "ca_bo": stack(lambda p: p["ca_bo"].reshape(1, H)),
        "ln2_g": stack(lambda p: p["ln2_g"].reshape(1, H)),
        "ln2_b": stack(lambda p: p["ln2_b"].reshape(1, H)),
        "ff_w1": stack(lambda p: p["ff_w1"].T),
        "ff_b1": stack(lambda p: p["ff_b1"].reshape(1, -1)),
        "ff_w2": stack(lambda p: p["ff_w2"].T),
        "ff_b2": stack(lambda p: p["ff_b2"].reshape(1, H)),
        "ln3_g": stack(lambda p: p["ln3_g"].reshape(1, H)),
        "ln3_b": stack(lambda p: p["ln3_b"].reshape(1, H)),
        "fc_w": jnp.pad(raw["fc_w"].T, ((0, 0), (0, O_pad - O))),
        "fc_b": jnp.pad(raw["fc_b"], (0, O_pad - O)).reshape(1, O_pad),
    }
    return packed


_WEIGHT_ORDER = ("sa_wqkv", "sa_bqkv", "sa_wo", "sa_bo", "ln1_g", "ln1_b",
                 "ca_wq", "ca_bq", "ca_wkv", "ca_bkv", "ca_wo", "ca_bo",
                 "ln2_g", "ln2_b",
                 "ff_w1", "ff_b1", "ff_w2", "ff_b2", "ln3_g", "ln3_b",
                 "fc_w", "fc_b")


# --------------------------- forward wrapper ---------------------------------

@functools.partial(jax.jit, static_argnames=("n_layers", "n_heads", "output_dim"))
def att_decoder_forward(packed, trg, enc_src, trg_mask, src_mask,
                        *, n_layers, n_heads, output_dim):
    """trg: (B, T) int32 tokens; enc_src: (B, S, H);
    trg_mask: (B, T, T) float {0,1}; src_mask: (B, 1, S) float {0,1}."""
    B, T = trg.shape
    S = enc_src.shape[1]
    H = packed["tok_embedding"].shape[1]
    O_pad = packed["fc_w"].shape[1]
    S_pad = _round_up(S, 128)

    # ---- embedding + positional embedding (gather is glue, not hot path)
    scale = jnp.sqrt(jnp.float32(H))
    tok = jnp.take(packed["tok_embedding"], trg, axis=0)          # (B, T, H)
    pos = packed["pos_embedding"][:T][None, :, :]                  # (1, T, H)
    x = (tok * scale + pos).astype(jnp.float32)
    # TODO(synk): nn.Dropout implemented as eval-mode identity (no RNG mask).

    # ---- precomputed ADDITIVE masks (0 keep / -1e10 drop), lane-dense S_pad
    add_tmask = (trg_mask.astype(jnp.float32) - 1.0) * 1e10        # (B, T, T)
    sm = (src_mask.astype(jnp.float32) - 1.0) * 1e10               # (B, 1, S)
    add_smask = jnp.broadcast_to(sm, (B, T, S))
    add_smask = jnp.pad(add_smask, ((0, 0), (0, 0), (0, S_pad - S)),
                        constant_values=-1e10)                     # (B, T, S_pad)
    enc_pad = jnp.pad(enc_src.astype(jnp.float32),
                      ((0, 0), (0, S_pad - S), (0, 0)))            # (B, S_pad, H)

    # ---- batch blocking: flatten bb*T into matmul M; leading grid axis is
    #      "parallel" so large B shards across TensorCores (v7x).
    bb = min(B, max(1, 256 // max(T, 1)))
    while B % bb:
        bb -= 1
    n_bblk = B // bb

    kernel = make_decoder_kernel(n_layers, n_heads, bb, T, S_pad, H, O_pad)
    weights = [packed[k] for k in _WEIGHT_ORDER]

    in_specs = [
        pl.BlockSpec((bb, T, H), lambda b, l: (b, 0, 0)),          # x
        pl.BlockSpec((bb, S_pad, H), lambda b, l: (b, 0, 0)),      # enc (padded)
        pl.BlockSpec((bb, T, T), lambda b, l: (b, 0, 0)),          # add tmask
        pl.BlockSpec((bb, T, S_pad), lambda b, l: (b, 0, 0)),      # add smask
    ]
    for name in _WEIGHT_ORDER:
        w = packed[name]
        if name in ("fc_w", "fc_b"):                               # resident once
            in_specs.append(pl.BlockSpec(w.shape, lambda b, l: (0, 0)))
        else:                                                      # streamed per layer
            in_specs.append(pl.BlockSpec((1,) + w.shape[1:],
                                         lambda b, l: (l, 0, 0)))

    out_shape = (jax.ShapeDtypeStruct((B, T, O_pad), jnp.float32),
                 jax.ShapeDtypeStruct((n_heads, B, T, S_pad), jnp.float32))
    out_specs = (pl.BlockSpec((bb, T, O_pad), lambda b, l: (b, 0, 0)),
                 pl.BlockSpec((n_heads, bb, T, S_pad), lambda b, l: (0, b, 0, 0)))

    # ---- VMEM budget from the actual resident working set (+ margin)
    layer_bytes = sum(math.prod(packed[k].shape[1:]) * 4
                      for k in _WEIGHT_ORDER if k not in ("fc_w", "fc_b"))
    resident_bytes = 4 * (bb * T * H + bb * S_pad * H + bb * T * T
                          + bb * T * S_pad + bb * T * O_pad
                          + n_heads * bb * T * S_pad + bb * T * H
                          + math.prod(packed["fc_w"].shape)
                          + math.prod(packed["fc_b"].shape))
    vmem_limit = int(min(max(3 * layer_bytes + 2 * resident_bytes + (4 << 20),
                             16 << 20), 64 << 20))

    out_pad, attn_pad = pl.pallas_call(
        kernel,
        out_shape=out_shape,
        grid_spec=pltpu.PrefetchScalarGridSpec(
            num_scalar_prefetch=0,
            grid=(n_bblk, n_layers),
            in_specs=in_specs,
            out_specs=out_specs,
            scratch_shapes=[pltpu.VMEM((bb * T, H), jnp.float32)]),
        compiler_params=pltpu.CompilerParams(
            dimension_semantics=("parallel", "arbitrary"),
            vmem_limit_bytes=vmem_limit),
    )(x, enc_pad, add_tmask, add_smask, *weights)

    output = out_pad[:, :, :output_dim]
    attention = jnp.transpose(attn_pad[:, :, :, :S], (1, 0, 2, 3))
    return output, attention


# --------------------------- reference (pure JAX) ----------------------------

def _ref_mha(x_q, x_kv, mask, p, prefix, n_heads):
    B, Tq, H = x_q.shape
    Tk = x_kv.shape[1]
    d = H // n_heads
    Q = x_q @ p[prefix + "_wq"].T + p[prefix + "_bq"]
    K = x_kv @ p[prefix + "_wk"].T + p[prefix + "_bk"]
    V = x_kv @ p[prefix + "_wv"].T + p[prefix + "_bv"]
    Q = Q.reshape(B, Tq, n_heads, d).transpose(0, 2, 1, 3)
    K = K.reshape(B, Tk, n_heads, d).transpose(0, 2, 1, 3)
    V = V.reshape(B, Tk, n_heads, d).transpose(0, 2, 1, 3)
    energy = jnp.einsum("bhqd,bhkd->bhqk", Q, K) / jnp.sqrt(jnp.float32(d))
    energy = jnp.where(mask == 0, -1e10, energy)
    attn = jax.nn.softmax(energy, axis=-1)
    ctx = jnp.einsum("bhqk,bhkd->bhqd", attn, V)
    ctx = ctx.transpose(0, 2, 1, 3).reshape(B, Tq, H)
    return ctx @ p[prefix + "_wo"].T + p[prefix + "_bo"], attn


def _ref_layer_norm(v, g, b):
    mu = v.mean(-1, keepdims=True)
    var = ((v - mu) ** 2).mean(-1, keepdims=True)
    return (v - mu) / jnp.sqrt(var + 1e-5) * g + b


def _ref_forward(raw, trg, enc_src, trg_mask4, src_mask4, n_heads):
    H = raw["tok_embedding"].shape[1]
    B, T = trg.shape
    x = (jnp.take(raw["tok_embedding"], trg, axis=0) * jnp.sqrt(jnp.float32(H))
         + raw["pos_embedding"][:T][None])
    attention = None
    for L in raw["layers"]:
        sa, _ = _ref_mha(x, x, trg_mask4, L, "sa", n_heads)
        x = _ref_layer_norm(x + sa, L["ln1_g"], L["ln1_b"])
        ca, attention = _ref_mha(x, enc_src, src_mask4, L, "ca", n_heads)
        x = _ref_layer_norm(x + ca, L["ln2_g"], L["ln2_b"])
        ff = jnp.maximum(x @ L["ff_w1"].T + L["ff_b1"], 0.0) @ L["ff_w2"].T + L["ff_b2"]
        x = _ref_layer_norm(x + ff, L["ln3_g"], L["ln3_b"])
    out = x @ raw["fc_w"].T + raw["fc_b"]
    return out, attention


# --------------------------- parameter init ----------------------------------

def init_params(key, output_dim, hid_dim, n_layers, n_heads, pf_dim, max_length=100):
    ks = iter(list(jax.random.split(key, 4 + 26 * n_layers)))

    def nk():
        return next(ks)

    def linear_init(out_d, in_d):
        bound = 1.0 / math.sqrt(in_d)
        w = jax.random.uniform(nk(), (out_d, in_d), jnp.float32, -bound, bound)
        b = jax.random.uniform(nk(), (out_d,), jnp.float32, -bound, bound)
        return w, b

    raw = {
        "tok_embedding": jax.random.normal(nk(), (output_dim, hid_dim), jnp.float32),
        "pos_embedding": jax.random.normal(nk(), (max_length, hid_dim), jnp.float32),
    }
    layers = []
    for _ in range(n_layers):
        p = {}
        p["sa_wq"], p["sa_bq"] = linear_init(hid_dim, hid_dim)
        p["sa_wk"], p["sa_bk"] = linear_init(hid_dim, hid_dim)
        p["sa_wv"], p["sa_bv"] = linear_init(hid_dim, hid_dim)
        p["sa_wo"], p["sa_bo"] = linear_init(hid_dim, hid_dim)
        p["ca_wq"], p["ca_bq"] = linear_init(hid_dim, hid_dim)
        p["ca_wk"], p["ca_bk"] = linear_init(hid_dim, hid_dim)
        p["ca_wv"], p["ca_bv"] = linear_init(hid_dim, hid_dim)
        p["ca_wo"], p["ca_bo"] = linear_init(hid_dim, hid_dim)
        p["ff_w1"], p["ff_b1"] = linear_init(pf_dim, hid_dim)
        p["ff_w2"], p["ff_b2"] = linear_init(hid_dim, pf_dim)
        for nm in ("ln1", "ln2", "ln3"):
            p[nm + "_g"] = 1.0 + 0.1 * jax.random.normal(nk(), (hid_dim,), jnp.float32)
            p[nm + "_b"] = 0.1 * jax.random.normal(nk(), (hid_dim,), jnp.float32)
        layers.append(p)
    raw["layers"] = layers
    raw["fc_w"], raw["fc_b"] = linear_init(output_dim, hid_dim)
    return raw


# --------------------------- main ---------------------------------------------

if __name__ == "__main__":
    output_dim, hid_dim, n_layers, n_heads, pf_dim = 50, 64, 2, 4, 128
    batch, trg_len, src_len = 2, 8, 12

    key = jax.random.PRNGKey(0)
    pkey, tkey, ekey = jax.random.split(key, 3)

    raw = init_params(pkey, output_dim, hid_dim, n_layers, n_heads, pf_dim)
    packed = pack_params(raw)   # one-time weight repack (out of the hot path)

    trg = jax.random.randint(tkey, (batch, trg_len), 0, output_dim, jnp.int32)
    enc_src = jax.random.normal(ekey, (batch, src_len, hid_dim), jnp.float32)
    trg_mask = jnp.tile(jnp.tril(jnp.ones((trg_len, trg_len), jnp.float32))[None],
                        (batch, 1, 1))                              # causal (B,T,T)
    src_mask = jnp.ones((batch, 1, src_len), jnp.float32)
    src_mask = src_mask.at[1, 0, src_len - 2:].set(0.0)             # pad last 2 src pos

    out, attn = att_decoder_forward(packed, trg, enc_src, trg_mask, src_mask,
                                    n_layers=n_layers, n_heads=n_heads,
                                    output_dim=output_dim)
    jax.block_until_ready((out, attn))

    out_r, attn_r = _ref_forward(raw, trg, enc_src,
                                 trg_mask[:, None], src_mask[:, None], n_heads)

    assert out.shape == (batch, trg_len, output_dim)
    assert attn.shape == (batch, n_heads, trg_len, src_len)
    assert jnp.allclose(out, out_r, atol=1e-4, rtol=1e-4)
    assert jnp.allclose(attn, attn_r, atol=1e-4, rtol=1e-4)

    print("KERNEL_OK")
</pallas_src>

<mosaic_0001>
module attributes {stable_mosaic.version = 11 : i64} {
  func.func @kernel(%arg0: i32, %arg1: i32, %arg2: memref<2x8x64xf32, #tpu.memory_space<vmem>>, %arg3: memref<2x128x64xf32, #tpu.memory_space<vmem>>, %arg4: memref<2x8x8xf32, #tpu.memory_space<vmem>>, %arg5: memref<2x8x128xf32, #tpu.memory_space<vmem>>, %arg6: memref<1x64x192xf32, #tpu.memory_space<vmem>>, %arg7: memref<1x1x192xf32, #tpu.memory_space<vmem>>, %arg8: memref<1x64x64xf32, #tpu.memory_space<vmem>>, %arg9: memref<1x1x64xf32, #tpu.memory_space<vmem>>, %arg10: memref<1x1x64xf32, #tpu.memory_space<vmem>>, %arg11: memref<1x1x64xf32, #tpu.memory_space<vmem>>, %arg12: memref<1x64x64xf32, #tpu.memory_space<vmem>>, %arg13: memref<1x1x64xf32, #tpu.memory_space<vmem>>, %arg14: memref<1x64x128xf32, #tpu.memory_space<vmem>>, %arg15: memref<1x1x128xf32, #tpu.memory_space<vmem>>, %arg16: memref<1x64x64xf32, #tpu.memory_space<vmem>>, %arg17: memref<1x1x64xf32, #tpu.memory_space<vmem>>, %arg18: memref<1x1x64xf32, #tpu.memory_space<vmem>>, %arg19: memref<1x1x64xf32, #tpu.memory_space<vmem>>, %arg20: memref<1x64x128xf32, #tpu.memory_space<vmem>>, %arg21: memref<1x1x128xf32, #tpu.memory_space<vmem>>, %arg22: memref<1x128x64xf32, #tpu.memory_space<vmem>>, %arg23: memref<1x1x64xf32, #tpu.memory_space<vmem>>, %arg24: memref<1x1x64xf32, #tpu.memory_space<vmem>>, %arg25: memref<1x1x64xf32, #tpu.memory_space<vmem>>, %arg26: memref<64x128xf32, #tpu.memory_space<vmem>>, %arg27: memref<1x128xf32, #tpu.memory_space<vmem>>, %arg28: memref<2x8x128xf32, #tpu.memory_space<vmem>>, %arg29: memref<4x2x8x128xf32, #tpu.memory_space<vmem>>, %arg30: memref<16x64xf32, #tpu.memory_space<vmem>>) attributes {dimension_semantics = [#tpu.dimension_semantics<parallel>, #tpu.dimension_semantics<arbitrary>], iteration_bounds = array<i64: 1, 2>, scalar_prefetch = 0 : i64, scratch_operands = 1 : i64, tpu.core_type = #tpu.core_type<tc>, window_params = [{transform_indices = @transform_0, window_bounds = array<i64: 2, 8, 64>}, {transform_indices = @transform_1, window_bounds = array<i64: 2, 128, 64>}, {transform_indices = @transform_2, window_bounds = array<i64: 2, 8, 8>}, {transform_indices = @transform_3, window_bounds = array<i64: 2, 8, 128>}, {transform_indices = @transform_4, window_bounds = array<i64: 1, 64, 192>}, {transform_indices = @transform_5, window_bounds = array<i64: 1, 1, 192>}, {transform_indices = @transform_6, window_bounds = array<i64: 1, 64, 64>}, {transform_indices = @transform_7, window_bounds = array<i64: 1, 1, 64>}, {transform_indices = @transform_8, window_bounds = array<i64: 1, 1, 64>}, {transform_indices = @transform_9, window_bounds = array<i64: 1, 1, 64>}, {transform_indices = @transform_10, window_bounds = array<i64: 1, 64, 64>}, {transform_indices = @transform_11, window_bounds = array<i64: 1, 1, 64>}, {transform_indices = @transform_12, window_bounds = array<i64: 1, 64, 128>}, {transform_indices = @transform_13, window_bounds = array<i64: 1, 1, 128>}, {transform_indices = @transform_14, window_bounds = array<i64: 1, 64, 64>}, {transform_indices = @transform_15, window_bounds = array<i64: 1, 1, 64>}, {transform_indices = @transform_16, window_bounds = array<i64: 1, 1, 64>}, {transform_indices = @transform_17, window_bounds = array<i64: 1, 1, 64>}, {transform_indices = @transform_18, window_bounds = array<i64: 1, 64, 128>}, {transform_indices = @transform_19, window_bounds = array<i64: 1, 1, 128>}, {transform_indices = @transform_20, window_bounds = array<i64: 1, 128, 64>}, {transform_indices = @transform_21, window_bounds = array<i64: 1, 1, 64>}, {transform_indices = @transform_22, window_bounds = array<i64: 1, 1, 64>}, {transform_indices = @transform_23, window_bounds = array<i64: 1, 1, 64>}, {pipeline_mode = #tpu.pipeline_mode<synchronous>, transform_indices = @transform_24, window_bounds = array<i64: 64, 128>}, {pipeline_mode = #tpu.pipeline_mode<synchronous>, transform_indices = @transform_25, window_bounds = array<i64: 1, 128>}, {transform_indices = @transform_26, window_bounds = array<i64: 2, 8, 128>}, {transform_indices = @transform_27, window_bounds = array<i64: 4, 2, 8, 128>}]} {
    %c1_i32 = arith.constant 1 : i32
    %0 = arith.cmpi eq, %arg1, %c1_i32 : i32
    %c0_i32 = arith.constant 0 : i32
    %1 = arith.cmpi eq, %arg1, %c0_i32 : i32
    %2 = arith.extui %1 : i1 to i32
    %c0_i32_0 = arith.constant 0 : i32
    %3 = arith.cmpi ne, %2, %c0_i32_0 : i32
    scf.if %3 {
      %c0_140 = arith.constant 0 : index
      %c0_141 = arith.constant 0 : index
      %c0_142 = arith.constant 0 : index
      %307 = vector.load %arg2[%c0_140, %c0_141, %c0_142] : memref<2x8x64xf32, #tpu.memory_space<vmem>>, vector<2x8x64xf32>
      %308 = vector.shape_cast %307 : vector<2x8x64xf32> to vector<16x64xf32>
      %c0_143 = arith.constant 0 : index
      %c0_144 = arith.constant 0 : index
      %309 = vector.load %arg30[%c0_143, %c0_144] : memref<16x64xf32, #tpu.memory_space<vmem>>, vector<16x64xf32>
      tpu.vector_store %arg30[%c0_143, %c0_144], %308 {strides = array<i32>} : memref<16x64xf32, #tpu.memory_space<vmem>>, vector<16x64xf32>,
    } else {
    }
    %c0 = arith.constant 0 : index
    %c0_1 = arith.constant 0 : index
    %4 = vector.load %arg30[%c0, %c0_1] : memref<16x64xf32, #tpu.memory_space<vmem>>, vector<16x64xf32>
    %c0_2 = arith.constant 0 : index
    %c0_3 = arith.constant 0 : index
    %c0_4 = arith.constant 0 : index
    %5 = vector.load %arg4[%c0_2, %c0_3, %c0_4] : memref<2x8x8xf32, #tpu.memory_space<vmem>>, vector<2x8x8xf32>
    %c0_5 = arith.constant 0 : index
    %c0_6 = arith.constant 0 : index
    %c0_7 = arith.constant 0 : index
    %6 = vector.load %arg5[%c0_5, %c0_6, %c0_7] : memref<2x8x128xf32, #tpu.memory_space<vmem>>, vector<2x8x128xf32>
    %c0_8 = arith.constant 0 : index
    %c0_9 = arith.constant 0 : index
    %c0_10 = arith.constant 0 : index
    %7 = vector.load %arg6[%c0_8, %c0_9, %c0_10] : memref<1x64x192xf32, #tpu.memory_space<vmem>>, vector<1x64x192xf32>
    %8 = vector.shape_cast %7 : vector<1x64x192xf32> to vector<64x192xf32>
    %cst = arith.constant dense<0.000000e+00> : vector<16x192xf32>
    %9 = tpu.matmul %4, %8, %cst {dimension_numbers = #tpu.dot_dimension_numbers<[1], [0], [0], [1], [0, 0, 1, 1], [], []>} : vector<16x64xf32>, vector<64x192xf32>, vector<16x192xf32> -> vector<16x192xf32>
    %c0_11 = arith.constant 0 : index
    %c0_12 = arith.constant 0 : index
    %c0_13 = arith.constant 0 : index
    %10 = vector.load %arg7[%c0_11, %c0_12, %c0_13] : memref<1x1x192xf32, #tpu.memory_space<vmem>>, vector<1x1x192xf32>
    %11 = vector.shape_cast %10 : vector<1x1x192xf32> to vector<1x192xf32>
    %12 = vector.broadcast %11 : vector<1x192xf32> to vector<16x192xf32>
    %13 = arith.addf %9, %12 : vector<16x192xf32>
    %14 = vector.shape_cast %13 : vector<16x192xf32> to vector<2x8x192xf32>
    %15 = vector.extract_strided_slice %14 {offsets = [0, 0, 0], sizes = [2, 8, 16], strides = [1, 1, 1]} : vector<2x8x192xf32> to vector<2x8x16xf32>
    %16 = vector.extract_strided_slice %14 {offsets = [0, 0, 64], sizes = [2, 8, 16], strides = [1, 1, 1]} : vector<2x8x192xf32> to vector<2x8x16xf32>
    %17 = vector.extract_strided_slice %14 {offsets = [0, 0, 128], sizes = [2, 8, 16], strides = [1, 1, 1]} : vector<2x8x192xf32> to vector<2x8x16xf32>
    "tpu.trace_start"() <{level = 10 : i32, message = "bqd,bkd->bqk"}> : () -> ()
    %cst_14 = arith.constant dense<0.000000e+00> : vector<2x8x8xf32>
    %18 = tpu.matmul %15, %16, %cst_14 {dimension_numbers = #tpu.dot_dimension_numbers<[2], [2], [1], [1], [0, 0, 0, 1, 1, 1], [0], [0]>} : vector<2x8x16xf32>, vector<2x8x16xf32>, vector<2x8x8xf32> -> vector<2x8x8xf32>
    "tpu.trace_stop"() : () -> ()
    %cst_15 = arith.constant 2.500000e-01 : f32
    %19 = vector.broadcast %cst_15 : f32 to vector<2x8x8xf32>
    %20 = arith.mulf %18, %19 : vector<2x8x8xf32>
    %21 = arith.addf %20, %5 : vector<2x8x8xf32>
    %cst_16 = arith.constant dense<0xFF800000> : vector<2x8xf32>
    %22 = vector.multi_reduction <maximumf>, %21, %cst_16 [2] : vector<2x8x8xf32> to vector<2x8xf32>
    %23 = vector.shape_cast %22 : vector<2x8xf32> to vector<2x8x1xf32>
    %24 = vector.broadcast %23 : vector<2x8x1xf32> to vector<2x8x8xf32>
    %25 = arith.subf %21, %24 : vector<2x8x8xf32>
    %26 = math.exp %25 : vector<2x8x8xf32>
    %cst_17 = arith.constant dense<0.000000e+00> : vector<2x8xf32>
    %27 = vector.multi_reduction <add>, %26, %cst_17 [2] : vector<2x8x8xf32> to vector<2x8xf32>
    %28 = vector.shape_cast %27 : vector<2x8xf32> to vector<2x8x1xf32>
    %29 = vector.broadcast %28 : vector<2x8x1xf32> to vector<2x8x8xf32>
    %30 = arith.divf %26, %29 : vector<2x8x8xf32>
    "tpu.trace_start"() <{level = 10 : i32, message = "bqk,bkd->bqd"}> : () -> ()
    %cst_18 = arith.constant dense<0.000000e+00> : vector<2x8x16xf32>
    %31 = tpu.matmul %30, %17, %cst_18 {dimension_numbers = #tpu.dot_dimension_numbers<[2], [1], [1], [2], [0, 0, 0, 1, 1, 2], [0], [0]>} : vector<2x8x8xf32>, vector<2x8x16xf32>, vector<2x8x16xf32> -> vector<2x8x16xf32>
    "tpu.trace_stop"() : () -> ()
    %32 = vector.shape_cast %31 : vector<2x8x16xf32> to vector<16x16xf32>
    %33 = vector.extract_strided_slice %14 {offsets = [0, 0, 16], sizes = [2, 8, 16], strides = [1, 1, 1]} : vector<2x8x192xf32> to vector<2x8x16xf32>
    %34 = vector.extract_strided_slice %14 {offsets = [0, 0, 80], sizes = [2, 8, 16], strides = [1, 1, 1]} : vector<2x8x192xf32> to vector<2x8x16xf32>
    %35 = vector.extract_strided_slice %14 {offsets = [0, 0, 144], sizes = [2, 8, 16], strides = [1, 1, 1]} : vector<2x8x192xf32> to vector<2x8x16xf32>
    "tpu.trace_start"() <{level = 10 : i32, message = "bqd,bkd->bqk"}> : () -> ()
    %cst_19 = arith.constant dense<0.000000e+00> : vector<2x8x8xf32>
    %36 = tpu.matmul %33, %34, %cst_19 {dimension_numbers = #tpu.dot_dimension_numbers<[2], [2], [1], [1], [0, 0, 0, 1, 1, 1], [0], [0]>} : vector<2x8x16xf32>, vector<2x8x16xf32>, vector<2x8x8xf32> -> vector<2x8x8xf32>
    "tpu.trace_stop"() : () -> ()
    %cst_20 = arith.constant 2.500000e-01 : f32
    %37 = vector.broadcast %cst_20 : f32 to vector<2x8x8xf32>
    %38 = arith.mulf %36, %37 : vector<2x8x8xf32>
    %39 = arith.addf %38, %5 : vector<2x8x8xf32>
    %cst_21 = arith.constant dense<0xFF800000> : vector<2x8xf32>
    %40 = vector.multi_reduction <maximumf>, %39, %cst_21 [2] : vector<2x8x8xf32> to vector<2x8xf32>
    %41 = vector.shape_cast %40 : vector<2x8xf32> to vector<2x8x1xf32>
    %42 = vector.broadcast %41 : vector<2x8x1xf32> to vector<2x8x8xf32>
    %43 = arith.subf %39, %42 : vector<2x8x8xf32>
    %44 = math.exp %43 : vector<2x8x8xf32>
    %cst_22 = arith.constant dense<0.000000e+00> : vector<2x8xf32>
    %45 = vector.multi_reduction <add>, %44, %cst_22 [2] : vector<2x8x8xf32> to vector<2x8xf32>
    %46 = vector.shape_cast %45 : vector<2x8xf32> to vector<2x8x1xf32>
    %47 = vector.broadcast %46 : vector<2x8x1xf32> to vector<2x8x8xf32>
    %48 = arith.divf %44, %47 : vector<2x8x8xf32>
    "tpu.trace_start"() <{level = 10 : i32, message = "bqk,bkd->bqd"}> : () -> ()
    %cst_23 = arith.constant dense<0.000000e+00> : vector<2x8x16xf32>
    %49 = tpu.matmul %48, %35, %cst_23 {dimension_numbers = #tpu.dot_dimension_numbers<[2], [1], [1], [2], [0, 0, 0, 1, 1, 2], [0], [0]>} : vector<2x8x8xf32>, vector<2x8x16xf32>, vector<2x8x16xf32> -> vector<2x8x16xf32>
    "tpu.trace_stop"() : () -> ()
    %50 = vector.shape_cast %49 : vector<2x8x16xf32> to vector<16x16xf32>
    %51 = vector.extract_strided_slice %14 {offsets = [0, 0, 32], sizes = [2, 8, 16], strides = [1, 1, 1]} : vector<2x8x192xf32> to vector<2x8x16xf32>
    %52 = vector.extract_strided_slice %14 {offsets = [0, 0, 96], sizes = [2, 8, 16], strides = [1, 1, 1]} : vector<2x8x192xf32> to vector<2x8x16xf32>
    %53 = vector.extract_strided_slice %14 {offsets = [0, 0, 160], sizes = [2, 8, 16], strides = [1, 1, 1]} : vector<2x8x192xf32> to vector<2x8x16xf32>
    "tpu.trace_start"() <{level = 10 : i32, message = "bqd,bkd->bqk"}> : () -> ()
    %cst_24 = arith.constant dense<0.000000e+00> : vector<2x8x8xf32>
    %54 = tpu.matmul %51, %52, %cst_24 {dimension_numbers = #tpu.dot_dimension_numbers<[2], [2], [1], [1], [0, 0, 0, 1, 1, 1], [0], [0]>} : vector<2x8x16xf32>, vector<2x8x16xf32>, vector<2x8x8xf32> -> vector<2x8x8xf32>
    "tpu.trace_stop"() : () -> ()
    %cst_25 = arith.constant 2.500000e-01 : f32
    %55 = vector.broadcast %cst_25 : f32 to vector<2x8x8xf32>
    %56 = arith.mulf %54, %55 : vector<2x8x8xf32>
    %57 = arith.addf %56, %5 : vector<2x8x8xf32>
    %cst_26 = arith.constant dense<0xFF800000> : vector<2x8xf32>
    %58 = vector.multi_reduction <maximumf>, %57, %cst_26 [2] : vector<2x8x8xf32> to vector<2x8xf32>
    %59 = vector.shape_cast %58 : vector<2x8xf32> to vector<2x8x1xf32>
    %60 = vector.broadcast %59 : vector<2x8x1xf32> to vector<2x8x8xf32>
    %61 = arith.subf %57, %60 : vector<2x8x8xf32>
    %62 = math.exp %61 : vector<2x8x8xf32>
    %cst_27 = arith.constant dense<0.000000e+00> : vector<2x8xf32>
    %63 = vector.multi_reduction <add>, %62, %cst_27 [2] : vector<2x8x8xf32> to vector<2x8xf32>
    %64 = vector.shape_cast %63 : vector<2x8xf32> to vector<2x8x1xf32>
    %65 = vector.broadcast %64 : vector<2x8x1xf32> to vector<2x8x8xf32>
    %66 = arith.divf %62, %65 : vector<2x8x8xf32>
    "tpu.trace_start"() <{level = 10 : i32, message = "bqk,bkd->bqd"}> : () -> ()
    %cst_28 = arith.constant dense<0.000000e+00> : vector<2x8x16xf32>
    %67 = tpu.matmul %66, %53, %cst_28 {dimension_numbers = #tpu.dot_dimension_numbers<[2], [1], [1], [2], [0, 0, 0, 1, 1, 2], [0], [0]>} : vector<2x8x8xf32>, vector<2x8x16xf32>, vector<2x8x16xf32> -> vector<2x8x16xf32>
    "tpu.trace_stop"() : () -> ()
    %68 = vector.shape_cast %67 : vector<2x8x16xf32> to vector<16x16xf32>
    %69 = vector.extract_strided_slice %14 {offsets = [0, 0, 48], sizes = [2, 8, 16], strides = [1, 1, 1]} : vector<2x8x192xf32> to vector<2x8x16xf32>
    %70 = vector.extract_strided_slice %14 {offsets = [0, 0, 112], sizes = [2, 8, 16], strides = [1, 1, 1]} : vector<2x8x192xf32> to vector<2x8x16xf32>
    %71 = vector.extract_strided_slice %14 {offsets = [0, 0, 176], sizes = [2, 8, 16], strides = [1, 1, 1]} : vector<2x8x192xf32> to vector<2x8x16xf32>
    "tpu.trace_start"() <{level = 10 : i32, message = "bqd,bkd->bqk"}> : () -> ()
    %cst_29 = arith.constant dense<0.000000e+00> : vector<2x8x8xf32>
    %72 = tpu.matmul %69, %70, %cst_29 {dimension_numbers = #tpu.dot_dimension_numbers<[2], [2], [1], [1], [0, 0, 0, 1, 1, 1], [0], [0]>} : vector<2x8x16xf32>, vector<2x8x16xf32>, vector<2x8x8xf32> -> vector<2x8x8xf32>
    "tpu.trace_stop"() : () -> ()
    %cst_30 = arith.constant 2.500000e-01 : f32
    %73 = vector.broadcast %cst_30 : f32 to vector<2x8x8xf32>
    %74 = arith.mulf %72, %73 : vector<2x8x8xf32>
    %75 = arith.addf %74, %5 : vector<2x8x8xf32>
    %cst_31 = arith.constant dense<0xFF800000> : vector<2x8xf32>
    %76 = vector.multi_reduction <maximumf>, %75, %cst_31 [2] : vector<2x8x8xf32> to vector<2x8xf32>
    %77 = vector.shape_cast %76 : vector<2x8xf32> to vector<2x8x1xf32>
    %78 = vector.broadcast %77 : vector<2x8x1xf32> to vector<2x8x8xf32>
    %79 = arith.subf %75, %78 : vector<2x8x8xf32>
    %80 = math.exp %79 : vector<2x8x8xf32>
    %cst_32 = arith.constant dense<0.000000e+00> : vector<2x8xf32>
    %81 = vector.multi_reduction <add>, %80, %cst_32 [2] : vector<2x8x8xf32> to vector<2x8xf32>
    %82 = vector.shape_cast %81 : vector<2x8xf32> to vector<2x8x1xf32>
    %83 = vector.broadcast %82 : vector<2x8x1xf32> to vector<2x8x8xf32>
    %84 = arith.divf %80, %83 : vector<2x8x8xf32>
    "tpu.trace_start"() <{level = 10 : i32, message = "bqk,bkd->bqd"}> : () -> ()
    %cst_33 = arith.constant dense<0.000000e+00> : vector<2x8x16xf32>
    %85 = tpu.matmul %84, %71, %cst_33 {dimension_numbers = #tpu.dot_dimension_numbers<[2], [1], [1], [2], [0, 0, 0, 1, 1, 2], [0], [0]>} : vector<2x8x8xf32>, vector<2x8x16xf32>, vector<2x8x16xf32> -> vector<2x8x16xf32>
    "tpu.trace_stop"() : () -> ()
    %86 = vector.shape_cast %85 : vector<2x8x16xf32> to vector<16x16xf32>
    %87 = tpu.concatenate %32, %50, %68, %86 in 1 : vector<16x16xf32>, vector<16x16xf32>, vector<16x16xf32>, vector<16x16xf32> -> vector<16x64xf32>
    %c0_34 = arith.constant 0 : index
    %c0_35 = arith.constant 0 : index
    %c0_36 = arith.constant 0 : index
    %88 = vector.load %arg8[%c0_34, %c0_35, %c0_36] : memref<1x64x64xf32, #tpu.memory_space<vmem>>, vector<1x64x64xf32>
    %89 = vector.shape_cast %88 : vector<1x64x64xf32> to vector<64x64xf32>
    %cst_37 = arith.constant dense<0.000000e+00> : vector<16x64xf32>
    %90 = tpu.matmul %87, %89, %cst_37 {dimension_numbers = #tpu.dot_dimension_numbers<[1], [0], [0], [1], [0, 0, 1, 1], [], []>} : vector<16x64xf32>, vector<64x64xf32>, vector<16x64xf32> -> vector<16x64xf32>
    %c0_38 = arith.constant 0 : index
    %c0_39 = arith.constant 0 : index
    %c0_40 = arith.constant 0 : index
    %91 = vector.load %arg9[%c0_38, %c0_39, %c0_40] : memref<1x1x64xf32, #tpu.memory_space<vmem>>, vector<1x1x64xf32>
    %92 = vector.shape_cast %91 : vector<1x1x64xf32> to vector<1x64xf32>
    %93 = vector.broadcast %92 : vector<1x64xf32> to vector<16x64xf32>
    %94 = arith.addf %90, %93 : vector<16x64xf32>
    %95 = arith.addf %4, %94 : vector<16x64xf32>
    %c0_41 = arith.constant 0 : index
    %c0_42 = arith.constant 0 : index
    %c0_43 = arith.constant 0 : index
    %96 = vector.load %arg10[%c0_41, %c0_42, %c0_43] : memref<1x1x64xf32, #tpu.memory_space<vmem>>, vector<1x1x64xf32>
    %97 = vector.shape_cast %96 : vector<1x1x64xf32> to vector<1x64xf32>
    %c0_44 = arith.constant 0 : index
    %c0_45 = arith.constant 0 : index
    %c0_46 = arith.constant 0 : index
    %98 = vector.load %arg11[%c0_44, %c0_45, %c0_46] : memref<1x1x64xf32, #tpu.memory_space<vmem>>, vector<1x1x64xf32>
    %99 = vector.shape_cast %98 : vector<1x1x64xf32> to vector<1x64xf32>
    %cst_47 = arith.constant dense<0.000000e+00> : vector<16xf32>
    %100 = vector.multi_reduction <add>, %95, %cst_47 [1] : vector<16x64xf32> to vector<16xf32>
    %101 = vector.shape_cast %100 : vector<16xf32> to vector<16x1xf32>
    %cst_48 = arith.constant 6.400000e+01 : f32
    %102 = vector.broadcast %cst_48 : f32 to vector<16x1xf32>
    %103 = arith.divf %101, %102 : vector<16x1xf32>
    %104 = vector.broadcast %103 : vector<16x1xf32> to vector<16x64xf32>
    %105 = arith.subf %95, %104 : vector<16x64xf32>
    %106 = vector.broadcast %103 : vector<16x1xf32> to vector<16x64xf32>
    %107 = arith.subf %95, %106 : vector<16x64xf32>
    %108 = arith.mulf %105, %107 : vector<16x64xf32>
    %cst_49 = arith.constant dense<0.000000e+00> : vector<16xf32>
    %109 = vector.multi_reduction <add>, %108, %cst_49 [1] : vector<16x64xf32> to vector<16xf32>
    %110 = vector.shape_cast %109 : vector<16xf32> to vector<16x1xf32>
    %cst_50 = arith.constant 6.400000e+01 : f32
    %111 = vector.broadcast %cst_50 : f32 to vector<16x1xf32>
    %112 = arith.divf %110, %111 : vector<16x1xf32>
    %113 = vector.broadcast %103 : vector<16x1xf32> to vector<16x64xf32>
    %114 = arith.subf %95, %113 : vector<16x64xf32>
    %cst_51 = arith.constant 9.99999974E-6 : f32
    %115 = vector.broadcast %cst_51 : f32 to vector<16x1xf32>
    %116 = arith.addf %112, %115 : vector<16x1xf32>
    %117 = math.rsqrt %116 : vector<16x1xf32>
    %118 = vector.broadcast %117 : vector<16x1xf32> to vector<16x64xf32>
    %119 = arith.mulf %114, %118 : vector<16x64xf32>
    %120 = vector.broadcast %97 : vector<1x64xf32> to vector<16x64xf32>
    %121 = arith.mulf %119, %120 : vector<16x64xf32>
    %122 = vector.broadcast %99 : vector<1x64xf32> to vector<16x64xf32>
    %123 = arith.addf %121, %122 : vector<16x64xf32>
    %c0_52 = arith.constant 0 : index
    %c0_53 = arith.constant 0 : index
    %c0_54 = arith.constant 0 : index
    %124 = vector.load %arg12[%c0_52, %c0_53, %c0_54] : memref<1x64x64xf32, #tpu.memory_space<vmem>>, vector<1x64x64xf32>
    %125 = vector.shape_cast %124 : vector<1x64x64xf32> to vector<64x64xf32>
    %cst_55 = arith.constant dense<0.000000e+00> : vector<16x64xf32>
    %126 = tpu.matmul %123, %125, %cst_55 {dimension_numbers = #tpu.dot_dimension_numbers<[1], [0], [0], [1], [0, 0, 1, 1], [], []>} : vector<16x64xf32>, vector<64x64xf32>, vector<16x64xf32> -> vector<16x64xf32>
    %c0_56 = arith.constant 0 : index
    %c0_57 = arith.constant 0 : index
    %c0_58 = arith.constant 0 : index
    %127 = vector.load %arg13[%c0_56, %c0_57, %c0_58] : memref<1x1x64xf32, #tpu.memory_space<vmem>>, vector<1x1x64xf32>
    %128 = vector.shape_cast %127 : vector<1x1x64xf32> to vector<1x64xf32>
    %129 = vector.broadcast %128 : vector<1x64xf32> to vector<16x64xf32>
    %130 = arith.addf %126, %129 : vector<16x64xf32>
    %131 = vector.shape_cast %130 : vector<16x64xf32> to vector<2x8x64xf32>
    %c0_59 = arith.constant 0 : index
    %c0_60 = arith.constant 0 : index
    %c0_61 = arith.constant 0 : index
    %132 = vector.load %arg3[%c0_59, %c0_60, %c0_61] : memref<2x128x64xf32, #tpu.memory_space<vmem>>, vector<2x128x64xf32>
    %133 = vector.shape_cast %132 : vector<2x128x64xf32> to vector<256x64xf32>
    %c0_62 = arith.constant 0 : index
    %c0_63 = arith.constant 0 : index
    %c0_64 = arith.constant 0 : index
    %134 = vector.load %arg14[%c0_62, %c0_63, %c0_64] : memref<1x64x128xf32, #tpu.memory_space<vmem>>, vector<1x64x128xf32>
    %135 = vector.shape_cast %134 : vector<1x64x128xf32> to vector<64x128xf32>
    %cst_65 = arith.constant dense<0.000000e+00> : vector<256x128xf32>
    %136 = tpu.matmul %133, %135, %cst_65 {dimension_numbers = #tpu.dot_dimension_numbers<[1], [0], [0], [1], [0, 0, 1, 1], [], []>} : vector<256x64xf32>, vector<64x128xf32>, vector<256x128xf32> -> vector<256x128xf32>
    %c0_66 = arith.constant 0 : index
    %c0_67 = arith.constant 0 : index
    %c0_68 = arith.constant 0 : index
    %137 = vector.load %arg15[%c0_66, %c0_67, %c0_68] : memref<1x1x128xf32, #tpu.memory_space<vmem>>, vector<1x1x128xf32>
    %138 = vector.shape_cast %137 : vector<1x1x128xf32> to vector<1x128xf32>
    %139 = vector.broadcast %138 : vector<1x128xf32> to vector<256x128xf32>
    %140 = arith.addf %136, %139 : vector<256x128xf32>
    %141 = vector.shape_cast %140 : vector<256x128xf32> to vector<2x128x128xf32>
    %142 = vector.extract_strided_slice %131 {offsets = [0, 0, 0], sizes = [2, 8, 16], strides = [1, 1, 1]} : vector<2x8x64xf32> to vector<2x8x16xf32>
    %143 = vector.extract_strided_slice %141 {offsets = [0, 0, 0], sizes = [2, 128, 16], strides = [1, 1, 1]} : vector<2x128x128xf32> to vector<2x128x16xf32>
    %144 = vector.extract_strided_slice %141 {offsets = [0, 0, 64], sizes = [2, 128, 16], strides = [1, 1, 1]} : vector<2x128x128xf32> to vector<2x128x16xf32>
    "tpu.trace_start"() <{level = 10 : i32, message = "bqd,bkd->bqk"}> : () -> ()
    %cst_69 = arith.constant dense<0.000000e+00> : vector<2x8x128xf32>
    %145 = tpu.matmul %142, %143, %cst_69 {dimension_numbers = #tpu.dot_dimension_numbers<[2], [2], [1], [1], [0, 0, 0, 1, 1, 1], [0], [0]>} : vector<2x8x16xf32>, vector<2x128x16xf32>, vector<2x8x128xf32> -> vector<2x8x128xf32>
    "tpu.trace_stop"() : () -> ()
    %cst_70 = arith.constant 2.500000e-01 : f32
    %146 = vector.broadcast %cst_70 : f32 to vector<2x8x128xf32>
    %147 = arith.mulf %145, %146 : vector<2x8x128xf32>
    %148 = arith.addf %147, %6 : vector<2x8x128xf32>
    %cst_71 = arith.constant dense<0xFF800000> : vector<2x8xf32>
    %149 = vector.multi_reduction <maximumf>, %148, %cst_71 [2] : vector<2x8x128xf32> to vector<2x8xf32>
    %150 = vector.shape_cast %149 : vector<2x8xf32> to vector<2x8x1xf32>
    %151 = vector.broadcast %150 : vector<2x8x1xf32> to vector<2x8x128xf32>
    %152 = arith.subf %148, %151 : vector<2x8x128xf32>
    %153 = math.exp %152 : vector<2x8x128xf32>
    %cst_72 = arith.constant dense<0.000000e+00> : vector<2x8xf32>
    %154 = vector.multi_reduction <add>, %153, %cst_72 [2] : vector<2x8x128xf32> to vector<2x8xf32>
    %155 = vector.shape_cast %154 : vector<2x8xf32> to vector<2x8x1xf32>
    %156 = vector.broadcast %155 : vector<2x8x1xf32> to vector<2x8x128xf32>
    %157 = arith.divf %153, %156 : vector<2x8x128xf32>
    %158 = arith.extui %0 : i1 to i32
    %c0_i32_73 = arith.constant 0 : i32
    %159 = arith.cmpi ne, %158, %c0_i32_73 : i32
    scf.if %159 {
      %c0_140 = arith.constant 0 : index
      %c0_141 = arith.constant 0 : index
      %c0_142 = arith.constant 0 : index
      %c0_143 = arith.constant 0 : index
      %307 = vector.load %arg29[%c0_140, %c0_141, %c0_142, %c0_143] : memref<4x2x8x128xf32, #tpu.memory_space<vmem>>, vector<1x2x8x128xf32>
      %308 = vector.shape_cast %307 : vector<1x2x8x128xf32> to vector<2x8x128xf32>
      %309 = vector.shape_cast %157 : vector<2x8x128xf32> to vector<1x2x8x128xf32>
      tpu.vector_store %arg29[%c0_140, %c0_141, %c0_142, %c0_143], %309 {strides = array<i32>} : memref<4x2x8x128xf32, #tpu.memory_space<vmem>>, vector<1x2x8x128xf32>,
    } else {
    }
    "tpu.trace_start"() <{level = 10 : i32, message = "bqk,bkd->bqd"}> : () -> ()
    %cst_74 = arith.constant dense<0.000000e+00> : vector<2x8x16xf32>
    %160 = tpu.matmul %157, %144, %cst_74 {dimension_numbers = #tpu.dot_dimension_numbers<[2], [1], [1], [2], [0, 0, 0, 1, 1, 2], [0], [0]>} : vector<2x8x128xf32>, vector<2x128x16xf32>, vector<2x8x16xf32> -> vector<2x8x16xf32>
    "tpu.trace_stop"() : () -> ()
    %161 = vector.shape_cast %160 : vector<2x8x16xf32> to vector<16x16xf32>
    %162 = vector.extract_strided_slice %131 {offsets = [0, 0, 16], sizes = [2, 8, 16], strides = [1, 1, 1]} : vector<2x8x64xf32> to vector<2x8x16xf32>
    %163 = vector.extract_strided_slice %141 {offsets = [0, 0, 16], sizes = [2, 128, 16], strides = [1, 1, 1]} : vector<2x128x128xf32> to vector<2x128x16xf32>
    %164 = vector.extract_strided_slice %141 {offsets = [0, 0, 80], sizes = [2, 128, 16], strides = [1, 1, 1]} : vector<2x128x128xf32> to vector<2x128x16xf32>
    "tpu.trace_start"() <{level = 10 : i32, message = "bqd,bkd->bqk"}> : () -> ()
    %cst_75 = arith.constant dense<0.000000e+00> : vector<2x8x128xf32>
    %165 = tpu.matmul %162, %163, %cst_75 {dimension_numbers = #tpu.dot_dimension_numbers<[2], [2], [1], [1], [0, 0, 0, 1, 1, 1], [0], [0]>} : vector<2x8x16xf32>, vector<2x128x16xf32>, vector<2x8x128xf32> -> vector<2x8x128xf32>
    "tpu.trace_stop"() : () -> ()
    %cst_76 = arith.constant 2.500000e-01 : f32
    %166 = vector.broadcast %cst_76 : f32 to vector<2x8x128xf32>
    %167 = arith.mulf %165, %166 : vector<2x8x128xf32>
    %168 = arith.addf %167, %6 : vector<2x8x128xf32>
    %cst_77 = arith.constant dense<0xFF800000> : vector<2x8xf32>
    %169 = vector.multi_reduction <maximumf>, %168, %cst_77 [2] : vector<2x8x128xf32> to vector<2x8xf32>
    %170 = vector.shape_cast %169 : vector<2x8xf32> to vector<2x8x1xf32>
    %171 = vector.broadcast %170 : vector<2x8x1xf32> to vector<2x8x128xf32>
    %172 = arith.subf %168, %171 : vector<2x8x128xf32>
    %173 = math.exp %172 : vector<2x8x128xf32>
    %cst_78 = arith.constant dense<0.000000e+00> : vector<2x8xf32>
    %174 = vector.multi_reduction <add>, %173, %cst_78 [2] : vector<2x8x128xf32> to vector<2x8xf32>
    %175 = vector.shape_cast %174 : vector<2x8xf32> to vector<2x8x1xf32>
    %176 = vector.broadcast %175 : vector<2x8x1xf32> to vector<2x8x128xf32>
    %177 = arith.divf %173, %176 : vector<2x8x128xf32>
    %178 = arith.extui %0 : i1 to i32
    %c0_i32_79 = arith.constant 0 : i32
    %179 = arith.cmpi ne, %178, %c0_i32_79 : i32
    scf.if %179 {
      %c1 = arith.constant 1 : index
      %c0_140 = arith.constant 0 : index
      %c0_141 = arith.constant 0 : index
      %c0_142 = arith.constant 0 : index
      %307 = vector.load %arg29[%c1, %c0_140, %c0_141, %c0_142] : memref<4x2x8x128xf32, #tpu.memory_space<vmem>>, vector<1x2x8x128xf32>
      %308 = vector.shape_cast %307 : vector<1x2x8x128xf32> to vector<2x8x128xf32>
      %309 = vector.shape_cast %177 : vector<2x8x128xf32> to vector<1x2x8x128xf32>
      tpu.vector_store %arg29[%c1, %c0_140, %c0_141, %c0_142], %309 {strides = array<i32>} : memref<4x2x8x128xf32, #tpu.memory_space<vmem>>, vector<1x2x8x128xf32>,
    } else {
    }
    "tpu.trace_start"() <{level = 10 : i32, message = "bqk,bkd->bqd"}> : () -> ()
    %cst_80 = arith.constant dense<0.000000e+00> : vector<2x8x16xf32>
    %180 = tpu.matmul %177, %164, %cst_80 {dimension_numbers = #tpu.dot_dimension_numbers<[2], [1], [1], [2], [0, 0, 0, 1, 1, 2], [0], [0]>} : vector<2x8x128xf32>, vector<2x128x16xf32>, vector<2x8x16xf32> -> vector<2x8x16xf32>
    "tpu.trace_stop"() : () -> ()
    %181 = vector.shape_cast %180 : vector<2x8x16xf32> to vector<16x16xf32>
    %182 = vector.extract_strided_slice %131 {offsets = [0, 0, 32], sizes = [2, 8, 16], strides = [1, 1, 1]} : vector<2x8x64xf32> to vector<2x8x16xf32>
    %183 = vector.extract_strided_slice %141 {offsets = [0, 0, 32], sizes = [2, 128, 16], strides = [1, 1, 1]} : vector<2x128x128xf32> to vector<2x128x16xf32>
    %184 = vector.extract_strided_slice %141 {offsets = [0, 0, 96], sizes = [2, 128, 16], strides = [1, 1, 1]} : vector<2x128x128xf32> to vector<2x128x16xf32>
    "tpu.trace_start"() <{level = 10 : i32, message = "bqd,bkd->bqk"}> : () -> ()
    %cst_81 = arith.constant dense<0.000000e+00> : vector<2x8x128xf32>
    %185 = tpu.matmul %182, %183, %cst_81 {dimension_numbers = #tpu.dot_dimension_numbers<[2], [2], [1], [1], [0, 0, 0, 1, 1, 1], [0], [0]>} : vector<2x8x16xf32>, vector<2x128x16xf32>, vector<2x8x128xf32> -> vector<2x8x128xf32>
    "tpu.trace_stop"() : () -> ()
    %cst_82 = arith.constant 2.500000e-01 : f32
    %186 = vector.broadcast %cst_82 : f32 to vector<2x8x128xf32>
    %187 = arith.mulf %185, %186 : vector<2x8x128xf32>
    %188 = arith.addf %187, %6 : vector<2x8x128xf32>
    %cst_83 = arith.constant dense<0xFF800000> : vector<2x8xf32>
    %189 = vector.multi_reduction <maximumf>, %188, %cst_83 [2] : vector<2x8x128xf32> to vector<2x8xf32>
    %190 = vector.shape_cast %189 : vector<2x8xf32> to vector<2x8x1xf32>
    %191 = vector.broadcast %190 : vector<2x8x1xf32> to vector<2x8x128xf32>
    %192 = arith.subf %188, %191 : vector<2x8x128xf32>
    %193 = math.exp %192 : vector<2x8x128xf32>
    %cst_84 = arith.constant dense<0.000000e+00> : vector<2x8xf32>
    %194 = vector.multi_reduction <add>, %193, %cst_84 [2] : vector<2x8x128xf32> to vector<2x8xf32>
    %195 = vector.shape_cast %194 : vector<2x8xf32> to vector<2x8x1xf32>
    %196 = vector.broadcast %195 : vector<2x8x1xf32> to vector<2x8x128xf32>
    %197 = arith.divf %193, %196 : vector<2x8x128xf32>
    %198 = arith.extui %0 : i1 to i32
    %c0_i32_85 = arith.constant 0 : i32
    %199 = arith.cmpi ne, %198, %c0_i32_85 : i32
    scf.if %199 {
      %c2 = arith.constant 2 : index
      %c0_140 = arith.constant 0 : index
      %c0_141 = arith.constant 0 : index
      %c0_142 = arith.constant 0 : index
      %307 = vector.load %arg29[%c2, %c0_140, %c0_141, %c0_142] : memref<4x2x8x128xf32, #tpu.memory_space<vmem>>, vector<1x2x8x128xf32>
      %308 = vector.shape_cast %307 : vector<1x2x8x128xf32> to vector<2x8x128xf32>
      %309 = vector.shape_cast %197 : vector<2x8x128xf32> to vector<1x2x8x128xf32>
      tpu.vector_store %arg29[%c2, %c0_140, %c0_141, %c0_142], %309 {strides = array<i32>} : memref<4x2x8x128xf32, #tpu.memory_space<vmem>>, vector<1x2x8x128xf32>,
    } else {
    }
    "tpu.trace_start"() <{level = 10 : i32, message = "bqk,bkd->bqd"}> : () -> ()
    %cst_86 = arith.constant dense<0.000000e+00> : vector<2x8x16xf32>
    %200 = tpu.matmul %197, %184, %cst_86 {dimension_numbers = #tpu.dot_dimension_numbers<[2], [1], [1], [2], [0, 0, 0, 1, 1, 2], [0], [0]>} : vector<2x8x128xf32>, vector<2x128x16xf32>, vector<2x8x16xf32> -> vector<2x8x16xf32>
    "tpu.trace_stop"() : () -> ()
    %201 = vector.shape_cast %200 : vector<2x8x16xf32> to vector<16x16xf32>
    %202 = vector.extract_strided_slice %131 {offsets = [0, 0, 48], sizes = [2, 8, 16], strides = [1, 1, 1]} : vector<2x8x64xf32> to vector<2x8x16xf32>
    %203 = vector.extract_strided_slice %141 {offsets = [0, 0, 48], sizes = [2, 128, 16], strides = [1, 1, 1]} : vector<2x128x128xf32> to vector<2x128x16xf32>
    %204 = vector.extract_strided_slice %141 {offsets = [0, 0, 112], sizes = [2, 128, 16], strides = [1, 1, 1]} : vector<2x128x128xf32> to vector<2x128x16xf32>
    "tpu.trace_start"() <{level = 10 : i32, message = "bqd,bkd->bqk"}> : () -> ()
    %cst_87 = arith.constant dense<0.000000e+00> : vector<2x8x128xf32>
    %205 = tpu.matmul %202, %203, %cst_87 {dimension_numbers = #tpu.dot_dimension_numbers<[2], [2], [1], [1], [0, 0, 0, 1, 1, 1], [0], [0]>} : vector<2x8x16xf32>, vector<2x128x16xf32>, vector<2x8x128xf32> -> vector<2x8x128xf32>
    "tpu.trace_stop"() : () -> ()
    %cst_88 = arith.constant 2.500000e-01 : f32
    %206 = vector.broadcast %cst_88 : f32 to vector<2x8x128xf32>
    %207 = arith.mulf %205, %206 : vector<2x8x128xf32>
    %208 = arith.addf %207, %6 : vector<2x8x128xf32>
    %cst_89 = arith.constant dense<0xFF800000> : vector<2x8xf32>
    %209 = vector.multi_reduction <maximumf>, %208, %cst_89 [2] : vector<2x8x128xf32> to vector<2x8xf32>
    %210 = vector.shape_cast %209 : vector<2x8xf32> to vector<2x8x1xf32>
    %211 = vector.broadcast %210 : vector<2x8x1xf32> to vector<2x8x128xf32>
    %212 = arith.subf %208, %211 : vector<2x8x128xf32>
    %213 = math.exp %212 : vector<2x8x128xf32>
    %cst_90 = arith.constant dense<0.000000e+00> : vector<2x8xf32>
    %214 = vector.multi_reduction <add>, %213, %cst_90 [2] : vector<2x8x128xf32> to vector<2x8xf32>
    %215 = vector.shape_cast %214 : vector<2x8xf32> to vector<2x8x1xf32>
    %216 = vector.broadcast %215 : vector<2x8x1xf32> to vector<2x8x128xf32>
    %217 = arith.divf %213, %216 : vector<2x8x128xf32>
    %218 = arith.extui %0 : i1 to i32
    %c0_i32_91 = arith.constant 0 : i32
    %219 = arith.cmpi ne, %218, %c0_i32_91 : i32
    scf.if %219 {
      %c3 = arith.constant 3 : index
      %c0_140 = arith.constant 0 : index
      %c0_141 = arith.constant 0 : index
      %c0_142 = arith.constant 0 : index
      %307 = vector.load %arg29[%c3, %c0_140, %c0_141, %c0_142] : memref<4x2x8x128xf32, #tpu.memory_space<vmem>>, vector<1x2x8x128xf32>
      %308 = vector.shape_cast %307 : vector<1x2x8x128xf32> to vector<2x8x128xf32>
      %309 = vector.shape_cast %217 : vector<2x8x128xf32> to vector<1x2x8x128xf32>
      tpu.vector_store %arg29[%c3, %c0_140, %c0_141, %c0_142], %309 {strides = array<i32>} : memref<4x2x8x128xf32, #tpu.memory_space<vmem>>, vector<1x2x8x128xf32>,
    } else {
    }
    "tpu.trace_start"() <{level = 10 : i32, message = "bqk,bkd->bqd"}> : () -> ()
    %cst_92 = arith.constant dense<0.000000e+00> : vector<2x8x16xf32>
    %220 = tpu.matmul %217, %204, %cst_92 {dimension_numbers = #tpu.dot_dimension_numbers<[2], [1], [1], [2], [0, 0, 0, 1, 1, 2], [0], [0]>} : vector<2x8x128xf32>, vector<2x128x16xf32>, vector<2x8x16xf32> -> vector<2x8x16xf32>
    "tpu.trace_stop"() : () -> ()
    %221 = vector.shape_cast %220 : vector<2x8x16xf32> to vector<16x16xf32>
    %222 = tpu.concatenate %161, %181, %201, %221 in 1 : vector<16x16xf32>, vector<16x16xf32>, vector<16x16xf32>, vector<16x16xf32> -> vector<16x64xf32>
    %c0_93 = arith.constant 0 : index
    %c0_94 = arith.constant 0 : index
    %c0_95 = arith.constant 0 : index
    %223 = vector.load %arg16[%c0_93, %c0_94, %c0_95] : memref<1x64x64xf32, #tpu.memory_space<vmem>>, vector<1x64x64xf32>
    %224 = vector.shape_cast %223 : vector<1x64x64xf32> to vector<64x64xf32>
    %cst_96 = arith.constant dense<0.000000e+00> : vector<16x64xf32>
    %225 = tpu.matmul %222, %224, %cst_96 {dimension_numbers = #tpu.dot_dimension_numbers<[1], [0], [0], [1], [0, 0, 1, 1], [], []>} : vector<16x64xf32>, vector<64x64xf32>, vector<16x64xf32> -> vector<16x64xf32>
    %c0_97 = arith.constant 0 : index
    %c0_98 = arith.constant 0 : index
    %c0_99 = arith.constant 0 : index
    %226 = vector.load %arg17[%c0_97, %c0_98, %c0_99] : memref<1x1x64xf32, #tpu.memory_space<vmem>>, vector<1x1x64xf32>
    %227 = vector.shape_cast %226 : vector<1x1x64xf32> to vector<1x64xf32>
    %228 = vector.broadcast %227 : vector<1x64xf32> to vector<16x64xf32>
    %229 = arith.addf %225, %228 : vector<16x64xf32>
    %230 = arith.addf %123, %229 : vector<16x64xf32>
    %c0_100 = arith.constant 0 : index
    %c0_101 = arith.constant 0 : index
    %c0_102 = arith.constant 0 : index
    %231 = vector.load %arg18[%c0_100, %c0_101, %c0_102] : memref<1x1x64xf32, #tpu.memory_space<vmem>>, vector<1x1x64xf32>
    %232 = vector.shape_cast %231 : vector<1x1x64xf32> to vector<1x64xf32>
    %c0_103 = arith.constant 0 : index
    %c0_104 = arith.constant 0 : index
    %c0_105 = arith.constant 0 : index
    %233 = vector.load %arg19[%c0_103, %c0_104, %c0_105] : memref<1x1x64xf32, #tpu.memory_space<vmem>>, vector<1x1x64xf32>
    %234 = vector.shape_cast %233 : vector<1x1x64xf32> to vector<1x64xf32>
    %cst_106 = arith.constant dense<0.000000e+00> : vector<16xf32>
    %235 = vector.multi_reduction <add>, %230, %cst_106 [1] : vector<16x64xf32> to vector<16xf32>
    %236 = vector.shape_cast %235 : vector<16xf32> to vector<16x1xf32>
    %cst_107 = arith.constant 6.400000e+01 : f32
    %237 = vector.broadcast %cst_107 : f32 to vector<16x1xf32>
    %238 = arith.divf %236, %237 : vector<16x1xf32>
    %239 = vector.broadcast %238 : vector<16x1xf32> to vector<16x64xf32>
    %240 = arith.subf %230, %239 : vector<16x64xf32>
    %241 = vector.broadcast %238 : vector<16x1xf32> to vector<16x64xf32>
    %242 = arith.subf %230, %241 : vector<16x64xf32>
    %243 = arith.mulf %240, %242 : vector<16x64xf32>
    %cst_108 = arith.constant dense<0.000000e+00> : vector<16xf32>
    %244 = vector.multi_reduction <add>, %243, %cst_108 [1] : vector<16x64xf32> to vector<16xf32>
    %245 = vector.shape_cast %244 : vector<16xf32> to vector<16x1xf32>
    %cst_109 = arith.constant 6.400000e+01 : f32
    %246 = vector.broadcast %cst_109 : f32 to vector<16x1xf32>
    %247 = arith.divf %245, %246 : vector<16x1xf32>
    %248 = vector.broadcast %238 : vector<16x1xf32> to vector<16x64xf32>
    %249 = arith.subf %230, %248 : vector<16x64xf32>
    %cst_110 = arith.constant 9.99999974E-6 : f32
    %250 = vector.broadcast %cst_110 : f32 to vector<16x1xf32>
    %251 = arith.addf %247, %250 : vector<16x1xf32>
    %252 = math.rsqrt %251 : vector<16x1xf32>
    %253 = vector.broadcast %252 : vector<16x1xf32> to vector<16x64xf32>
    %254 = arith.mulf %249, %253 : vector<16x64xf32>
    %255 = vector.broadcast %232 : vector<1x64xf32> to vector<16x64xf32>
    %256 = arith.mulf %254, %255 : vector<16x64xf32>
    %257 = vector.broadcast %234 : vector<1x64xf32> to vector<16x64xf32>
    %258 = arith.addf %256, %257 : vector<16x64xf32>
    %c0_111 = arith.constant 0 : index
    %c0_112 = arith.constant 0 : index
    %c0_113 = arith.constant 0 : index
    %259 = vector.load %arg20[%c0_111, %c0_112, %c0_113] : memref<1x64x128xf32, #tpu.memory_space<vmem>>, vector<1x64x128xf32>
    %260 = vector.shape_cast %259 : vector<1x64x128xf32> to vector<64x128xf32>
    %cst_114 = arith.constant dense<0.000000e+00> : vector<16x128xf32>
    %261 = tpu.matmul %258, %260, %cst_114 {dimension_numbers = #tpu.dot_dimension_numbers<[1], [0], [0], [1], [0, 0, 1, 1], [], []>} : vector<16x64xf32>, vector<64x128xf32>, vector<16x128xf32> -> vector<16x128xf32>
    %c0_115 = arith.constant 0 : index
    %c0_116 = arith.constant 0 : index
    %c0_117 = arith.constant 0 : index
    %262 = vector.load %arg21[%c0_115, %c0_116, %c0_117] : memref<1x1x128xf32, #tpu.memory_space<vmem>>, vector<1x1x128xf32>
    %263 = vector.shape_cast %262 : vector<1x1x128xf32> to vector<1x128xf32>
    %264 = vector.broadcast %263 : vector<1x128xf32> to vector<16x128xf32>
    %265 = arith.addf %261, %264 : vector<16x128xf32>
    %cst_118 = arith.constant 0.000000e+00 : f32
    %266 = vector.broadcast %cst_118 : f32 to vector<16x128xf32>
    %267 = arith.maximumf %265, %266 : vector<16x128xf32>
    %c0_119 = arith.constant 0 : index
    %c0_120 = arith.constant 0 : index
    %c0_121 = arith.constant 0 : index
    %268 = vector.load %arg22[%c0_119, %c0_120, %c0_121] : memref<1x128x64xf32, #tpu.memory_space<vmem>>, vector<1x128x64xf32>
    %269 = vector.shape_cast %268 : vector<1x128x64xf32> to vector<128x64xf32>
    %cst_122 = arith.constant dense<0.000000e+00> : vector<16x64xf32>
    %270 = tpu.matmul %267, %269, %cst_122 {dimension_numbers = #tpu.dot_dimension_numbers<[1], [0], [0], [1], [0, 0, 1, 1], [], []>} : vector<16x128xf32>, vector<128x64xf32>, vector<16x64xf32> -> vector<16x64xf32>
    %c0_123 = arith.constant 0 : index
    %c0_124 = arith.constant 0 : index
    %c0_125 = arith.constant 0 : index
    %271 = vector.load %arg23[%c0_123, %c0_124, %c0_125] : memref<1x1x64xf32, #tpu.memory_space<vmem>>, vector<1x1x64xf32>
    %272 = vector.shape_cast %271 : vector<1x1x64xf32> to vector<1x64xf32>
    %273 = vector.broadcast %272 : vector<1x64xf32> to vector<16x64xf32>
    %274 = arith.addf %270, %273 : vector<16x64xf32>
    %275 = arith.addf %258, %274 : vector<16x64xf32>
    %c0_126 = arith.constant 0 : index
    %c0_127 = arith.constant 0 : index
    %c0_128 = arith.constant 0 : index
    %276 = vector.load %arg24[%c0_126, %c0_127, %c0_128] : memref<1x1x64xf32, #tpu.memory_space<vmem>>, vector<1x1x64xf32>
    %277 = vector.shape_cast %276 : vector<1x1x64xf32> to vector<1x64xf32>
    %c0_129 = arith.constant 0 : index
    %c0_130 = arith.constant 0 : index
    %c0_131 = arith.constant 0 : index
    %278 = vector.load %arg25[%c0_129, %c0_130, %c0_131] : memref<1x1x64xf32, #tpu.memory_space<vmem>>, vector<1x1x64xf32>
    %279 = vector.shape_cast %278 : vector<1x1x64xf32> to vector<1x64xf32>
    %cst_132 = arith.constant dense<0.000000e+00> : vector<16xf32>
    %280 = vector.multi_reduction <add>, %275, %cst_132 [1] : vector<16x64xf32> to vector<16xf32>
    %281 = vector.shape_cast %280 : vector<16xf32> to vector<16x1xf32>
    %cst_133 = arith.constant 6.400000e+01 : f32
    %282 = vector.broadcast %cst_133 : f32 to vector<16x1xf32>
    %283 = arith.divf %281, %282 : vector<16x1xf32>
    %284 = vector.broadcast %283 : vector<16x1xf32> to vector<16x64xf32>
    %285 = arith.subf %275, %284 : vector<16x64xf32>
    %286 = vector.broadcast %283 : vector<16x1xf32> to vector<16x64xf32>
    %287 = arith.subf %275, %286 : vector<16x64xf32>
    %288 = arith.mulf %285, %287 : vector<16x64xf32>
    %cst_134 = arith.constant dense<0.000000e+00> : vector<16xf32>
    %289 = vector.multi_reduction <add>, %288, %cst_134 [1] : vector<16x64xf32> to vector<16xf32>
    %290 = vector.shape_cast %289 : vector<16xf32> to vector<16x1xf32>
    %cst_135 = arith.constant 6.400000e+01 : f32
    %291 = vector.broadcast %cst_135 : f32 to vector<16x1xf32>
    %292 = arith.divf %290, %291 : vector<16x1xf32>
    %293 = vector.broadcast %283 : vector<16x1xf32> to vector<16x64xf32>
    %294 = arith.subf %275, %293 : vector<16x64xf32>
    %cst_136 = arith.constant 9.99999974E-6 : f32
    %295 = vector.broadcast %cst_136 : f32 to vector<16x1xf32>
    %296 = arith.addf %292, %295 : vector<16x1xf32>
    %297 = math.rsqrt %296 : vector<16x1xf32>
    %298 = vector.broadcast %297 : vector<16x1xf32> to vector<16x64xf32>
    %299 = arith.mulf %294, %298 : vector<16x64xf32>
    %300 = vector.broadcast %277 : vector<1x64xf32> to vector<16x64xf32>
    %301 = arith.mulf %299, %300 : vector<16x64xf32>
    %302 = vector.broadcast %279 : vector<1x64xf32> to vector<16x64xf32>
    %303 = arith.addf %301, %302 : vector<16x64xf32>
    %c0_137 = arith.constant 0 : index
    %c0_138 = arith.constant 0 : index
    %304 = vector.load %arg30[%c0_137, %c0_138] : memref<16x64xf32, #tpu.memory_space<vmem>>, vector<16x64xf32>
    tpu.vector_store %arg30[%c0_137, %c0_138], %303 {strides = array<i32>} : memref<16x64xf32, #tpu.memory_space<vmem>>, vector<16x64xf32>,
    %305 = arith.extui %0 : i1 to i32
    %c0_i32_139 = arith.constant 0 : i32
    %306 = arith.cmpi ne, %305, %c0_i32_139 : i32
    scf.if %306 {
      %c0_140 = arith.constant 0 : index
      %c0_141 = arith.constant 0 : index
      %307 = vector.load %arg26[%c0_140, %c0_141] : memref<64x128xf32, #tpu.memory_space<vmem>>, vector<64x128xf32>
      %cst_142 = arith.constant dense<0.000000e+00> : vector<16x128xf32>
      %308 = tpu.matmul %303, %307, %cst_142 {dimension_numbers = #tpu.dot_dimension_numbers<[1], [0], [0], [1], [0, 0, 1, 1], [], []>} : vector<16x64xf32>, vector<64x128xf32>, vector<16x128xf32> -> vector<16x128xf32>
      %c0_143 = arith.constant 0 : index
      %c0_144 = arith.constant 0 : index
      %309 = vector.load %arg27[%c0_143, %c0_144] : memref<1x128xf32, #tpu.memory_space<vmem>>, vector<1x128xf32>
      %310 = vector.broadcast %309 : vector<1x128xf32> to vector<16x128xf32>
      %311 = arith.addf %308, %310 : vector<16x128xf32>
      %312 = vector.shape_cast %311 : vector<16x128xf32> to vector<2x8x128xf32>
      %c0_145 = arith.constant 0 : index
      %c0_146 = arith.constant 0 : index
      %c0_147 = arith.constant 0 : index
      %313 = vector.load %arg28[%c0_145, %c0_146, %c0_147] : memref<2x8x128xf32, #tpu.memory_space<vmem>>, vector<2x8x128xf32>
      tpu.vector_store %arg28[%c0_145, %c0_146, %c0_147], %312 {strides = array<i32>} : memref<2x8x128xf32, #tpu.memory_space<vmem>>, vector<2x8x128xf32>,
    } else {
    }
    return
  }
  func.func @transform_0(%arg0: i32, %arg1: i32) -> (i32, i32, i32) {
    %c0_i32 = arith.constant 0 : i32
    %c0_i32_0 = arith.constant 0 : i32
    %c0_i32_1 = arith.constant 0 : i32
    return %arg0, %c0_i32, %c0_i32_0 : i32, i32, i32
  }
  func.func @transform_1(%arg0: i32, %arg1: i32) -> (i32, i32, i32) {
    %c0_i32 = arith.constant 0 : i32
    %c0_i32_0 = arith.constant 0 : i32
    %c0_i32_1 = arith.constant 0 : i32
    return %arg0, %c0_i32, %c0_i32_0 : i32, i32, i32
  }
  func.func @transform_2(%arg0: i32, %arg1: i32) -> (i32, i32, i32) {
    %c0_i32 = arith.constant 0 : i32
    %c0_i32_0 = arith.constant 0 : i32
    %c0_i32_1 = arith.constant 0 : i32
    return %arg0, %c0_i32, %c0_i32_0 : i32, i32, i32
  }
  func.func @transform_3(%arg0: i32, %arg1: i32) -> (i32, i32, i32) {
    %c0_i32 = arith.constant 0 : i32
    %c0_i32_0 = arith.constant 0 : i32
    %c0_i32_1 = arith.constant 0 : i32
    return %arg0, %c0_i32, %c0_i32_0 : i32, i32, i32
  }
  func.func @transform_4(%arg0: i32, %arg1: i32) -> (i32, i32, i32) {
    %c0_i32 = arith.constant 0 : i32
    %c0_i32_0 = arith.constant 0 : i32
    %c0_i32_1 = arith.constant 0 : i32
    return %arg1, %c0_i32, %c0_i32_0 : i32, i32, i32
  }
  func.func @transform_5(%arg0: i32, %arg1: i32) -> (i32, i32, i32) {
    %c0_i32 = arith.constant 0 : i32
    %c0_i32_0 = arith.constant 0 : i32
    %c0_i32_1 = arith.constant 0 : i32
    return %arg1, %c0_i32, %c0_i32_0 : i32, i32, i32
  }
  func.func @transform_6(%arg0: i32, %arg1: i32) -> (i32, i32, i32) {
    %c0_i32 = arith.constant 0 : i32
    %c0_i32_0 = arith.constant 0 : i32
    %c0_i32_1 = arith.constant 0 : i32
    return %arg1, %c0_i32, %c0_i32_0 : i32, i32, i32
  }
  func.func @transform_7(%arg0: i32, %arg1: i32) -> (i32, i32, i32) {
    %c0_i32 = arith.constant 0 : i32
    %c0_i32_0 = arith.constant 0 : i32
    %c0_i32_1 = arith.constant 0 : i32
    return %arg1, %c0_i32, %c0_i32_0 : i32, i32, i32
  }
  func.func @transform_8(%arg0: i32, %arg1: i32) -> (i32, i32, i32) {
    %c0_i32 = arith.constant 0 : i32
    %c0_i32_0 = arith.constant 0 : i32
    %c0_i32_1 = arith.constant 0 : i32
    return %arg1, %c0_i32, %c0_i32_0 : i32, i32, i32
  }
  func.func @transform_9(%arg0: i32, %arg1: i32) -> (i32, i32, i32) {
    %c0_i32 = arith.constant 0 : i32
    %c0_i32_0 = arith.constant 0 : i32
    %c0_i32_1 = arith.constant 0 : i32
    return %arg1, %c0_i32, %c0_i32_0 : i32, i32, i32
  }
  func.func @transform_10(%arg0: i32, %arg1: i32) -> (i32, i32, i32) {
    %c0_i32 = arith.constant 0 : i32
    %c0_i32_0 = arith.constant 0 : i32
    %c0_i32_1 = arith.constant 0 : i32
    return %arg1, %c0_i32, %c0_i32_0 : i32, i32, i32
  }
  func.func @transform_11(%arg0: i32, %arg1: i32) -> (i32, i32, i32) {
    %c0_i32 = arith.constant 0 : i32
    %c0_i32_0 = arith.constant 0 : i32
    %c0_i32_1 = arith.constant 0 : i32
    return %arg1, %c0_i32, %c0_i32_0 : i32, i32, i32
  }
  func.func @transform_12(%arg0: i32, %arg1: i32) -> (i32, i32, i32) {
    %c0_i32 = arith.constant 0 : i32
    %c0_i32_0 = arith.constant 0 : i32
    %c0_i32_1 = arith.constant 0 : i32
    return %arg1, %c0_i32, %c0_i32_0 : i32, i32, i32
  }
  func.func @transform_13(%arg0: i32, %arg1: i32) -> (i32, i32, i32) {
    %c0_i32 = arith.constant 0 : i32
    %c0_i32_0 = arith.constant 0 : i32
    %c0_i32_1 = arith.constant 0 : i32
    return %arg1, %c0_i32, %c0_i32_0 : i32, i32, i32
  }
  func.func @transform_14(%arg0: i32, %arg1: i32) -> (i32, i32, i32) {
    %c0_i32 = arith.constant 0 : i32
    %c0_i32_0 = arith.constant 0 : i32
    %c0_i32_1 = arith.constant 0 : i32
    return %arg1, %c0_i32, %c0_i32_0 : i32, i32, i32
  }
  func.func @transform_15(%arg0: i32, %arg1: i32) -> (i32, i32, i32) {
    %c0_i32 = arith.constant 0 : i32
    %c0_i32_0 = arith.constant 0 : i32
    %c0_i32_1 = arith.constant 0 : i32
    return %arg1, %c0_i32, %c0_i32_0 : i32, i32, i32
  }
  func.func @transform_16(%arg0: i32, %arg1: i32) -> (i32, i32, i32) {
    %c0_i32 = arith.constant 0 : i32
    %c0_i32_0 = arith.constant 0 : i32
    %c0_i32_1 = arith.constant 0 : i32
    return %arg1, %c0_i32, %c0_i32_0 : i32, i32, i32
  }
  func.func @transform_17(%arg0: i32, %arg1: i32) -> (i32, i32, i32) {
    %c0_i32 = arith.constant 0 : i32
    %c0_i32_0 = arith.constant 0 : i32
    %c0_i32_1 = arith.constant 0 : i32
    return %arg1, %c0_i32, %c0_i32_0 : i32, i32, i32
  }
  func.func @transform_18(%arg0: i32, %arg1: i32) -> (i32, i32, i32) {
    %c0_i32 = arith.constant 0 : i32
    %c0_i32_0 = arith.constant 0 : i32
    %c0_i32_1 = arith.constant 0 : i32
    return %arg1, %c0_i32, %c0_i32_0 : i32, i32, i32
  }
  func.func @transform_19(%arg0: i32, %arg1: i32) -> (i32, i32, i32) {
    %c0_i32 = arith.constant 0 : i32
    %c0_i32_0 = arith.constant 0 : i32
    %c0_i32_1 = arith.constant 0 : i32
    return %arg1, %c0_i32, %c0_i32_0 : i32, i32, i32
  }
  func.func @transform_20(%arg0: i32, %arg1: i32) -> (i32, i32, i32) {
    %c0_i32 = arith.constant 0 : i32
    %c0_i32_0 = arith.constant 0 : i32
    %c0_i32_1 = arith.constant 0 : i32
    return %arg1, %c0_i32, %c0_i32_0 : i32, i32, i32
  }
  func.func @transform_21(%arg0: i32, %arg1: i32) -> (i32, i32, i32) {
    %c0_i32 = arith.constant 0 : i32
    %c0_i32_0 = arith.constant 0 : i32
    %c0_i32_1 = arith.constant 0 : i32
    return %arg1, %c0_i32, %c0_i32_0 : i32, i32, i32
  }
  func.func @transform_22(%arg0: i32, %arg1: i32) -> (i32, i32, i32) {
    %c0_i32 = arith.constant 0 : i32
    %c0_i32_0 = arith.constant 0 : i32
    %c0_i32_1 = arith.constant 0 : i32
    return %arg1, %c0_i32, %c0_i32_0 : i32, i32, i32
  }
  func.func @transform_23(%arg0: i32, %arg1: i32) -> (i32, i32, i32) {
    %c0_i32 = arith.constant 0 : i32
    %c0_i32_0 = arith.constant 0 : i32
    %c0_i32_1 = arith.constant 0 : i32
    return %arg1, %c0_i32, %c0_i32_0 : i32, i32, i32
  }
  func.func @transform_24(%arg0: i32, %arg1: i32) -> (i32, i32) {
    %c0_i32 = arith.constant 0 : i32
    %c0_i32_0 = arith.constant 0 : i32
    %c0_i32_1 = arith.constant 0 : i32
    return %c0_i32, %c0_i32_0 : i32, i32
  }
  func.func @transform_25(%arg0: i32, %arg1: i32) -> (i32, i32) {
    %c0_i32 = arith.constant 0 : i32
    %c0_i32_0 = arith.constant 0 : i32
    %c0_i32_1 = arith.constant 0 : i32
    return %c0_i32, %c0_i32_0 : i32, i32
  }
  func.func @transform_26(%arg0: i32, %arg1: i32) -> (i32, i32, i32) {
    %c0_i32 = arith.constant 0 : i32
    %c0_i32_0 = arith.constant 0 : i32
    %c0_i32_1 = arith.constant 0 : i32
    return %arg0, %c0_i32, %c0_i32_0 : i32, i32, i32
  }
  func.func @transform_27(%arg0: i32, %arg1: i32) -> (i32, i32, i32, i32) {
    %c0_i32 = arith.constant 0 : i32
    %c0_i32_0 = arith.constant 0 : i32
    %c0_i32_1 = arith.constant 0 : i32
    %c0_i32_2 = arith.constant 0 : i32
    return %c0_i32, %arg0, %c0_i32_0, %c0_i32_1 : i32, i32, i32, i32
  }
}

</mosaic_0001>

<bundles_post_ra>
// kernel: att_decoder_forward.1
= control target key start
LH: loop header
LB: loop body
LE: loop exit
PB: predicated region body
PF: predicated region fallthrough
CT: control target
= control target key end

     0   :  { %s12295_s0 = inlined_call_operand.vmem [shape: f32[2,8,64], index: 0, kind: input, shape index: {}]   ;;  %s12296_s1 = inlined_call_operand.vmem [shape: f32[2,128,64], index: 1, kind: input, shape index: {}]   ;;  %s12297_s2 = inlined_call_operand.vmem [shape: f32[2,8,8], index: 2, kind: input, shape index: {}]   ;;  %s12298_s3 = inlined_call_operand.vmem [shape: f32[2,8,128], index: 3, kind: input, shape index: {}]   ;;  %s12299_s4 = inlined_call_operand.vmem [shape: f32[2,64,192], index: 4, kind: input, shape index: {}]   ;;  %s12300_s5 = inlined_call_operand.hbm [shape: f32[2,1,192], index: 5, kind: input, shape index: {}]   ;;  %s12301_s6 = inlined_call_operand.vmem [shape: f32[2,64,64], index: 6, kind: input, shape index: {}]   ;;  %s12302_s7 = inlined_call_operand.hbm [shape: f32[2,1,64], index: 7, kind: input, shape index: {}]   ;;  %s12303_s8 = inlined_call_operand.hbm [shape: f32[2,1,64], index: 8, kind: input, shape index: {}]   ;;  %s12304_s9 = inlined_call_operand.hbm [shape: f32[2,1,64], index: 9, kind: input, shape index: {}]   ;;  %s12305_s10 = inlined_call_operand.vmem [shape: f32[2,64,64], index: 10, kind: input, shape index: {}]   ;;  %s12306_s11 = inlined_call_operand.hbm [shape: f32[2,1,64], index: 11, kind: input, shape index: {}]   ;;  %s12307_s12 = inlined_call_operand.vmem [shape: f32[2,64,128], index: 12, kind: input, shape index: {}]   ;;  %s12308_s13 = inlined_call_operand.hbm [shape: f32[2,1,128], index: 13, kind: input, shape index: {}]   ;;  %s12309_s14 = inlined_call_operand.vmem [shape: f32[2,64,64], index: 14, kind: input, shape index: {}]   ;;  %s12310_s15 = inlined_call_operand.hbm [shape: f32[2,1,64], index: 15, kind: input, shape index: {}]   ;;  %s12311_s16 = inlined_call_operand.hbm [shape: f32[2,1,64], index: 16, kind: input, shape index: {}]   ;;  %s12312_s17 = inlined_call_operand.hbm [shape: f32[2,1,64], index: 17, kind: input, shape index: {}]   ;;  %s12313_s18 = inlined_call_operand.vmem [shape: f32[2,64,128], index: 18, kind: input, shape index: {}]   ;;  %s12314_s19 = inlined_call_operand.hbm [shape: f32[2,1,128], index: 19, kind: input, shape index: {}]   ;;  %s12315_s20 = inlined_call_operand.vmem [shape: f32[2,128,64], index: 20, kind: input, shape index: {}]   ;;  %s12316_s21 = inlined_call_operand.hbm [shape: f32[2,1,64], index: 21, kind: input, shape index: {}]   ;;  %s12317_s22 = inlined_call_operand.hbm [shape: f32[2,1,64], index: 22, kind: input, shape index: {}]   ;;  %s12318_s23 = inlined_call_operand.hbm [shape: f32[2,1,64], index: 23, kind: input, shape index: {}]   ;;  %s12319_s24 = inlined_call_operand.vmem [shape: f32[64,128], index: 24, kind: input, shape index: {}]   ;;  %s12320_s25 = inlined_call_operand.hbm [shape: f32[1,128], index: 25, kind: input, shape index: {}]   ;;  %s12321_s26 = inlined_call_operand.hbm [shape: f32[2,8,128], index: 26, kind: output, shape index: {0}]   ;;  %s12322_s27 = inlined_call_operand.vmem [shape: f32[4,2,8,128], index: 27, kind: output, shape index: {1}]  }
   0x1   :  { %12352 = sst [smem:[#allocation40_spill]] %s12295_s0 }
   0x2   :  { %12353 = sst [smem:[#allocation41_spill]] %s12296_s1 }
   0x3   :  { %12354 = sst [smem:[#allocation42_spill]] %s12297_s2 }
   0x4   :  { %12355 = sst [smem:[#allocation43_spill]] %s12298_s3 }
   0x5   :  { %12356 = sst [smem:[#allocation44_spill]] %s12299_s4 }
   0x6   :  { %12357 = sst [smem:[#allocation45_spill]] %s12300_s5 }
   0x7   :  { %12358 = sst [smem:[#allocation46_spill]] %s12301_s6 }
   0x8   :  { %12359 = sst [smem:[#allocation47_spill]] %s12302_s7 }
   0x9   :  { %12360 = sst [smem:[#allocation48_spill]] %s12303_s8 }
   0xa   :  { %12361 = sst [smem:[#allocation49_spill]] %s12304_s9 }
   0xb   :  { %12362 = sst [smem:[#allocation50_spill]] %s12305_s10 }
   0xc   :  { %12363 = sst [smem:[#allocation51_spill]] %s12306_s11 }
   0xd   :  { %12364 = sst [smem:[#allocation52_spill]] %s12307_s12 }
   0xe   :  { %12365 = sst [smem:[#allocation53_spill]] %s12308_s13 }
   0xf   :  { %12366 = sst [smem:[#allocation54_spill]] %s12309_s14 }
  0x10   :  { %12367 = sst [smem:[#allocation55_spill]] %s12310_s15 }
  0x11   :  { %12368 = sst [smem:[#allocation56_spill]] %s12311_s16 }
  0x12   :  { %12369 = sst [smem:[#allocation57_spill]] %s12312_s17 }
  0x13   :  { %12370 = sst [smem:[#allocation58_spill]] %s12313_s18 }
  0x14   :  { %12371 = sst [smem:[#allocation59_spill]] %s12314_s19 }
  0x15   :  { %12372 = sst [smem:[#allocation60_spill]] %s12315_s20 }
  0x16   :  { %12373 = sst [smem:[#allocation61_spill]] %s12317_s22 }
  0x17   :  { %12374 = sst [smem:[#allocation62_spill]] %s12319_s24 }
  0x18   :  { %12375 = sst [smem:[#allocation63_spill]] %s12320_s25 }
  0x19   :  { %12376 = sst [smem:[#allocation64_spill]] %s12321_s26 }
  0x1a   :  { %12377 = sst [smem:[#allocation65_spill]] %s12322_s27 }
  0x1b   :  { %33 = vsyncpa [#allocation4], 0 }
  0x1c   :  { %35 = vsyncpa [#allocation4 + $0x1], 0 }
  0x1d   :  { %36 = vsyncpa [#allocation7], 0 }
  0x1e   :  { %38 = vsyncpa [#allocation7 + $0x1], 0 }
  0x1f   :  { %39 = vsyncpa [#allocation10], 0 }
  0x20   :  { %41 = vsyncpa [#allocation10 + $0x1], 0 }
  0x21   :  { %42 = vsyncpa [#allocation13], 0 }
  0x22   :  { %44 = vsyncpa [#allocation13 + $0x1], 0 }
  0x23   :  { %45 = vsyncpa [#allocation16], 0 }
  0x24   :  { %47 = vsyncpa [#allocation16 + $0x1], 0 }
  0x25   :  { %48 = vsyncpa [#allocation19], 0 }
  0x26   :  { %50 = vsyncpa [#allocation19 + $0x1], 0 }
  0x27   :  { %51 = vsyncpa [#allocation22], 0 }
  0x28   :  { %53 = vsyncpa [#allocation22 + $0x1], 0 }
  0x29   :  { %54 = vsyncpa [#allocation25], 0 }
  0x2a   :  { %55 = vsyncpa [#allocation5], 0  ;;  %s10315_s7 = smov 0   ;;  %s10317_s4 = smov 0  }
  0x2b   :  { %s10319_s8 = smov 0   ;;  %s10321_s30 = smov 0  }
  0x2c   :  { %s10323_s9 = smov 0   ;;  %s10325_s5 = smov 0  }
  0x2d LB: > { %12378 = sst [smem:[#allocation36_spill]] %s10134_s8  ;;  %s70_s28 = sadd.s32 1, %s10142_s9  ;;  %s10146_s5 = sphi %s10325_s5, %s61_s5   ;;  %s10142_s9 = sphi %s10323_s9, %s12463_s9   ;;  %s10138_s30 = sphi %s10321_s30, %s12462_s30   ;;  %s10134_s8 = sphi %s10319_s8, %s12461_s8   ;;  %s10130_s4 = sphi %s10317_s4, %s12465_s4   ;;  %s10126_s7 = sphi %s10315_s7, %s12464_s7  }
  0x2e   : > { %12379 = sst [smem:[#allocation37_spill]] %s10142_s9  ;;  %s210_s0 = sadd.s32 1, %s10134_s8 }
  0x2f   : > { %p71_p0 = scmp.ge.s32.totalorder %s70_s28, 2  ;;  %p217_p1 = scmp.ne.s32.totalorder %s10134_s8, %s10130_s4 }
  0x30   : > { %p218_p2 = scmp.eq.s32.totalorder %s10146_s5, 0  ;;  %p8918_p4 = scmp.lt.s32.totalorder %s10146_s5, 2 }
  0x31   : > { %s12467_s28 = smov (%p71_p0, %s70_s28), 0  ;;  %s10356_s29 = sand.u32 1, %s10134_s8  }
  0x32   : > { %12380 = sst [smem:[#allocation38_spill]] %s12467_s28  ;;  %p219_p3 = por %p218_p2, %p217_p1 }
  0x33   : > { %s207_s10 = ssub.s32 %s10142_s9, %s12467_s28  ;;  %s10363_s6 = sand.u32 1, %s10146_s5  }
  0x34   : > { %p208_p5 = scmp.eq.s32.totalorder %s207_s10, 0  ;;  %p10358_p6 = pnand %p8918_p4, %p219_p3 }
  0x35   : > { %s10369_s2 = sshll.u32 %s10142_s9, 4  ;;  %s898_s3 = scalar_lea.vmem [#allocation6], %s10356_s29 }
  0x36   : > { %s12381_s1 = scalar_select %p10358_p6, 1, 0 }
  0x37   : > { %s10366_s11 = scalar_select %p208_p5, %s10134_s8, %s210_s0  }
  0x38   : > { %s905_s26 = sshll.u32 %s898_s3, 4  ;;  %s12383_s27 = sld [smem:[#allocation47_spill]]  ;;  %s10378_s26 = int_to_ptr.vmem [resolvable:$true] %s905_s26 }
  0x39   : > { %12382 = sst [smem:[#allocation39_spill]] %s10366_s11  ;;  %p10385_p8 = pneg %p10358_p6 }
  0x3b   : > { %s12384_s0 = scalar_select %p10385_p8, 1, 0 }
  0x3e   : > { %s10376_s20 = scalar_lea.hbm %s12383_s27, %s10369_s2  ;;  %s9625_s3 = scalar_lea.hbm %s12383_s27, 32 }
  0x3f   : > { %s9620_s18 = scalar_lea.hbm %s10376_s20, 16  ;;  %p9626_p11 = scmp.lt.u32.totalorder %s10376_s20, %s12383_s27 }
  0x40   : > { %p9621_p7 = scmp.ne.s32.totalorder %s10376_s20, %s9620_s18  ;;  %p9627_p12 = scmp.lt.u32.totalorder %s9625_s3, %s9620_s18 }
  0x41   : > { %p9629_p0 = scmp.lt.u32.totalorder %s9620_s18, %s10376_s20 }
  0x42   : > { %p9623_p9 = pnand %p10385_p8, %p9621_p7  ;;  %p9628_p13 = por %p9627_p12, %p9626_p11 }
  0x44   : > { %p9624_p10 = pneg %p9623_p9  ;;  %p9630_p1 = por %p9629_p0, %p9628_p13 }
  0x46   : > { %p9631_p2 = pnand %p9630_p1, %p9624_p10 }
  0x48   : > { %9634 = shalt.err (!%p9631_p2)
}
  0x49   : > { %s9635_s10 = scalar_lea.vmem %s10378_s26, 16  ;;  %s10148_s24 = smov [#allocation6]  }
  0x4a   : > { %p9636_p3 = scmp.ne.s32.totalorder %s10378_s26, %s9635_s10  ;;  %s9640_s28 = sshll.u32 %s10148_s24, 4  ;;  %s9641_s28 = int_to_ptr.vmem [resolvable:$false] %s9640_s28 }
  0x4b   : > { %s9642_s8 = scalar_lea.vmem %s9641_s28, 32  ;;  %p9643_p7 = scmp.lt.s32.totalorder %s10378_s26, %s9641_s28 }
  0x4c   : > { %p9638_p4 = pnand %p9636_p3, %p10385_p8  ;;  %p9644_p9 = scmp.lt.s32.totalorder %s9642_s8, %s9635_s10 }
  0x4e   : > { %p9639_p5 = pneg %p9638_p4  ;;  %p9645_p11 = por %p9644_p9, %p9643_p7 }
  0x50   : > { %p9646_p12 = pnand %p9645_p11, %p9639_p5 }
  0x52   : > { %9649 = shalt.err (!%p9646_p12)
}
  0x53   : > { %s12385_s18 = scalar_lea.sflag [#allocation7], %s10363_s6  ;;  %s12386_s24 = sld [smem:[#allocation49_spill]] }
  0x54   : > { %8883 = dma.hbm_to_vmem [thread:$0]  (!%p10358_p6), %s10376_s20, 16, %s10378_s26, %s12385_s18  }
  0x55   : > { %s932_s10 = scalar_lea.vmem [#allocation9], %s10356_s29 }
  0x56   : > { %s939_s28 = sshll.u32 %s932_s10, 4  ;;  %s940_s28 = int_to_ptr.vmem [resolvable:$true] %s939_s28 }
  0x59   : > { %s10414_s27 = scalar_lea.hbm %s12386_s24, %s10369_s2  ;;  %s9655_s26 = scalar_lea.hbm %s12386_s24, 32 }
  0x5a   : > { %s9650_s14 = scalar_lea.hbm %s10414_s27, 16  ;;  %p9656_p1 = scmp.lt.u32.totalorder %s10414_s27, %s12386_s24 }
  0x5b   : > { %p9651_p10 = scmp.ne.s32.totalorder %s10414_s27, %s9650_s14  ;;  %p9657_p2 = scmp.lt.u32.totalorder %s9655_s26, %s9650_s14 }
  0x5c   : > { %p9659_p4 = scmp.lt.u32.totalorder %s9650_s14, %s10414_s27 }
  0x5d   : > { %p9653_p13 = pnand %p9651_p10, %p10385_p8  ;;  %p9658_p3 = por %p9657_p2, %p9656_p1 }
  0x5f   : > { %p9654_p0 = pneg %p9653_p13  ;;  %p9660_p5 = por %p9659_p4, %p9658_p3 }
  0x61   : > { %p9661_p7 = pnand %p9660_p5, %p9654_p0 }
  0x63   : > { %9664 = shalt.err (!%p9661_p7)
}
  0x64   : > { %s9665_s3 = scalar_lea.vmem %s940_s28, 16  ;;  %s10149_s10 = smov [#allocation9]  }
  0x65   : > { %p9666_p9 = scmp.ne.s32.totalorder %s940_s28, %s9665_s3  ;;  %s9670_s8 = sshll.u32 %s10149_s10, 4  ;;  %s9671_s8 = int_to_ptr.vmem [resolvable:$false] %s9670_s8 }
  0x66   : > { %s9672_s12 = scalar_lea.vmem %s9671_s8, 32  ;;  %p9673_p10 = scmp.lt.s32.totalorder %s940_s28, %s9671_s8 }
  0x67   : > { %p9668_p11 = pnand %p9666_p9, %p10385_p8  ;;  %p9674_p13 = scmp.lt.s32.totalorder %s9672_s12, %s9665_s3 }
  0x69   : > { %p9669_p12 = pneg %p9668_p11  ;;  %p9675_p6 = por %p9674_p13, %p9673_p10 }
  0x6b   : > { %p9676_p1 = pnand %p9675_p6, %p9669_p12 }
  0x6d   : > { %9679 = shalt.err (!%p9676_p1)
}
  0x6e   : > { %p12387_p2 = scmp.ne.s32.totalorder %s12381_s1, 0  ;;  %s12388_s14 = scalar_lea.sflag [#allocation10], %s10363_s6 }
  0x6f   : > { %s12389_s13 = sld [smem:[#allocation53_spill]]  ;;  %s982_s8 = scalar_lea.vmem [#allocation12], %s10356_s29 }
  0x70   : > { %8889 = dma.hbm_to_vmem [thread:$0]  (!%p12387_p2), %s10414_s27, 16, %s940_s28, %s12388_s14  }
  0x71   : > { %s989_s11 = sshll.u32 %s982_s8, 4  ;;  %s990_s11 = int_to_ptr.vmem [resolvable:$true] %s989_s11 }
  0x75   : > { %s10441_s18 = scalar_lea.hbm %s12389_s13, %s10369_s2  ;;  %s9685_s28 = scalar_lea.hbm %s12389_s13, 32 }
  0x76   : > { %s9680_s10 = scalar_lea.hbm %s10441_s18, 16  ;;  %p9686_p4 = scmp.lt.u32.totalorder %s10441_s18, %s12389_s13 }
  0x77   : > { %p9681_p6 = scmp.ne.s32.totalorder %s10441_s18, %s9680_s10  ;;  %p9687_p5 = scmp.lt.u32.totalorder %s9685_s28, %s9680_s10 }
  0x78   : > { %p9689_p9 = scmp.lt.u32.totalorder %s9680_s10, %s10441_s18 }
  0x79   : > { %p9683_p0 = pnand %p9681_p6, %p10385_p8  ;;  %p9688_p7 = por %p9687_p5, %p9686_p4 }
  0x7b   : > { %p9684_p3 = pneg %p9683_p0  ;;  %p9690_p11 = por %p9689_p9, %p9688_p7 }
  0x7d   : > { %p9691_p12 = pnand %p9690_p11, %p9684_p3 }
  0x7f   : > { %9694 = shalt.err (!%p9691_p12)
}
  0x80   : > { %s9695_s26 = scalar_lea.vmem %s990_s11, 16  ;;  %s10150_s8 = smov [#allocation12]  }
  0x81   : > { %p9696_p10 = scmp.ne.s32.totalorder %s990_s11, %s9695_s26  ;;  %s9700_s3 = sshll.u32 %s10150_s8, 4  ;;  %s9701_s3 = int_to_ptr.vmem [resolvable:$false] %s9700_s3 }
  0x82   : > { %s9702_s12 = scalar_lea.vmem %s9701_s3, 32  ;;  %p9703_p6 = scmp.lt.s32.totalorder %s990_s11, %s9701_s3 }
  0x83   : > { %p9698_p13 = pnand %p9696_p10, %p10385_p8  ;;  %p9704_p0 = scmp.lt.s32.totalorder %s9702_s12, %s9695_s26 }
  0x85   : > { %p9699_p1 = pneg %p9698_p13  ;;  %p9705_p2 = por %p9704_p0, %p9703_p6 }
  0x87   : > { %p9706_p4 = pnand %p9705_p2, %p9699_p1 }
  0x89   : > { %9709 = shalt.err (!%p9706_p4)
}
  0x8a   : > { %p12390_p5 = scmp.ne.s32.totalorder %s12381_s1, 0  ;;  %s12391_s10 = scalar_lea.sflag [#allocation13], %s10363_s6 }
  0x8b   : > { %s12392_s16 = sld [smem:[#allocation56_spill]]  ;;  %s1024_s3 = scalar_lea.vmem [#allocation15], %s10356_s29 }
  0x8c   : > { %8895 = dma.hbm_to_vmem [thread:$0]  (!%p12390_p5), %s10441_s18, 16, %s990_s11, %s12391_s10  }
  0x8d   : > { %s1031_s20 = sshll.u32 %s1024_s3, 4  ;;  %s1032_s20 = int_to_ptr.vmem [resolvable:$true] %s1031_s20 }
  0x91   : > { %s10468_s14 = scalar_lea.hbm %s12392_s16, %s10369_s2  ;;  %s9715_s11 = scalar_lea.hbm %s12392_s16, 32 }
  0x92   : > { %s9710_s8 = scalar_lea.hbm %s10468_s14, 16  ;;  %p9716_p9 = scmp.lt.u32.totalorder %s10468_s14, %s12392_s16 }
  0x93   : > { %p9711_p2 = scmp.ne.s32.totalorder %s10468_s14, %s9710_s8  ;;  %p9717_p11 = scmp.lt.u32.totalorder %s9715_s11, %s9710_s8 }
  0x94   : > { %p9719_p10 = scmp.lt.u32.totalorder %s9710_s8, %s10468_s14 }
  0x95   : > { %p9713_p3 = pnand %p9711_p2, %p10385_p8  ;;  %p9718_p12 = por %p9717_p11, %p9716_p9 }
  0x97   : > { %p9714_p7 = pneg %p9713_p3  ;;  %p9720_p13 = por %p9719_p10, %p9718_p12 }
  0x99   : > { %p9721_p1 = pnand %p9720_p13, %p9714_p7 }
  0x9b   : > { %9724 = shalt.err (!%p9721_p1)
}
  0x9c   : > { %s9725_s28 = scalar_lea.vmem %s1032_s20, 16  ;;  %s10151_s3 = smov [#allocation15]  }
  0x9d   : > { %p9726_p6 = scmp.ne.s32.totalorder %s1032_s20, %s9725_s28  ;;  %s9730_s26 = sshll.u32 %s10151_s3, 4  ;;  %s9731_s26 = int_to_ptr.vmem [resolvable:$false] %s9730_s26 }
  0x9e   : > { %s9732_s12 = scalar_lea.vmem %s9731_s26, 32  ;;  %p9733_p2 = scmp.lt.s32.totalorder %s1032_s20, %s9731_s26 }
  0x9f   : > { %p9728_p0 = pnand %p9726_p6, %p10385_p8  ;;  %p9734_p3 = scmp.lt.s32.totalorder %s9732_s12, %s9725_s28 }
  0xa1   : > { %p9729_p4 = pneg %p9728_p0  ;;  %p9735_p5 = por %p9734_p3, %p9733_p2 }
  0xa3   : > { %p9736_p9 = pnand %p9735_p5, %p9729_p4 }
  0xa5   : > { %9739 = shalt.err (!%p9736_p9)
}
  0xa6   : > { %p12393_p11 = scmp.ne.s32.totalorder %s12381_s1, 0  ;;  %s12394_s8 = scalar_lea.sflag [#allocation16], %s10363_s6 }
  0xa7   : > { %s12395_s19 = sld [smem:[#allocation59_spill]]  ;;  %s1066_s26 = scalar_lea.vmem [#allocation18], %s10356_s29 }
  0xa8   : > { %8901 = dma.hbm_to_vmem [thread:$0]  (!%p12393_p11), %s10468_s14, 16, %s1032_s20, %s12394_s8  }
  0xa9   : > { %s1073_s27 = sshll.u32 %s1066_s26, 4  ;;  %s1074_s27 = int_to_ptr.vmem [resolvable:$true] %s1073_s27 }
  0xad   : > { %s10495_s10 = scalar_lea.hbm %s12395_s19, %s10369_s2  ;;  %s9745_s20 = scalar_lea.hbm %s12395_s19, 32 }
  0xae   : > { %s9740_s3 = scalar_lea.hbm %s10495_s10, 16  ;;  %p9746_p10 = scmp.lt.u32.totalorder %s10495_s10, %s12395_s19 }
  0xaf   : > { %p9741_p5 = scmp.ne.s32.totalorder %s10495_s10, %s9740_s3  ;;  %p9747_p13 = scmp.lt.u32.totalorder %s9745_s20, %s9740_s3 }
  0xb0   : > { %p9749_p6 = scmp.lt.u32.totalorder %s9740_s3, %s10495_s10 }
  0xb1   : > { %p9743_p7 = pnand %p9741_p5, %p10385_p8  ;;  %p9748_p1 = por %p9747_p13, %p9746_p10 }
  0xb3   : > { %p9744_p12 = pneg %p9743_p7  ;;  %p9750_p0 = por %p9749_p6, %p9748_p1 }
  0xb5   : > { %p9751_p4 = pnand %p9750_p0, %p9744_p12 }
  0xb7   : > { %9754 = shalt.err (!%p9751_p4)
}
  0xb8   : > { %s9755_s11 = scalar_lea.vmem %s1074_s27, 16  ;;  %s10152_s26 = smov [#allocation18]  }
  0xb9   : > { %p9756_p2 = scmp.ne.s32.totalorder %s1074_s27, %s9755_s11  ;;  %s9760_s28 = sshll.u32 %s10152_s26, 4  ;;  %s9761_s28 = int_to_ptr.vmem [resolvable:$false] %s9760_s28 }
  0xba   : > { %s9762_s12 = scalar_lea.vmem %s9761_s28, 32  ;;  %p9763_p5 = scmp.lt.s32.totalorder %s1074_s27, %s9761_s28 }
  0xbb   : > { %p9758_p3 = pnand %p9756_p2, %p10385_p8  ;;  %p9764_p7 = scmp.lt.s32.totalorder %s9762_s12, %s9755_s11 }
  0xbd   : > { %p9759_p9 = pneg %p9758_p3  ;;  %p9765_p11 = por %p9764_p7, %p9763_p5 }
  0xbf   : > { %p9766_p10 = pnand %p9765_p11, %p9759_p9 }
  0xc1   : > { %9769 = shalt.err (!%p9766_p10)
}
  0xc2   : > { %p12396_p13 = scmp.ne.s32.totalorder %s12381_s1, 0  ;;  %s12397_s3 = scalar_lea.sflag [#allocation19], %s10363_s6 }
  0xc3   : > { %s12398_s22 = sld [smem:[#allocation61_spill]]  ;;  %s1108_s28 = scalar_lea.vmem [#allocation21], %s10356_s29 }
  0xc4   : > { %8907 = dma.hbm_to_vmem [thread:$0]  (!%p12396_p13), %s10495_s10, 16, %s1074_s27, %s12397_s3  }
  0xc5   : > { %s1115_s18 = sshll.u32 %s1108_s28, 4  ;;  %s1116_s18 = int_to_ptr.vmem [resolvable:$true] %s1115_s18 }
  0xc9   : > { %s10522_s8 = scalar_lea.hbm %s12398_s22, %s10369_s2  ;;  %s9775_s27 = scalar_lea.hbm %s12398_s22, 32 }
  0xca   : > { %s9770_s26 = scalar_lea.hbm %s10522_s8, 16  ;;  %p9776_p6 = scmp.lt.u32.totalorder %s10522_s8, %s12398_s22 }
  0xcb   : > { %p9771_p11 = scmp.ne.s32.totalorder %s10522_s8, %s9770_s26  ;;  %p9777_p0 = scmp.lt.u32.totalorder %s9775_s27, %s9770_s26 }
  0xcc   : > { %p9779_p2 = scmp.lt.u32.totalorder %s9770_s26, %s10522_s8 }
  0xcd   : > { %p9773_p12 = pnand %p9771_p11, %p10385_p8  ;;  %p9778_p4 = por %p9777_p0, %p9776_p6 }
  0xcf   : > { %p9774_p1 = pneg %p9773_p12  ;;  %p9780_p3 = por %p9779_p2, %p9778_p4 }
  0xd1   : > { %p9781_p9 = pnand %p9780_p3, %p9774_p1 }
  0xd3   : > { %9784 = shalt.err (!%p9781_p9)
}
  0xd4   : > { %s9785_s20 = scalar_lea.vmem %s1116_s18, 16  ;;  %s10153_s28 = smov [#allocation21]  }
  0xd5   : > { %p9786_p5 = scmp.ne.s32.totalorder %s1116_s18, %s9785_s20  ;;  %s9790_s11 = sshll.u32 %s10153_s28, 4  ;;  %s9791_s11 = int_to_ptr.vmem [resolvable:$false] %s9790_s11 }
  0xd6   : > { %s9792_s12 = scalar_lea.vmem %s9791_s11, 32  ;;  %p9793_p11 = scmp.lt.s32.totalorder %s1116_s18, %s9791_s11 }
  0xd7   : > { %p9788_p7 = pnand %p9786_p5, %p10385_p8  ;;  %p9794_p12 = scmp.lt.s32.totalorder %s9792_s12, %s9785_s20 }
  0xd9   : > { %p9789_p10 = pneg %p9788_p7  ;;  %p9795_p13 = por %p9794_p12, %p9793_p11 }
  0xdb   : > { %p9796_p0 = pnand %p9795_p13, %p9789_p10 }
  0xdd   : > { %9799 = shalt.err (!%p9796_p0)
}
  0xde   : > { %p12399_p6 = scmp.ne.s32.totalorder %s12381_s1, 0  ;;  %s12400_s26 = scalar_lea.sflag [#allocation22], %s10363_s6 }
  0xdf   : > { %s10546_s10 = sadd.s32 4294967295, %s10146_s5   ;;  %p223_p13 = scmp.ne.s32.totalorder %s10130_s4, %s10126_s7 }
  0xe0   : > { %8913 = dma.hbm_to_vmem [thread:$0]  (!%p12399_p6), %s10522_s8, 16, %s1116_s18, %s12400_s26  }
  0xe1   : > { %p12345_p1 = scmp.eq.s32.totalorder %s10546_s10, 0  ;;  %p6711_p4 = scmp.ge.s32.totalorder %s10146_s5, 1 }
  0xe2   : > { %p796_p2 = scmp.lt.s32.totalorder %s10146_s5, 3  ;;  %s10154_s8 = smov [#allocation24]  }
  0xe3   : > { %p10555_p3 = por %p12345_p1, %p223_p13  ;;  %s849_s18 = sshll.u32 %s10154_s8, 4  ;;  %s850_s18 = int_to_ptr.vmem [resolvable:$true] %s849_s18 }
  0xe4   : > { %p10559_p9 = pnand %p6711_p4, %p796_p2  ;;  %s6718_s3 = sshll.u32 %s10356_s29, 1 }
  0xe5   : > { %s12401_s11 = scalar_select %p10555_p3, 1, 0 }
  0xe6   : > { %s12402_s27 = scalar_select %p10559_p9, 1, 0 }
  0xe7   : > { %p8873_p5 = pneg %p10559_p9  ;;  %s6985_s7 = sshll.u32 %s10142_s9, 5 }
  0xe8   : > { %s12404_s12 = sld [smem:[#allocation45_spill]]  ;;  %s872_s13 = scalar_lea.vmem [#allocation3], %s6718_s3 }
  0xe9   : > { %p10569_p7 = pnand %p8873_p5, %p12345_p1  ;;  %s880_s16 = sshll.u32 %s872_s13, 4  ;;  %s10578_s16 = int_to_ptr.vmem [resolvable:$true] %s880_s16 }
  0xea   : > { %s12405_s25 = sld [smem:[#allocation63_spill]] }
  0xeb   : > { %p9802_p11 = pneg %p10569_p7 }
  0xee   : > { %s10576_s26 = scalar_lea.hbm %s12404_s12, %s6985_s7 }
  0xf0   : > { %s9800_s22 = scalar_lea.hbm %s12405_s25, 16 }
  0xf1   : > { %p9801_p10 = scmp.ne.s32.totalorder %s12405_s25, %s9800_s22  ;;  %p9807_p13 = scmp.lt.u32.totalorder %s9800_s22, %s12405_s25 }
  0xf3   : > { %p9803_p12 = pnand %p9802_p11, %p9801_p10 }
  0xf5   : > { %p9804_p0 = pneg %p9803_p12 }
  0xf7   : > { %p9809_p4 = pnand %p9807_p13, %p9804_p0 }
  0xf9   : > { %9812 = shalt.err (!%p9809_p4)
}
  0xfa   : > { %s9813_s13 = scalar_lea.vmem %s850_s18, 16  ;;  %s9820_s19 = scalar_lea.vmem %s850_s18, 32 }
  0xfb   : > { %p9814_p2 = scmp.ne.s32.totalorder %s850_s18, %s9813_s13  ;;  %p9821_p3 = scmp.lt.s32.totalorder %s850_s18, %s850_s18 }
  0xfc   : > { %p9822_p9 = scmp.lt.s32.totalorder %s9820_s19, %s9813_s13 }
  0xfd   : > { %p9816_p5 = pnand %p9814_p2, %p9802_p11 }
  0xfe   : > { %p9823_p6 = por %p9822_p9, %p9821_p3 }
  0xff   : > { %p9817_p1 = pneg %p9816_p5 }
 0x101   : > { %p9824_p8 = pnand %p9823_p6, %p9817_p1 }
 0x103   : > { %9827 = shalt.err (!%p9824_p8)
}
 0x104   : > { %8876 = dma.hbm_to_vmem [thread:$0]  (!%p10569_p7), %s12405_s25, 16, %s850_s18, [#allocation25]  }
 0x105   : > { %s869_s22 = scalar_lea.sflag [#allocation4], %s10356_s29  ;;  %s9828_s3 = scalar_lea.hbm %s10576_s26, 32 }
 0x106   : > { %p9829_p10 = scmp.ne.s32.totalorder %s10576_s26, %s9828_s3  ;;  %p12406_p11 = scmp.ne.s32.totalorder %s12384_s0, 0 }
 0x107   : > { %s9833_s14 = scalar_lea.hbm %s12404_s12, 64  ;;  %p9834_p8 = scmp.lt.u32.totalorder %s10576_s26, %s12404_s12 }
 0x108   : > { %p9831_p12 = pnand %p9829_p10, %p12406_p11  ;;  %p9835_p6 = scmp.lt.u32.totalorder %s9833_s14, %s9828_s3 }
 0x109   : > { %p9837_p9 = scmp.lt.u32.totalorder %s9828_s3, %s10576_s26 }
 0x10a   : > { %p9832_p3 = pneg %p9831_p12  ;;  %p9836_p1 = por %p9835_p6, %p9834_p8 }
 0x10c   : > { %p9838_p0 = por %p9837_p9, %p9836_p1 }
 0x10e   : > { %p9839_p13 = pnand %p9838_p0, %p9832_p3 }
 0x110   : > { %9842 = shalt.err (!%p9839_p13)
}
 0x111   : > { %s9843_s18 = scalar_lea.vmem %s10578_s16, 32  ;;  %s10155_s13 = smov [#allocation3]  }
 0x112   : > { %p9844_p7 = scmp.ne.s32.totalorder %s10578_s16, %s9843_s18  ;;  %s9848_s19 = sshll.u32 %s10155_s13, 4  ;;  %s9849_s19 = int_to_ptr.vmem [resolvable:$false] %s9848_s19 }
 0x113   : > { %s9850_s9 = scalar_lea.vmem %s9849_s19, 64  ;;  %p9851_p5 = scmp.lt.s32.totalorder %s10578_s16, %s9849_s19 }
 0x114   : > { %p9846_p4 = pnand %p9844_p7, %p12406_p11  ;;  %p9852_p10 = scmp.lt.s32.totalorder %s9850_s9, %s9843_s18 }
 0x116   : > { %p9847_p2 = pneg %p9846_p4  ;;  %p9853_p12 = por %p9852_p10, %p9851_p5 }
 0x118   : > { %p9854_p8 = pnand %p9853_p12, %p9847_p2 }
 0x11a   : > { %9857 = shalt.err (!%p9854_p8)
}
 0x11b   : > { %p12407_p3 = scmp.ne.s32.totalorder %s12381_s1, 0  ;;  %s12408_s7 = sld [smem:[#allocation48_spill]] }
 0x11c   : > { %s915_s20 = scalar_lea.vmem [#allocation8], %s10356_s29  ;;  %s12410_s19 = sld [smem:[#allocation51_spill]] }
 0x11d   : > { %8880 = dma.hbm_to_vmem [thread:$0]  (!%p12407_p3), %s10576_s26, 32, %s10578_s16, %s869_s22  }
 0x11e   : > { %s922_s28 = sshll.u32 %s915_s20, 4  ;;  %s923_s28 = int_to_ptr.vmem [resolvable:$true] %s922_s28 }
 0x121   : > { %s12409_s14 = smov %s12408_s7  ;;  %s10622_s8 = scalar_lea.hbm %s12408_s7, %s10369_s2 }
 0x122   : > { %s10629_s9 = scalar_lea.hbm %s12410_s19, %s10369_s2  ;;  %s9858_s12 = scalar_lea.hbm %s10622_s8, 16 }
 0x123   : > { %p9859_p6 = scmp.ne.s32.totalorder %s10622_s8, %s9858_s12  ;;  %s9863_s22 = scalar_lea.hbm %s12409_s14, 32 }
 0x124   : > { %p9864_p0 = scmp.lt.u32.totalorder %s10622_s8, %s12409_s14  ;;  %p9865_p13 = scmp.lt.u32.totalorder %s9863_s22, %s9858_s12 }
 0x125   : > { %p9861_p1 = pnand %p9859_p6, %p12406_p11  ;;  %p9867_p4 = scmp.lt.u32.totalorder %s9858_s12, %s10622_s8 }
 0x126   : > { %p9866_p7 = por %p9865_p13, %p9864_p0 }
 0x127   : > { %p9862_p9 = pneg %p9861_p1 }
 0x128   : > { %p9868_p2 = por %p9867_p4, %p9866_p7 }
 0x12a   : > { %p9869_p5 = pnand %p9868_p2, %p9862_p9 }
 0x12c   : > { %9872 = shalt.err (!%p9869_p5)
}
 0x12d   : > { %s9873_s7 = scalar_lea.vmem %s923_s28, 16  ;;  %s10156_s20 = smov [#allocation8]  }
 0x12e   : > { %p9874_p10 = scmp.ne.s32.totalorder %s923_s28, %s9873_s7  ;;  %s9878_s18 = sshll.u32 %s10156_s20, 4  ;;  %s9879_s18 = int_to_ptr.vmem [resolvable:$false] %s9878_s18 }
 0x12f   : > { %s9880_s13 = scalar_lea.vmem %s9879_s18, 32  ;;  %p9881_p6 = scmp.lt.s32.totalorder %s923_s28, %s9879_s18 }
 0x130   : > { %p9876_p12 = pnand %p9874_p10, %p12406_p11  ;;  %p9882_p1 = scmp.lt.s32.totalorder %s9880_s13, %s9873_s7 }
 0x132   : > { %p9877_p8 = pneg %p9876_p12  ;;  %p9883_p3 = por %p9882_p1, %p9881_p6 }
 0x134   : > { %p9884_p0 = pnand %p9883_p3, %p9877_p8 }
 0x136   : > { %9887 = shalt.err (!%p9884_p0)
}
 0x137   : > { %p12411_p13 = scmp.ne.s32.totalorder %s12381_s1, 0  ;;  %s12412_s12 = scalar_lea.sflag [#allocation7], %s10363_s6 }
 0x138   : > { %s957_s16 = scalar_lea.vmem [#allocation11], %s10356_s29  ;;  %s12413_s15 = sld [smem:[#allocation55_spill]] }
 0x139   : > { %8886 = dma.hbm_to_vmem [thread:$0]  (!%p12411_p13), %s10622_s8, 16, %s923_s28, %s12412_s12  }
 0x13a   : > { %s964_s26 = sshll.u32 %s957_s16, 4  ;;  %s9888_s7 = scalar_lea.hbm %s10629_s9, 16  ;;  %s965_s26 = int_to_ptr.vmem [resolvable:$true] %s964_s26 }
 0x13b   : > { %p9889_p3 = scmp.ne.s32.totalorder %s10629_s9, %s9888_s7  ;;  %s9893_s13 = scalar_lea.hbm %s12410_s19, 32 }
 0x13c   : > { %p9894_p4 = scmp.lt.u32.totalorder %s10629_s9, %s12410_s19  ;;  %p9895_p2 = scmp.lt.u32.totalorder %s9893_s13, %s9888_s7 }
 0x13d   : > { %p9891_p9 = pnand %p9889_p3, %p12406_p11  ;;  %p9897_p10 = scmp.lt.u32.totalorder %s9888_s7, %s10629_s9 }
 0x13e   : > { %s10655_s3 = scalar_lea.hbm %s12413_s15, %s10369_s2  ;;  %p9896_p5 = por %p9895_p2, %p9894_p4 }
 0x13f   : > { %p9892_p7 = pneg %p9891_p9 }
 0x140   : > { %p9898_p12 = por %p9897_p10, %p9896_p5 }
 0x142   : > { %p9899_p8 = pnand %p9898_p12, %p9892_p7 }
 0x144   : > { %9902 = shalt.err (!%p9899_p8)
}
 0x145   : > { %s9903_s8 = scalar_lea.vmem %s965_s26, 16  ;;  %s10157_s28 = smov [#allocation11]  }
 0x146   : > { %p9904_p6 = scmp.ne.s32.totalorder %s965_s26, %s9903_s8  ;;  %s9908_s12 = sshll.u32 %s10157_s28, 4  ;;  %s9909_s12 = int_to_ptr.vmem [resolvable:$false] %s9908_s12 }
 0x147   : > { %s9910_s16 = scalar_lea.vmem %s9909_s12, 32  ;;  %p9911_p3 = scmp.lt.s32.totalorder %s965_s26, %s9909_s12 }
 0x148   : > { %p9906_p1 = pnand %p9904_p6, %p12406_p11  ;;  %p9912_p9 = scmp.lt.s32.totalorder %s9910_s16, %s9903_s8 }
 0x14a   : > { %p9907_p0 = pneg %p9906_p1  ;;  %p9913_p13 = por %p9912_p9, %p9911_p3 }
 0x14c   : > { %p9914_p2 = pnand %p9913_p13, %p9907_p0 }
 0x14e   : > { %9917 = shalt.err (!%p9914_p2)
}
 0x14f   : > { %p12414_p4 = scmp.ne.s32.totalorder %s12381_s1, 0  ;;  %s12415_s25 = scalar_lea.sflag [#allocation10], %s10363_s6 }
 0x150   : > { %s1007_s14 = scalar_lea.vmem [#allocation14], %s10356_s29  ;;  %s12416_s17 = sld [smem:[#allocation57_spill]] }
 0x151   : > { %8892 = dma.hbm_to_vmem [thread:$0]  (!%p12414_p4), %s10629_s9, 16, %s965_s26, %s12415_s25  }
 0x152   : > { %s1014_s22 = sshll.u32 %s1007_s14, 4  ;;  %s9918_s18 = scalar_lea.hbm %s10655_s3, 16  ;;  %s1015_s22 = int_to_ptr.vmem [resolvable:$true] %s1014_s22 }
 0x153   : > { %p9919_p13 = scmp.ne.s32.totalorder %s10655_s3, %s9918_s18  ;;  %s9923_s28 = scalar_lea.hbm %s12413_s15, 32 }
 0x154   : > { %p9924_p10 = scmp.lt.u32.totalorder %s10655_s3, %s12413_s15  ;;  %p9925_p12 = scmp.lt.u32.totalorder %s9923_s28, %s9918_s18 }
 0x155   : > { %p9921_p7 = pnand %p9919_p13, %p12406_p11  ;;  %p9927_p6 = scmp.lt.u32.totalorder %s9918_s18, %s10655_s3 }
 0x156   : > { %s10681_s20 = scalar_lea.hbm %s12416_s17, %s10369_s2  ;;  %p9926_p8 = por %p9925_p12, %p9924_p10 }
 0x157   : > { %p9922_p5 = pneg %p9921_p7 }
 0x158   : > { %p9928_p1 = por %p9927_p6, %p9926_p8 }
 0x15a   : > { %p9929_p0 = pnand %p9928_p1, %p9922_p5 }
 0x15c   : > { %9932 = shalt.err (!%p9929_p0)
}
 0x15d   : > { %s9933_s9 = scalar_lea.vmem %s1015_s22, 16  ;;  %s10158_s26 = smov [#allocation14]  }
 0x15e   : > { %p9934_p3 = scmp.ne.s32.totalorder %s1015_s22, %s9933_s9  ;;  %s9938_s25 = sshll.u32 %s10158_s26, 4  ;;  %s9939_s25 = int_to_ptr.vmem [resolvable:$false] %s9938_s25 }
 0x15f   : > { %s9940_s14 = scalar_lea.vmem %s9939_s25, 32  ;;  %p9941_p13 = scmp.lt.s32.totalorder %s1015_s22, %s9939_s25 }
 0x160   : > { %p9936_p9 = pnand %p9934_p3, %p12406_p11  ;;  %p9942_p7 = scmp.lt.s32.totalorder %s9940_s14, %s9933_s9 }
 0x162   : > { %p9937_p2 = pneg %p9936_p9  ;;  %p9943_p4 = por %p9942_p7, %p9941_p13 }
 0x164   : > { %p9944_p10 = pnand %p9943_p4, %p9937_p2 }
 0x166   : > { %9947 = shalt.err (!%p9944_p10)
}
 0x167   : > { %p12417_p12 = scmp.ne.s32.totalorder %s12381_s1, 0  ;;  %s12418_s24 = scalar_lea.sflag [#allocation13], %s10363_s6 }
 0x168   : > { %s1041_s7 = scalar_lea.vmem [#allocation17], %s10356_s29  ;;  %s10707_s28 = scalar_lea.hbm %s12316_s21, %s10369_s2 }
 0x169   : > { %8898 = dma.hbm_to_vmem [thread:$0]  (!%p12417_p12), %s10655_s3, 16, %s1015_s22, %s12418_s24  }
 0x16a   : > { %s1048_s18 = sshll.u32 %s1041_s7, 4  ;;  %s9948_s12 = scalar_lea.hbm %s10681_s20, 16  ;;  %s1049_s18 = int_to_ptr.vmem [resolvable:$true] %s1048_s18 }
 0x16b   : > { %p9949_p4 = scmp.ne.s32.totalorder %s10681_s20, %s9948_s12  ;;  %s9953_s26 = scalar_lea.hbm %s12416_s17, 32 }
 0x16c   : > { %p9954_p6 = scmp.lt.u32.totalorder %s10681_s20, %s12416_s17  ;;  %p9955_p1 = scmp.lt.u32.totalorder %s9953_s26, %s9948_s12 }
 0x16d   : > { %p9951_p5 = pnand %p9949_p4, %p12406_p11  ;;  %p9957_p3 = scmp.lt.u32.totalorder %s9948_s12, %s10681_s20 }
 0x16e   : > { %p9956_p0 = por %p9955_p1, %p9954_p6 }
 0x16f   : > { %p9952_p8 = pneg %p9951_p5 }
 0x170   : > { %p9958_p9 = por %p9957_p3, %p9956_p0 }
 0x172   : > { %p9959_p2 = pnand %p9958_p9, %p9952_p8 }
 0x174   : > { %9962 = shalt.err (!%p9959_p2)
}
 0x175   : > { %s9963_s3 = scalar_lea.vmem %s1049_s18, 16  ;;  %s10159_s22 = smov [#allocation17]  }
 0x176   : > { %p9964_p13 = scmp.ne.s32.totalorder %s1049_s18, %s9963_s3  ;;  %s9968_s24 = sshll.u32 %s10159_s22, 4  ;;  %s9969_s24 = int_to_ptr.vmem [resolvable:$false] %s9968_s24 }
 0x177   : > { %s9970_s7 = scalar_lea.vmem %s9969_s24, 32  ;;  %p9971_p4 = scmp.lt.s32.totalorder %s1049_s18, %s9969_s24 }
 0x178   : > { %p9966_p7 = pnand %p9964_p13, %p12406_p11  ;;  %p9972_p5 = scmp.lt.s32.totalorder %s9970_s7, %s9963_s3 }
 0x17a   : > { %p9967_p10 = pneg %p9966_p7  ;;  %p9973_p12 = por %p9972_p5, %p9971_p4 }
 0x17c   : > { %p9974_p1 = pnand %p9973_p12, %p9967_p10 }
 0x17e   : > { %9977 = shalt.err (!%p9974_p1)
}
 0x17f   : > { %p12419_p6 = scmp.ne.s32.totalorder %s12381_s1, 0  ;;  %s12420_s13 = scalar_lea.sflag [#allocation16], %s10363_s6 }
 0x180   : > { %s1091_s8 = scalar_lea.vmem [#allocation20], %s10356_s29  ;;  %s10733_s26 = scalar_lea.hbm %s12318_s23, %s10369_s2 }
 0x181   : > { %8904 = dma.hbm_to_vmem [thread:$0]  (!%p12419_p6), %s10681_s20, 16, %s1049_s18, %s12420_s13  }
 0x182   : > { %s1098_s12 = sshll.u32 %s1091_s8, 4  ;;  %s9978_s25 = scalar_lea.hbm %s10707_s28, 16  ;;  %s1099_s12 = int_to_ptr.vmem [resolvable:$true] %s1098_s12 }
 0x183   : > { %p9979_p12 = scmp.ne.s32.totalorder %s10707_s28, %s9978_s25  ;;  %s9983_s22 = scalar_lea.hbm %s12316_s21, 32 }
 0x184   : > { %p9984_p3 = scmp.lt.u32.totalorder %s10707_s28, %s12316_s21  ;;  %p9985_p9 = scmp.lt.u32.totalorder %s9983_s22, %s9978_s25 }
 0x185   : > { %p9981_p8 = pnand %p9979_p12, %p12406_p11  ;;  %p9987_p13 = scmp.lt.u32.totalorder %s9978_s25, %s10707_s28 }
 0x186   : > { %p9986_p2 = por %p9985_p9, %p9984_p3 }
 0x187   : > { %p9982_p0 = pneg %p9981_p8 }
 0x188   : > { %p9988_p7 = por %p9987_p13, %p9986_p2 }
 0x18a   : > { %p9989_p10 = pnand %p9988_p7, %p9982_p0 }
 0x18c   : > { %9992 = shalt.err (!%p9989_p10)
}
 0x18d   : > { %s9993_s2 = scalar_lea.vmem %s1099_s12, 16  ;;  %s10160_s20 = smov [#allocation20]  }
 0x18e   : > { %p9994_p4 = scmp.ne.s32.totalorder %s1099_s12, %s9993_s2  ;;  %s9998_s18 = sshll.u32 %s10160_s20, 4  ;;  %s9999_s18 = int_to_ptr.vmem [resolvable:$false] %s9998_s18 }
 0x18f   : > { %s10000_s13 = scalar_lea.vmem %s9999_s18, 32  ;;  %p10001_p12 = scmp.lt.s32.totalorder %s1099_s12, %s9999_s18 }
 0x190   : > { %p9996_p5 = pnand %p9994_p4, %p12406_p11  ;;  %p10002_p8 = scmp.lt.s32.totalorder %s10000_s13, %s9993_s2 }
 0x192   : > { %p9997_p1 = pneg %p9996_p5  ;;  %p10003_p6 = por %p10002_p8, %p10001_p12 }
 0x194   : > { %p10004_p3 = pnand %p10003_p6, %p9997_p1 }
 0x196   : > { %10007 = shalt.err (!%p10004_p3)
}
 0x197   : > { %p12421_p9 = scmp.ne.s32.totalorder %s12381_s1, 0  ;;  %s12422_s8 = scalar_lea.sflag [#allocation19], %s10363_s6 }
 0x198   : > { %s1125_s16 = scalar_lea.vmem [#allocation23], %s10356_s29  ;;  %s10008_s25 = scalar_lea.hbm %s10733_s26, 16 }
 0x199   : > { %8910 = dma.hbm_to_vmem [thread:$0]  (!%p12421_p9), %s10707_s28, 16, %s1099_s12, %s12422_s8  }
 0x19a   : > { %s1132_s9 = sshll.u32 %s1125_s16, 4  ;;  %p10009_p0 = scmp.ne.s32.totalorder %s10733_s26, %s10008_s25  ;;  %s1133_s9 = int_to_ptr.vmem [resolvable:$true] %s1132_s9 }
 0x19b   : > { %s10013_s22 = scalar_lea.hbm %s12318_s23, 32  ;;  %p10014_p13 = scmp.lt.u32.totalorder %s10733_s26, %s12318_s23 }
 0x19c   : > { %p10011_p6 = pnand %p10009_p0, %p12406_p11  ;;  %p10015_p7 = scmp.lt.u32.totalorder %s10013_s22, %s10008_s25 }
 0x19d   : > { %p10017_p4 = scmp.lt.u32.totalorder %s10008_s25, %s10733_s26 }
 0x19e   : > { %p10012_p2 = pneg %p10011_p6  ;;  %p10016_p10 = por %p10015_p7, %p10014_p13 }
 0x1a0   : > { %p10018_p5 = por %p10017_p4, %p10016_p10 }
 0x1a2   : > { %p10019_p1 = pnand %p10018_p5, %p10012_p2 }
 0x1a4   : > { %10022 = shalt.err (!%p10019_p1)
}
 0x1a5   : > { %s10023_s29 = scalar_lea.vmem %s1133_s9, 16  ;;  %s10161_s28 = smov [#allocation23]  }
 0x1a6   : > { %p10024_p12 = scmp.ne.s32.totalorder %s1133_s9, %s10023_s29  ;;  %s10028_s12 = sshll.u32 %s10161_s28, 4  ;;  %s10029_s12 = int_to_ptr.vmem [resolvable:$false] %s10028_s12 }
 0x1a7   : > { %s10030_s2 = scalar_lea.vmem %s10029_s12, 32  ;;  %p10031_p0 = scmp.lt.s32.totalorder %s1133_s9, %s10029_s12 }
 0x1a8   : > { %p10026_p8 = pnand %p10024_p12, %p12406_p11  ;;  %p10032_p6 = scmp.lt.s32.totalorder %s10030_s2, %s10023_s29 }
 0x1aa   : > { %p10027_p3 = pneg %p10026_p8  ;;  %p10033_p9 = por %p10032_p6, %p10031_p0 }
 0x1ac   : > { %p10034_p7 = pnand %p10033_p9, %p10027_p3 }
 0x1ae   : > { %10037 = shalt.err (!%p10034_p7)
}
 0x1af   : > { %p12423_p13 = scmp.ne.s32.totalorder %s12381_s1, 0  ;;  %s12424_s20 = scalar_lea.sflag [#allocation22], %s10363_s6 }
 0x1b0   : > { %p12425_p2 = scmp.ne.s32.totalorder %s12402_s27, 0 }
 0x1b1   : > { %8916 = dma.hbm_to_vmem [thread:$0]  (!%p12423_p13), %s10733_s26, 16, %s1133_s9, %s12424_s20  }
 0x1b2   : > { %1141 = sbr.rel (%p12425_p2) target bundleno = 8931 (0x22e3), region = 124  ;;  %s10777_s0 = sand.u32 (!%p12425_p2), 1, %s10130_s4  }
 0x1b3   : > { %s6734_s18 = sshll.u32 (!%p12425_p2), %s10777_s0, 1  ;;  %s1144_s13 = scalar_lea.sflag (!%p12425_p2), [#allocation4], %s10777_s0 }
 0x1b4   : > { %s10781_s8 = scalar_lea.vmem (!%p12425_p2), [#allocation3], %s6734_s18  ;;  %p12426_p11 = scmp.ne.s32.totalorder (!%p12425_p2), %s12401_s11, 0 }
 0x1b9   : > { %10089 = dma.done.wait (%p12426_p11), %s1144_s13, 32  }
 0x1ba   : > { %10091 = vsyncadd (%p12426_p11), %s1144_s13, 4294967264  ;;  %s10788_s1 = sand.u32 1, %s10546_s10  }
 0x1bb   : > { %s1153_s6 = scalar_lea.sflag [#allocation7], %s10788_s1 }
 0x1bc   : > { %10093 = dma.done.wait (%p12426_p11), %s1153_s6, 32  }
 0x1bd   : > { %10095 = vsyncadd (%p12426_p11), %s1153_s6, 4294967264  ;;  %s1169_s16 = scalar_lea.sflag [#allocation10], %s10788_s1 }
 0x1be   : > { %10097 = dma.done.wait (%p12426_p11), %s1169_s16, 32  }
 0x1bf   : > { %10099 = vsyncadd (%p12426_p11), %s1169_s16, 4294967264  ;;  %s1185_s14 = scalar_lea.sflag [#allocation13], %s10788_s1 }
 0x1c0   : > { %10101 = dma.done.wait (%p12426_p11), %s1185_s14, 32  }
 0x1c1   : > { %10103 = vsyncadd (%p12426_p11), %s1185_s14, 4294967264  ;;  %s1201_s24 = scalar_lea.sflag [#allocation16], %s10788_s1 }
 0x1c2   : > { %10105 = dma.done.wait (%p12426_p11), %s1201_s24, 32  }
 0x1c3   : > { %10107 = vsyncadd (%p12426_p11), %s1201_s24, 4294967264  ;;  %s1217_s28 = scalar_lea.sflag [#allocation19], %s10788_s1 }
 0x1c4   : > { %10109 = dma.done.wait (%p12426_p11), %s1217_s28, 32  }
 0x1c5   : > { %10111 = vsyncadd (%p12426_p11), %s1217_s28, 4294967264  ;;  %s1233_s20 = scalar_lea.sflag [#allocation22], %s10788_s1 }
 0x1c6   : > { %10113 = dma.done.wait (%p12426_p11), %s1233_s20, 32  }
 0x1c7   : > { %10115 = vsyncadd (%p12426_p11), %s1233_s20, 4294967264  ;;  %p12427_p9 = scmp.eq.s32.totalorder %s10546_s10, 0 }
 0x1c9   : > { %10117 = dma.done.wait (%p12427_p9), [#allocation25], 16   ;;  %p12428_p10 = pmov %p12427_p9 }
 0x1ca   : > { %p1447_p4 = scmp.lt.s32.totalorder %s10138_s30, 1  ;;  %s12429_s28 = sld [smem:[#allocation44_spill]] }
 0x1cb   : > { %10119 = vsyncadd (%p12428_p10), [#allocation25], 4294967280  ;;  %s12430_s2 = sld [smem:[#allocation46_spill]]  ;;  %s12431_s7 = sld [smem:[#allocation50_spill]] }
 0x1cc   : > { %s1448_s6 = scalar_select %p1447_p4, %s10138_s30, 1 }
 0x1cd   : > { %s12432_s26 = sld [smem:[#allocation52_spill]]  ;;  %s12433_s14 = sld [smem:[#allocation54_spill]] }
 0x1ce   : > { %s6986_s16 = sshll.u32 %s1448_s6, 7  ;;  %s6987_s1 = sshll.u32 %s1448_s6, 6 }
 0x1cf   : > { %s12434_s11 = sld [smem:[#allocation58_spill]]  ;;  %s12435_s29 = sld [smem:[#allocation60_spill]] }
 0x1d0   : > { %s10841_s18 = scalar_lea.vmem %s12429_s28, %s6986_s16  ;;  %p6750_p5 = scmp.ne.s32.totalorder %s10138_s30, 0 }
 0x1d1   : > { %s10846_s13 = scalar_lea.vmem %s12430_s2, %s6987_s1  ;;  %s10851_s22 = scalar_lea.vmem %s12431_s7, %s6987_s1  ;;  %vm1496_vm0 = vcmask (!%p6750_p5), 523264  }
 0x1d2   : > { %1493 = sbr.rel (%p6750_p5) target bundleno = 474 (0x1da), region = 184  ;;  %s12436_s25 = sld [smem:[#allocation40_spill]] (!%p6750_p5) }
 0x1d3   : > { %s10856_s3 = scalar_lea.vmem %s12432_s26, %s6987_s1  ;;  %s10861_s24 = scalar_lea.vmem %s12433_s14, %s6987_s1 }
 0x1d5   : > { %s10866_s2 = scalar_lea.vmem %s12434_s11, %s6987_s1  ;;  %s10871_s7 = scalar_lea.vmem %s12435_s29, %s6986_s16 }
 0x1d8   : > { %v1494_v0 = vld [vmem:[%s12436_s25] sm:$0xff] (!%p6750_p5)  ;;  %v1495_v1 = vld [vmem:[%s12436_s25 + $0x8] sm:$0xff] (!%p6750_p5) }
 0x1d9   : > { %1497 = vst.msk [vmem:[#allocation2] sm:$0xff] %vm1496_vm0, %v1494_v0  ;;  %1498 = vst.msk [vmem:[#allocation2 + $0x8] sm:$0xff] %vm1496_vm0, %v1495_v1 }
 0x1da PF: > { %v1506_v2 = vld [vmem:[%s10841_s18 + $0x8] sm:$0xff]  ;;  %v1508_v3 = vld [vmem:[%s10841_s18 + $0x18] sm:$0xff]  ;;  %v1505_v4 = vld [vmem:[%s10841_s18] sm:$0xff]  ;;  %v10162_v9 = vmov 0.0   ;;  %vm1533_vm1 = vcmask 523264   ;;  %v1523_v29 = vlaneseq  ;;  %vm10163_vm2 = vmmov 0  }
 0x1db   : > { %v8239_v5 = vpack.c.bf16 %v1508_v3, %v1506_v2  ;;  %v1507_v6 = vld [vmem:[%s10841_s18 + $0x10] sm:$0xff]  ;;  %v1510_v7 = vld [vmem:[%s10841_s18 + $0x28] sm:$0xff]  ;;  %v1512_v8 = vld [vmem:[%s10841_s18 + $0x38] sm:$0xff]  ;;  %1604 = vmatprep.mubr.f32.mxu0 %v10162_v9  ;;  %1610 = vmatprep.mubr.f32.mxu1 %v10162_v9  ;;  %s10164_s15 = smov 64   ;;  %vm1620_vm3 = vcmask 130048   ;;  %vm1776_vm4 = vcmask 64512  }
 0x1dc   : > { %v8241_v10 = vpack.c.bf16 %v1507_v6, %v1505_v4  ;;  %v8243_v11 = vpack.c.bf16 %v1512_v8, %v1510_v7  ;;  %v1509_v12 = vld [vmem:[%s10841_s18 + $0x20] sm:$0xff]  ;;  %v1511_v13 = vld [vmem:[%s10841_s18 + $0x30] sm:$0xff]  ;;  %v1514_v14 = vld [vmem:[%s10841_s18 + $0x48] sm:$0xff]  ;;  %v1524_v30 = vshrl.u32 %v1523_v29, 7  ;;  %s10165_s6 = smov 48   ;;  %s10166_s14 = smov 112  }
 0x1dd   : > { %8240 = vmatprep.subr.bf16.mxu0 %v8239_v5  ;;  %8831 = vmatprep.subr.bf16.mxu1 %v8239_v5  ;;  %v1516_v15 = vld [vmem:[%s10841_s18 + $0x58] sm:$0xff]  ;;  %v8245_v16 = vpack.c.bf16 %v1511_v13, %v1509_v12  ;;  %v1513_v18 = vld [vmem:[%s10841_s18 + $0x40] sm:$0xff]  ;;  %v1515_v19 = vld [vmem:[%s10841_s18 + $0x50] sm:$0xff]  ;;  %s10167_s28 = smov 32   ;;  %s10168_s11 = smov 96   ;;  %vm2975_vm5 = vcmask 261120  }
 0x1de   : > { %8242 = vmatpush1.bf16.msra.mxu0 %v8241_v10  ;;  %8835 = vmatpush1.bf16.msra.mxu1 %v8241_v10  ;;  %v8247_v17 = vpack.c.bf16 %v1516_v15, %v1514_v14  ;;  %v1518_v20 = vld [vmem:[%s10841_s18 + $0x68] sm:$0xff]  ;;  %v1520_v21 = vld [vmem:[%s10841_s18 + $0x78] sm:$0xff]  ;;  %v8249_v22 = vpack.c.bf16 %v1515_v19, %v1513_v18  ;;  %v1517_v24 = vld [vmem:[%s10841_s18 + $0x60] sm:$0xff]  ;;  %v1525_v31 = vsub.s32 0, %v1524_v30  ;;  %v1529_v33 = vsub.s32 1, %v1524_v30  ;;  %s10169_s20 = smov 16  }
 0x1df   : > { %8244 = vmatprep.subr.bf16.mxu0 %v8243_v11  ;;  %8832 = vmatprep.subr.bf16.mxu1 %v8243_v11  ;;  %v8251_v23 = vpack.c.bf16 %v1520_v21, %v1518_v20  ;;  %v1519_v25 = vld [vmem:[%s10841_s18 + $0x70] sm:$0xff]  ;;  %s12437_s18 = sld [smem:[#allocation42_spill]]  ;;  %s10170_s29 = smov 80   ;;  %vm2978_vm6 = vcmask 392192   ;;  %vm11349_vm7 = vmpackc.low %vm1620_vm3, %vm1620_vm3 }
 0x1e0   : > { %v8253_v26 = vpack.c.bf16 %v1519_v25, %v1517_v24  ;;  %v10898_v27 = vld [vmem:[#allocation2] sm:$0xff]  ;;  %v10900_v28 = vld [vmem:[#allocation2 + $0x8] sm:$0xff]  ;;  %v1521_v32 = vld [vmem:[%s10781_s8] sm:$0x3]  ;;  %s12439_s27 = sld [smem:[#allocation41_spill]]  ;;  %s12440_s9 = scalar_lea.vmem [#allocation12], %s10777_s0 }
 0x1e1   : > { %v1526_v34 = vrot.slane %v1521_v32, %v1525_v31  ;;  %v1530_v36 = vrot.slane %v1521_v32, %v1529_v33  ;;  %s12444_s12 = scalar_lea.vmem [#allocation9], %s10777_s0  ;;  %s12445_s17 = scalar_lea.vmem [#allocation11], %s10777_s0 }
 0x1e2   : > { %8246 = vmatpush1.bf16.msra.mxu0 %v8245_v16  ;;  %8836 = vmatpush1.bf16.msra.mxu1 %v8245_v16  ;;  %s12446_s1 = sld [smem:[#allocation43_spill]]  ;;  %p6852_p1 = scmp.ne.s32.totalorder %s10138_s30, 1 }
 0x1e3   : > { %8248 = vmatprep.subr.bf16.mxu0 %v8247_v17  ;;  %8833 = vmatprep.subr.bf16.mxu1 %v8247_v17 }
 0x1e5   : > { %v10942_v47 = vld [vmem:[%s12437_s18] sm:$0xff]  ;;  %v10948_v52 = vld [vmem:[%s12437_s18 + $0x8] sm:$0xff] }
 0x1e6   : > { %8250 = vmatpush1.bf16.msra.mxu0 %v8249_v22  ;;  %8837 = vmatpush1.bf16.msra.mxu1 %v8249_v22 }
 0x1e7   : > { %8252 = vmatprep.subr.bf16.mxu0 %v8251_v23  ;;  %8834 = vmatprep.subr.bf16.mxu1 %v8251_v23 }
 0x1ea   : > { %8254 = vmatpush1.bf16.msra.mxu0 %v8253_v26  ;;  %8838 = vmatpush1.bf16.msra.mxu1 %v8253_v26 }
 0x1eb   : > { %7405 = vmatprep.subr.mxu1 %v10162_v9  ;;  %7430 = vmatprep.subr.mxu0 %v10162_v9 }
 0x1ed   : > { %6751 = vmatmul.mubr.msk.f32.vlgmr.msra.gmra.mrb[0].mxu0 %vm1533_vm1, %v10898_v27  ;;  %6752 = vmatmul.mubr.msk.f32.vlgmr.msra.gmra.mrb[0].mxu1 %vm1533_vm1, %v10900_v28 }
 0x1ee   : > { %7407 = vmatprep.mubr.msk.f32.mxu1 %vm10163_vm2, %v10162_v9  ;;  %7432 = vmatprep.mubr.msk.f32.mxu0 %vm10163_vm2, %v10162_v9 }
 0x2c0   : > { %v1606_v35 = vpop.f32.mrb[0].mxu0  ;;  %v1612_v37 = vpop.f32.mrb[0].mxu1 }
 0x2c1   : > { %v10913_v38 = vadd.f32 %v1606_v35, %v1526_v34  ;;  %v1608_v39 = vpop.f32.mrb[1].mxu0  ;;  %v1614_v40 = vpop.f32.mrb[1].mxu1  ;;  %v10917_v42 = vadd.f32 %v1612_v37, %v1526_v34 }
 0x2c2   : > { %v10915_v41 = vadd.f32 %v1614_v40, %v1530_v36  ;;  %v10931_v45 = vadd.f32 %v1608_v39, %v1530_v36 }
 0x2c3   : > { %1618 = vrot.lane.b32.xlu0 %v10913_v38, %s10164_s15 }
 0x2c7   : > { %1696 = vrot.lane.b32.xlu0 %v10917_v42, %s10164_s15 }
 0x335   : > { %v1619_v43 = vpop.permute.xlu0 %1618 }
 0x336   : > { %7406 = vmatpush3.xpose.msk.msra.mxu1 %vm1620_vm3, %v1619_v43 }
 0x337   : > { %7410 = vmatprep.subr.mxu1 %v10162_v9 }
 0x339   : > { %7408 = vmatmul.mubr.msk.f32.vlgmr.msra.gmra.mrb[2].mxu1 %vm1620_vm3, %v10913_v38  ;;  %v1697_v44 = vpop.permute.xlu0 %1696 }
 0x33a   : > { %7411 = vmatpush3.xpose.msk.msra.mxu1 %vm1620_vm3, %v1697_v44  ;;  %7412 = vmatprep.mubr.msk.f32.mxu1 %vm10163_vm2, %v10162_v9 }
 0x33b   : > { %7415 = vmatprep.subr.mxu1 %v10162_v9 }
 0x33d   : > { %7413 = vmatmul.mubr.msk.f32.vlgmr.msra.gmra.mrb[4].mxu1 %vm1620_vm3, %v10917_v42 }
 0x33e   : > { %7416 = vmatpush3.msra.mxu1 %v10931_v45  ;;  %7417 = vmatprep.mubr.msk.f32.mxu1 %vm10163_vm2, %v10162_v9 }
 0x33f   : > { %7420 = vmatprep.subr.mxu1 %v10162_v9 }
 0x40c   : > { %v1691_v46 = vpop.f32.mrb[2].mxu1 }
 0x40d   : > { %v1772_v48 = vmul.f32 0.25, %v1691_v46  ;;  %v7409_v49 = vpop.f32.mrb[3].mxu1 }
 0x40f   : > { %v1774_v50 = vadd.f32 %v1772_v48, %v10942_v47 }
 0x410   : > { %v1768_v51 = vpop.f32.mrb[4].mxu1 }
 0x411   : > { %v1773_v53 = vmul.f32 0.25, %v1768_v51  ;;  %v7414_v54 = vpop.f32.mrb[5].mxu1  ;;  %v1777_v55 = vsel %vm1776_vm4, %v1774_v50, -inf }
 0x412   : > { %1778 = vmax.xlane.f32.xlu1 %v1777_v55 }
 0x413   : > { %v1775_v56 = vadd.f32 %v1773_v53, %v10948_v52 }
 0x415   : > { %v1780_v57 = vsel %vm1776_vm4, %v1775_v56, -inf }
 0x416   : > { %1781 = vmax.xlane.f32.xlu1 %v1780_v57 }
 0x427   : > { %1947 = vrot.lane.b32.xlu1 %v10913_v38, %s10165_s6 }
 0x42b   : > { %2025 = vrot.lane.b32.xlu1 %v10917_v42, %s10165_s6 }
 0x42f   : > { %1945 = vrot.lane.b32.xlu1 %v10913_v38, %s10166_s14 }
 0x49f   : > { %v1779_v58 = vpop.xlane.xlu1 %1778 }
 0x4a0   : > { %v1783_v59 = vsub.f32 %v1774_v50, %v1779_v58 }
 0x4a2   : > { %v1785_v60 = vmul.f32 1.442695, %v1783_v59 }
 0x4a3   : > { %v1782_v61 = vpop.xlane.xlu1 %1781 }
 0x4a4   : > { %8984 = vpow2.f32 %v1785_v60  ;;  %v1784_v62 = vsub.f32 %v1775_v56, %v1782_v61 }
 0x4a6   : > { %v1787_v63 = vmul.f32 1.442695, %v1784_v62 }
 0x4a7   : > { %v1948_v0 = vpop.permute.xlu1 %1947 }
 0x4a8   : > { %8986 = vpow2.f32 %v1787_v63 }
 0x4ab   : > { %v2026_v1 = vpop.permute.xlu1 %2025 }
 0x4ac   : > { %7431 = vmatpush3.xpose.msk.msra.mxu0 %vm1620_vm3, %v2026_v1 }
 0x4ad   : > { %7440 = vmatprep.subr.mxu0 %v10162_v9 }
 0x4ae   : > { %v8985_v2 = vpop.eup %8984 }
 0x4af   : > { %v1789_v3 = vsel %vm1776_vm4, %v8985_v2, 0.0  ;;  %v1946_v6 = vpop.permute.xlu1 %1945 }
 0x4b0   : > { %1790 = vadd.xlane.f32.xlu0 %v1789_v3 }
 0x4b2   : > { %v8987_v4 = vpop.eup %8986 }
 0x4b3   : > { %v1792_v5 = vsel %vm1776_vm4, %v8987_v4, 0.0 }
 0x4b4   : > { %1793 = vadd.xlane.f32.xlu1 %v1792_v5 }
 0x4c5   : > { %2023 = vrot.lane.b32.xlu1 %v10917_v42, %s10166_s14 }
 0x53d   : > { %v1791_v7 = vpop.xlane.xlu0 %1790 }
 0x53e   : > { %8988 = vrcp.f32 %v1791_v7 }
 0x541   : > { %v1794_v8 = vpop.xlane.xlu1 %1793 }
 0x542   : > { %8990 = vrcp.f32 %v1794_v8 }
 0x545   : > { %v2024_v10 = vpop.permute.xlu1 %2023 }
 0x546   : > { %7433 = vmatmul.mubr.msk.f32.vlgmr.msra.gmra.mrb[2].mxu0 %vm1620_vm3, %v2024_v10 }
 0x547   : > { %7442 = vmatprep.mubr.msk.f32.mxu0 %vm10163_vm2, %v10162_v9 }
 0x548   : > { %v8989_v11 = vpop.eup %8988 }
 0x549   : > { %v1796_v12 = vmul.f32 %v8989_v11, %v8985_v2 }
 0x54b   : > { %7418 = vmatmul.mubr.msk.f32.vlgmr.msra.gmra.mrb[6].mxu1 %vm1776_vm4, %v1796_v12 }
 0x54c   : > { %v8991_v13 = vpop.eup %8990  ;;  %7421 = vmatpush3.msra.mxu1 %v10915_v41  ;;  %7422 = vmatprep.mubr.msk.f32.mxu1 %vm10163_vm2, %v10162_v9 }
 0x54d   : > { %v1798_v14 = vmul.f32 %v8991_v13, %v8987_v4  ;;  %7425 = vmatprep.subr.mxu1 %v10162_v9 }
 0x54f   : > { %7423 = vmatmul.mubr.msk.f32.vlgmr.msra.gmra.mrb[8].mxu1 %vm1776_vm4, %v1798_v14 }
 0x550   : > { %7427 = vmatprep.mubr.msk.f32.mxu1 %vm10163_vm2, %v10162_v9 }
 0x553   : > { %7426 = vmatpush3.xpose.msk.msra.mxu1 %vm1620_vm3, %v1948_v0 }
 0x554   : > { %7435 = vmatprep.subr.mxu1 %v10162_v9 }
 0x556   : > { %7428 = vmatmul.mubr.msk.f32.vlgmr.msra.gmra.mrb[10].mxu1 %vm1620_vm3, %v1946_v6 }
 0x557   : > { %7437 = vmatprep.mubr.msk.f32.mxu1 %vm10163_vm2, %v10162_v9 }
 0x619   : > { %v2097_v15 = vpop.f32.mrb[2].mxu0 }
 0x61a   : > { %v2102_v16 = vmul.f32 0.25, %v2097_v15  ;;  %v7434_v17 = vpop.f32.mrb[3].mxu0 }
 0x61c   : > { %v2104_v18 = vadd.f32 %v2102_v16, %v10948_v52 }
 0x61e   : > { %v10982_v19 = vpop.f32.mrb[6].mxu1  ;;  %v2108_v20 = vsel %vm1776_vm4, %v2104_v18, -inf }
 0x61f   : > { %2109 = vmax.xlane.f32.xlu1 %v2108_v20  ;;  %v7419_v21 = vpop.f32.mrb[7].mxu1 }
 0x622   : > { %v10985_v22 = vpop.f32.mrb[8].mxu1 }
 0x623   : > { %v7424_v23 = vpop.f32.mrb[9].mxu1 }
 0x629   : > { %v2019_v24 = vpop.f32.mrb[10].mxu1 }
 0x62a   : > { %v2101_v25 = vmul.f32 0.25, %v2019_v24  ;;  %v7429_v26 = vpop.f32.mrb[11].mxu1 }
 0x62c   : > { %v2103_v29 = vadd.f32 %v2101_v25, %v10942_v47 }
 0x62e   : > { %v2105_v30 = vsel %vm1776_vm4, %v2103_v29, -inf }
 0x62f   : > { %2106 = vmax.xlane.f32.xlu0 %v2105_v30 }
 0x630   : > { %2361 = vrot.lane.b32.xlu1 %v10917_v42, %s10167_s28 }
 0x6ac   : > { %v2110_v31 = vpop.xlane.xlu1 %2109 }
 0x6ad   : > { %v2112_v32 = vsub.f32 %v2104_v18, %v2110_v31 }
 0x6af   : > { %v2115_v33 = vmul.f32 1.442695, %v2112_v32 }
 0x6b0   : > { %v2362_v51 = vpop.permute.xlu1 %2361 }
 0x6b1   : > { %8992 = vpow2.f32 %v2115_v33 }
 0x6bb   : > { %v8993_v34 = vpop.eup %8992 }
 0x6bc   : > { %v2120_v35 = vsel %vm1776_vm4, %v8993_v34, 0.0  ;;  %v2107_v36 = vpop.xlane.xlu0 %2106 }
 0x6bd   : > { %2121 = vadd.xlane.f32.xlu0 %v2120_v35  ;;  %v2111_v37 = vsub.f32 %v2103_v29, %v2107_v36 }
 0x6bf   : > { %v2113_v39 = vmul.f32 1.442695, %v2111_v37 }
 0x6c1   : > { %8994 = vpow2.f32 %v2113_v39 }
 0x6cb   : > { %v8995_v40 = vpop.eup %8994 }
 0x6cc   : > { %v2117_v43 = vsel %vm1776_vm4, %v8995_v40, 0.0 }
 0x6d3   : > { %2128 = vrot.lane.b32.xlu0 %v10931_v45, %s10166_s14 }
 0x6d7   : > { %2205 = vrot.lane.b32.xlu0 %v10915_v41, %s10166_s14 }
 0x6db   : > { %2283 = vrot.lane.b32.xlu0 %v10913_v38, %s10167_s28 }
 0x6fa   : > { %2118 = vadd.xlane.f32.xlu0 %v2117_v43 }
 0x710   : > { %2281 = vrot.lane.b32.xlu0 %v10913_v38, %s10168_s11 }
 0x714   : > { %2359 = vrot.lane.b32.xlu0 %v10917_v42, %s10168_s11 }
 0x74a   : > { %v2122_v44 = vpop.xlane.xlu0 %2121 }
 0x74b   : > { %8996 = vrcp.f32 %v2122_v44 }
 0x74e   : > { %v2129_v46 = vpop.permute.xlu0 %2128 }
 0x74f   : > { %7436 = vmatpush3.msra.mxu1 %v2129_v46 }
 0x750   : > { %7445 = vmatprep.subr.mxu1 %v10162_v9 }
 0x752   : > { %v2206_v48 = vpop.permute.xlu0 %2205 }
 0x753   : > { %7441 = vmatpush3.msra.mxu0 %v2206_v48 }
 0x754   : > { %7450 = vmatprep.subr.mxu0 %v10162_v9 }
 0x755   : > { %v8997_v49 = vpop.eup %8996 }
 0x756   : > { %v2126_v50 = vmul.f32 %v8997_v49, %v8993_v34  ;;  %v2284_v53 = vpop.permute.xlu0 %2283 }
 0x758   : > { %7443 = vmatmul.mubr.msk.f32.vlgmr.msra.gmra.mrb[4].mxu0 %vm1776_vm4, %v2126_v50 }
 0x759   : > { %7452 = vmatprep.mubr.msk.f32.mxu0 %vm10163_vm2, %v10162_v9 }
 0x75a   : > { %7451 = vmatpush3.xpose.msk.msra.mxu0 %vm1620_vm3, %v2362_v51 }
 0x75b   : > { %7460 = vmatprep.subr.mxu0 %v10162_v9 }
 0x787   : > { %v2119_v54 = vpop.xlane.xlu0 %2118 }
 0x788   : > { %8998 = vrcp.f32 %v2119_v54 }
 0x78b   : > { %v2282_v55 = vpop.permute.xlu0 %2281 }
 0x78f   : > { %v2360_v56 = vpop.permute.xlu0 %2359 }
 0x790   : > { %7453 = vmatmul.mubr.msk.f32.vlgmr.msra.gmra.mrb[6].mxu0 %vm1620_vm3, %v2360_v56 }
 0x791   : > { %7462 = vmatprep.mubr.msk.f32.mxu0 %vm10163_vm2, %v10162_v9 }
 0x792   : > { %v8999_v57 = vpop.eup %8998 }
 0x793   : > { %v2124_v58 = vmul.f32 %v8999_v57, %v8995_v40 }
 0x795   : > { %7438 = vmatmul.mubr.msk.f32.vlgmr.msra.gmra.mrb[12].mxu1 %vm1776_vm4, %v2124_v58 }
 0x796   : > { %7446 = vmatpush3.xpose.msk.msra.mxu1 %vm1620_vm3, %v2284_v53  ;;  %7447 = vmatprep.mubr.msk.f32.mxu1 %vm10163_vm2, %v10162_v9 }
 0x797   : > { %7455 = vmatprep.subr.mxu1 %v10162_v9 }
 0x799   : > { %7448 = vmatmul.mubr.msk.f32.vlgmr.msra.gmra.mrb[14].mxu1 %vm1620_vm3, %v2282_v55 }
 0x79a   : > { %7457 = vmatprep.mubr.msk.f32.mxu1 %vm10163_vm2, %v10162_v9 }
 0x82b   : > { %v11021_v59 = vpop.f32.mrb[4].mxu0 }
 0x82c   : > { %v7444_v60 = vpop.f32.mrb[5].mxu0 }
 0x863   : > { %v2433_v61 = vpop.f32.mrb[6].mxu0 }
 0x864   : > { %v2438_v62 = vmul.f32 0.25, %v2433_v61  ;;  %v7454_v63 = vpop.f32.mrb[7].mxu0 }
 0x866   : > { %v2440_v0 = vadd.f32 %v2438_v62, %v10948_v52 }
 0x868   : > { %v11024_v1 = vpop.f32.mrb[12].mxu1  ;;  %v2444_v2 = vsel %vm1776_vm4, %v2440_v0, -inf }
 0x869   : > { %2445 = vmax.xlane.f32.xlu1 %v2444_v2  ;;  %v7439_v3 = vpop.f32.mrb[13].mxu1 }
 0x86c   : > { %v2355_v4 = vpop.f32.mrb[14].mxu1 }
 0x86d   : > { %v2437_v5 = vmul.f32 0.25, %v2355_v4  ;;  %v7449_v6 = vpop.f32.mrb[15].mxu1  ;;  %v2981_v4 = vld [vmem:[%s10846_s13] sm:$0xff] }
 0x86e   : > { %v2983_v6 = vld [vmem:[%s10846_s13 + $0x10] sm:$0xff] }
 0x86f   : > { %v2439_v7 = vadd.f32 %v2437_v5, %v10942_v47  ;;  %v2982_v5 = vld [vmem:[%s10846_s13 + $0x8] sm:$0xff] }
 0x871   : > { %v2441_v8 = vsel %vm1776_vm4, %v2439_v7, -inf }
 0x872   : > { %2442 = vmax.xlane.f32.xlu0 %v2441_v8  ;;  %v2984_v8 = vld [vmem:[%s10846_s13 + $0x18] sm:$0xff] }
 0x87a   : > { %2539 = vrot.lane.b32.xlu1 %v10915_v41, %s10168_s11 }
 0x87e   : > { %2617 = vrot.lane.b32.xlu1 %v10913_v38, %s10169_s20 }
 0x882   : > { %2615 = vrot.lane.b32.xlu1 %v10913_v38, %s10170_s29 }
 0x8f6   : > { %v2446_v10 = vpop.xlane.xlu1 %2445 }
 0x8f7   : > { %v2448_v11 = vsub.f32 %v2440_v0, %v2446_v10  ;;  %v8259_v10 = vpack.c.bf16 %v2984_v8, %v2983_v6  ;;  %v3236_v6 = vld [vmem:[%s12439_s27 + $0x80] sm:$0xff]  ;;  %v3238_v8 = vld [vmem:[%s12439_s27 + $0x90] sm:$0xff] }
 0x8f9   : > { %v2451_v12 = vmul.f32 1.442695, %v2448_v11  ;;  %v2985_v11 = vld [vmem:[%s10846_s13 + $0x20] sm:$0xff] }
 0x8fa   : > { %v2540_v13 = vpop.permute.xlu1 %2539 }
 0x8fb   : > { %9000 = vpow2.f32 %v2451_v12  ;;  %7461 = vmatpush3.msra.mxu0 %v2540_v13  ;;  %v2986_v12 = vld [vmem:[%s10846_s13 + $0x28] sm:$0xff]  ;;  %v2987_v13 = vld [vmem:[%s10846_s13 + $0x30] sm:$0xff] }
 0x8fc   : > { %7470 = vmatprep.subr.mxu0 %v10162_v9 }
 0x8fe   : > { %v2618_v31 = vpop.permute.xlu1 %2617 }
 0x8ff   : > { %v2443_v16 = vpop.xlane.xlu0 %2442 }
 0x900   : > { %v2447_v17 = vsub.f32 %v2439_v7, %v2443_v16  ;;  %v8255_v7 = vpack.c.bf16 %v2982_v5, %v2981_v4  ;;  %v3234_v4 = vld [vmem:[%s12439_s27 + $0x70] sm:$0xff]  ;;  %v3235_v5 = vld [vmem:[%s12439_s27 + $0x78] sm:$0xff] }
 0x902   : > { %v2449_v18 = vmul.f32 1.442695, %v2447_v17  ;;  %v2616_v33 = vpop.permute.xlu1 %2615 }
 0x904   : > { %9002 = vpow2.f32 %v2449_v18 }
 0x905   : > { %v9001_v14 = vpop.eup %9000 }
 0x906   : > { %v2456_v15 = vsel %vm1776_vm4, %v9001_v14, 0.0 }
 0x907   : > { %2457 = vadd.xlane.f32.xlu0 %v2456_v15  ;;  %v2988_v15 = vld [vmem:[%s10846_s13 + $0x38] sm:$0xff]  ;;  %s12438_s13 = scalar_lea.vmem [#allocation6], %s10777_s0 }
 0x908   : > { %v8267_v16 = vpack.c.bf16 %v2988_v15, %v2987_v13  ;;  %v3242_v13 = vld [vmem:[%s12439_s27 + $0xb0] sm:$0xff]  ;;  %v3244_v15 = vld [vmem:[%s12439_s27 + $0xc0] sm:$0xff] }
 0x90e   : > { %v9003_v38 = vpop.eup %9002 }
 0x90f   : > { %v2453_v20 = vsel %vm1776_vm4, %v9003_v38, 0.0 }
 0x91d   : > { %2463 = vrot.lane.b32.xlu0 %v10931_v45, %s10168_s11 }
 0x93c   : > { %2454 = vadd.xlane.f32.xlu0 %v2453_v20 }
 0x952   : > { %2695 = vrot.lane.b32.xlu0 %v10917_v42, %s10169_s20 }
 0x956   : > { %2693 = vrot.lane.b32.xlu0 %v10917_v42, %s10170_s29 }
 0x994   : > { %v2458_v21 = vpop.xlane.xlu0 %2457 }
 0x995   : > { %9004 = vrcp.f32 %v2458_v21 }
 0x998   : > { %v2464_v23 = vpop.permute.xlu0 %2463 }
 0x999   : > { %7456 = vmatpush3.msra.mxu1 %v2464_v23 }
 0x99a   : > { %7465 = vmatprep.subr.mxu1 %v10162_v9 }
 0x99f   : > { %v9005_v24 = vpop.eup %9004 }
 0x9a0   : > { %v2462_v25 = vmul.f32 %v9005_v24, %v9001_v14  ;;  %v8263_v14 = vpack.c.bf16 %v2986_v12, %v2985_v11  ;;  %v3240_v11 = vld [vmem:[%s12439_s27 + $0xa0] sm:$0xff]  ;;  %v3241_v12 = vld [vmem:[%s12439_s27 + $0xa8] sm:$0xff] }
 0x9a2   : > { %7463 = vmatmul.mubr.msk.f32.vlgmr.msra.gmra.mrb[8].mxu0 %vm1776_vm4, %v2462_v25 }
 0x9a3   : > { %7472 = vmatprep.mubr.msk.f32.mxu0 %vm10163_vm2, %v10162_v9 }
 0x9c9   : > { %v2455_v26 = vpop.xlane.xlu0 %2454 }
 0x9ca   : > { %9006 = vrcp.f32 %v2455_v26 }
 0x9cd   : > { %v2696_v29 = vpop.permute.xlu0 %2695 }
 0x9ce   : > { %7471 = vmatpush3.xpose.msk.msra.mxu0 %vm1620_vm3, %v2696_v29 }
 0x9cf   : > { %7480 = vmatprep.subr.mxu0 %v10162_v9 }
 0x9d1   : > { %v2694_v42 = vpop.permute.xlu0 %2693 }
 0x9d2   : > { %7473 = vmatmul.mubr.msk.f32.vlgmr.msra.gmra.mrb[10].mxu0 %vm1620_vm3, %v2694_v42 }
 0x9d3   : > { %7482 = vmatprep.mubr.msk.f32.mxu0 %vm10163_vm2, %v10162_v9 }
 0x9d4   : > { %v9007_v30 = vpop.eup %9006 }
 0x9d5   : > { %v2460_v32 = vmul.f32 %v9007_v30, %v9003_v38 }
 0x9d7   : > { %7458 = vmatmul.mubr.msk.f32.vlgmr.msra.gmra.mrb[16].mxu1 %vm1776_vm4, %v2460_v32 }
 0x9d8   : > { %7466 = vmatpush3.xpose.msk.msra.mxu1 %vm1620_vm3, %v2618_v31  ;;  %7467 = vmatprep.mubr.msk.f32.mxu1 %vm10163_vm2, %v10162_v9 }
 0x9d9   : > { %7475 = vmatprep.subr.mxu1 %v10162_v9 }
 0x9db   : > { %7468 = vmatmul.mubr.msk.f32.vlgmr.msra.gmra.mrb[18].mxu1 %vm1620_vm3, %v2616_v33 }
 0x9dc   : > { %7477 = vmatprep.mubr.msk.f32.mxu1 %vm10163_vm2, %v10162_v9 }
 0xa75   : > { %v2611_v34 = vpop.f32.mrb[8].mxu0 }
 0xa76   : > { %v7464_v35 = vpop.f32.mrb[9].mxu0 }
 0xaa5   : > { %v2767_v36 = vpop.f32.mrb[10].mxu0 }
 0xaa6   : > { %v2772_v37 = vmul.f32 0.25, %v2767_v36  ;;  %v7474_v39 = vpop.f32.mrb[11].mxu0 }
 0xaa8   : > { %v2774_v40 = vadd.f32 %v2772_v37, %v10948_v52 }
 0xaaa   : > { %v2535_v43 = vpop.f32.mrb[16].mxu1  ;;  %v2778_v44 = vsel %vm1776_vm4, %v2774_v40, -inf }
 0xaab   : > { %2779 = vmax.xlane.f32.xlu0 %v2778_v44  ;;  %v7459_v46 = vpop.f32.mrb[17].mxu1 }
 0xaac   : > { %v3252_v46 = vld [vmem:[%s10856_s3] sm:$0xff] }
 0xaae   : > { %v2689_v48 = vpop.f32.mrb[18].mxu1 }
 0xaaf   : > { %v2771_v49 = vmul.f32 0.25, %v2689_v48  ;;  %v7469_v50 = vpop.f32.mrb[19].mxu1  ;;  %v3253_v48 = vld [vmem:[%s10856_s3 + $0x8] sm:$0xff] }
 0xab0   : > { %v8287_v50 = vpack.c.bf16 %v3253_v48, %v3252_v46  ;;  %v3130_v46 = vld [vmem:[%s10851_s22 + $0x30] sm:$0xff]  ;;  %v3131_v48 = vld [vmem:[%s10851_s22 + $0x38] sm:$0xff] }
 0xab1   : > { %v2773_v51 = vadd.f32 %v2771_v49, %v10942_v47  ;;  %v3254_v49 = vld [vmem:[%s10856_s3 + $0x10] sm:$0xff] }
 0xab3   : > { %v2775_v53 = vsel %vm1776_vm4, %v2773_v51, -inf }
 0xab4   : > { %2776 = vmax.xlane.f32.xlu1 %v2775_v53  ;;  %v3256_v53 = vld [vmem:[%s10856_s3 + $0x20] sm:$0xff] }
 0xb38   : > { %v2780_v54 = vpop.xlane.xlu0 %2779 }
 0xb39   : > { %v2782_v55 = vsub.f32 %v2774_v40, %v2780_v54  ;;  %v3257_v54 = vld [vmem:[%s10856_s3 + $0x28] sm:$0xff] }
 0xb3b   : > { %v2785_v56 = vmul.f32 1.442695, %v2782_v55  ;;  %v8295_v55 = vpack.c.bf16 %v3257_v54, %v3256_v53 }
 0xb3d   : > { %9008 = vpow2.f32 %v2785_v56  ;;  %v3258_v56 = vld [vmem:[%s10856_s3 + $0x30] sm:$0xff] }
 0xb41   : > { %v2777_v57 = vpop.xlane.xlu1 %2776 }
 0xb42   : > { %v2781_v58 = vsub.f32 %v2773_v51, %v2777_v57  ;;  %v3255_v51 = vld [vmem:[%s10856_s3 + $0x18] sm:$0xff] }
 0xb43   : > { %v3259_v57 = vld [vmem:[%s10856_s3 + $0x38] sm:$0xff] }
 0xb44   : > { %v2783_v52 = vmul.f32 1.442695, %v2781_v58  ;;  %v8299_v58 = vpack.c.bf16 %v3259_v57, %v3258_v56 }
 0xb46   : > { %9010 = vpow2.f32 %v2783_v52  ;;  %v3221_v52 = vld [vmem:[%s12439_s27 + $0x8] sm:$0xff] }
 0xb47   : > { %v9009_v60 = vpop.eup %9008 }
 0xb48   : > { %v2790_v61 = vsel %vm1776_vm4, %v9009_v60, 0.0 }
 0xb49   : > { %2791 = vadd.xlane.f32.xlu1 %v2790_v61  ;;  %v3223_v61 = vld [vmem:[%s12439_s27 + $0x18] sm:$0xff] }
 0xb50   : > { %v9011_v62 = vpop.eup %9010 }
 0xb51   : > { %v2787_v63 = vsel %vm1776_vm4, %v9011_v62, 0.0 }
 0xb52   : > { %2788 = vadd.xlane.f32.xlu0 %v2787_v63  ;;  %v3225_v63 = vld [vmem:[%s12439_s27 + $0x28] sm:$0xff] }
 0xb5a   : > { %2873 = vrot.lane.b32.xlu1 %v10915_v41, %s10170_s29 }
 0xb5e   : > { %2951 = vrot.lane.b32.xlu1 %v11024_v1, %s10169_s20 }
 0xb62   : > { %2959 = vrot.lane.b32.xlu1 %v2535_v43, %s10167_s28 }
 0xb68   : > { %2797 = vrot.lane.b32.xlu0 %v10931_v45, %s10170_s29 }
 0xb6c   : > { %2953 = vrot.lane.b32.xlu0 %v11021_v59, %s10169_s20 }
 0xb70   : > { %2961 = vrot.lane.b32.xlu0 %v2611_v34, %s10167_s28 }
 0xbd6   : > { %v2792_v47 = vpop.xlane.xlu1 %2791 }
 0xbd7   : > { %9012 = vrcp.f32 %v2792_v47  ;;  %v3226_v47 = vld [vmem:[%s12439_s27 + $0x30] sm:$0xff] }
 0xbda   : > { %v2874_v0 = vpop.permute.xlu1 %2873 }
 0xbdb   : > { %7481 = vmatpush3.msra.mxu0 %v2874_v0  ;;  %v3227_v0 = vld [vmem:[%s12439_s27 + $0x38] sm:$0xff] }
 0xbde   : > { %v2952_v23 = vpop.permute.xlu1 %2951 }
 0xbdf   : > { %v2789_v41 = vpop.xlane.xlu0 %2788  ;;  %v2973_v26 = vsel %vm1620_vm3, %v10982_v19, %v2952_v23  ;;  %v6777_v19 = vld [vmem:[%s12438_s13] ss:$0 sm:$0xff] }
 0xbe0   : > { %9014 = vrcp.f32 %v2789_v41  ;;  %v3228_v41 = vld [vmem:[%s12439_s27 + $0x40] sm:$0xff] }
 0xbe1   : > { %v9013_v1 = vpop.eup %9012 }
 0xbe2   : > { %v2796_v2 = vmul.f32 %v9013_v1, %v9009_v60  ;;  %v2960_v25 = vpop.permute.xlu1 %2959  ;;  %v3222_v60 = vld [vmem:[%s12439_s27 + $0x10] sm:$0xff]  ;;  %v3229_v1 = vld [vmem:[%s12439_s27 + $0x48] sm:$0xff] }
 0xbe3   : > { %v2798_v3 = vpop.permute.xlu0 %2797  ;;  %v2976_v42 = vsel %vm2975_vm5, %v2973_v26, %v2960_v25 }
 0xbe4   : > { %7476 = vmatpush3.msra.mxu1 %v2798_v3  ;;  %7483 = vmatmul.mubr.msk.f32.vlgmr.msra.gmra.mrb[12].mxu0 %vm1776_vm4, %v2796_v2  ;;  %v3230_v2 = vld [vmem:[%s12439_s27 + $0x50] sm:$0xff]  ;;  %v3231_v3 = vld [vmem:[%s12439_s27 + $0x58] sm:$0xff] }
 0xbe5   : > { %8256 = vmatprep.subr.bf16.mxu1 %v8255_v7 }
 0xbe7   : > { %v2954_v21 = vpop.permute.xlu0 %2953 }
 0xbe8   : > { %v2974_v30 = vsel %vm1620_vm3, %v10985_v22, %v2954_v21 }
 0xbea   : > { %v9015_v45 = vpop.eup %9014 }
 0xbeb   : > { %v2794_v59 = vmul.f32 %v9015_v45, %v9011_v62  ;;  %v2962_v24 = vpop.permute.xlu0 %2961  ;;  %v3224_v62 = vld [vmem:[%s12439_s27 + $0x20] sm:$0xff] }
 0xbec   : > { %v2977_v32 = vsel %vm2975_vm5, %v2974_v30, %v2962_v24  ;;  %v3232_v45 = vld [vmem:[%s12439_s27 + $0x60] sm:$0xff] }
 0xbed   : > { %7478 = vmatmul.mubr.msk.f32.vlgmr.msra.gmra.mrb[20].mxu1 %vm1776_vm4, %v2794_v59  ;;  %v3233_v59 = vld [vmem:[%s12439_s27 + $0x68] sm:$0xff] }
 0xbee   : > { %8258 = vmatpush3.bf16.msra.mxu1 %v8255_v7  ;;  %v3237_v7 = vld [vmem:[%s12439_s27 + $0x88] sm:$0xff] }
 0xbef   : > { %8260 = vmatprep.subr.bf16.mxu1 %v8259_v10 }
 0xbf2   : > { %8262 = vmatpush3.bf16.msra.mxu1 %v8259_v10  ;;  %v3239_v10 = vld [vmem:[%s12439_s27 + $0x98] sm:$0xff] }
 0xbf3   : > { %8264 = vmatprep.subr.bf16.mxu1 %v8263_v14 }
 0xbf6   : > { %8266 = vmatpush3.bf16.msra.mxu1 %v8263_v14  ;;  %v3243_v14 = vld [vmem:[%s12439_s27 + $0xb8] sm:$0xff] }
 0xbf7   : > { %8268 = vmatprep.subr.bf16.mxu1 %v8267_v16 }
 0xbfa   : > { %8270 = vmatpush3.bf16.msra.mxu1 %v8267_v16  ;;  %v3245_v16 = vld [vmem:[%s12439_s27 + $0xc8] sm:$0xff] }
 0xbfb   : > { %8288 = vmatprep.subr.bf16.mxu1 %v8287_v50 }
 0xcb7   : > { %v2945_v17 = vpop.f32.mrb[12].mxu0 }
 0xcb8   : > { %2969 = vrot.lane.b32.xlu0 %v2945_v17, %s10165_s6  ;;  %v7484_v18 = vpop.f32.mrb[13].mxu0  ;;  %v3246_v17 = vld [vmem:[%s12439_s27 + $0xd0] sm:$0xff] }
 0xcb9   : > { %v3247_v18 = vld [vmem:[%s12439_s27 + $0xd8] sm:$0xff] }
 0xcc0   : > { %v2869_v38 = vpop.f32.mrb[20].mxu1 }
 0xcc1   : > { %2967 = vrot.lane.b32.xlu1 %v2869_v38, %s10165_s6  ;;  %v7479_v20 = vpop.f32.mrb[21].mxu1 }
 0xd2a   : > { %v2970_v29 = vpop.permute.xlu0 %2969 }
 0xd2b   : > { %v2980_v34 = vsel %vm2978_vm6, %v2977_v32, %v2970_v29  ;;  %v3249_v32 = vld [vmem:[%s12439_s27 + $0xe8] sm:$0xff] }
 0xd33   : > { %v2968_v31 = vpop.permute.xlu1 %2967 }
 0xd34   : > { %v2979_v33 = vsel %vm2978_vm6, %v2976_v42, %v2968_v31  ;;  %v3248_v31 = vld [vmem:[%s12439_s27 + $0xe0] sm:$0xff] }
 0xd35   : > { %7501 = vmatprep.mubr.msk.f32.mxu1 %vm1533_vm1, %v2979_v33  ;;  %v3124_v33 = vld [vmem:[%s10851_s22] sm:$0xff] }
 0xd36   : > { %7502 = vmatmul.mubr.msk.f32.vlgmr.msra.gmra.mrb[22].mxu1 %vm1533_vm1, %v2980_v34  ;;  %v3125_v34 = vld [vmem:[%s10851_s22 + $0x8] sm:$0xff] }
 0xd37   : > { %8290 = vmatpush3.bf16.msra.mxu1 %v8287_v50  ;;  %v10171_v50 = vmov 0.0|0.0  }
 0xe09   : > { %v7503_v35 = vpop.f32.mrb[22].mxu1 }
 0xe0a   : > { %v3074_v22 = vadd.f32 %v7503_v35, %v6777_v19  ;;  %v3068_v36 = vpop.f32.mrb[23].mxu1  ;;  %v3126_v35 = vld [vmem:[%s10851_s22 + $0x10] sm:$0xff] }
 0xe0b   : > { %v3069_v37 = vadd.f32 %v6777_v19, %v3068_v36  ;;  %v8271_v19 = vpack.c.bf16 %v3125_v34, %v3124_v33 }
 0xe0c   : > { %v11102_v39 = vadd.f32 %v3074_v22, %v10900_v28  ;;  %v8291_v28 = vpack.c.bf16 %v3255_v51, %v3254_v49  ;;  %v3127_v22 = vld [vmem:[%s10851_s22 + $0x18] sm:$0xff]  ;;  %v8283_v49 = vpack.c.bf16 %v3131_v48, %v3130_v46  ;;  %v11273_v51 = vld [vmem:[%s12440_s9] ss:$0 sm:$0xff] }
 0xe0d   : > { %v11105_v40 = vadd.f32 %v3069_v37, %v10898_v27  ;;  %v3220_v27 = vld [vmem:[%s12439_s27] sm:$0xff]  ;;  %8272 = vmatprep.subr.bf16.mxu0 %v8271_v19  ;;  %v8275_v36 = vpack.c.bf16 %v3127_v22, %v3126_v35  ;;  %v3250_v37 = vld [vmem:[%s12439_s27 + $0xf0] sm:$0xff] }
 0xe0e   : > { %v3084_v43 = vsel %vm1533_vm1, %v11102_v39, 0.0  ;;  %7539 = vmatprep.mubr.msk.f32.mxu1 %vm1533_vm1, %v3220_v27  ;;  %8292 = vmatprep.subr.bf16.mxu1 %v8291_v28 }
 0xe0f   : > { %3085 = vadd.xlane.f32.xlu0 %v3084_v43  ;;  %v3081_v44 = vsel %vm1533_vm1, %v11105_v40, 0.0  ;;  %8294 = vmatpush3.bf16.msra.mxu1 %v8291_v28  ;;  %v3129_v43 = vld [vmem:[%s10851_s22 + $0x28] sm:$0xff] }
 0xe10   : > { %3082 = vadd.xlane.f32.xlu1 %v3081_v44  ;;  %8296 = vmatprep.subr.bf16.mxu1 %v8295_v55 }
 0xe11   : > { %8274 = vmatpush3.bf16.msra.mxu0 %v8271_v19 }
 0xe12   : > { %8276 = vmatprep.subr.bf16.mxu0 %v8275_v36 }
 0xe13   : > { %8298 = vmatpush3.bf16.msra.mxu1 %v8295_v55 }
 0xe14   : > { %8300 = vmatprep.subr.bf16.mxu1 %v8299_v58 }
 0xe15   : > { %8278 = vmatpush3.bf16.msra.mxu0 %v8275_v36 }
 0xe17   : > { %8302 = vmatpush3.bf16.msra.mxu1 %v8299_v58 }
 0xe18   : > { %8335 = vmatprep.subr.bf16.mxu1 %v10171_v50 }
 0xe1a   : > { %7540 = vmatmul.mubr.msk.f32.vlgmr.msra.gmra.mrb[24].mxu1 %vm1533_vm1, %v3221_v52 }
 0xe1b   : > { %7542 = vmatprep.mubr.msk.f32.mxu1 %vm1533_vm1, %v3222_v60 }
 0xe1e   : > { %7543 = vmatmul.mubr.msk.f32.gmra.mrb[26].mxu1 %vm1533_vm1, %v3223_v61 }
 0xe1f   : > { %7545 = vmatprep.mubr.msk.f32.mxu1 %vm1533_vm1, %v3224_v62 }
 0xe22   : > { %7546 = vmatmul.mubr.msk.f32.gmra.mrb[28].mxu1 %vm1533_vm1, %v3225_v63 }
 0xe23   : > { %7548 = vmatprep.mubr.msk.f32.mxu1 %vm1533_vm1, %v3226_v47 }
 0xe26   : > { %7549 = vmatmul.mubr.msk.f32.gmra.mrb[30].mxu1 %vm1533_vm1, %v3227_v0 }
 0xe27   : > { %7551 = vmatprep.mubr.msk.f32.mxu1 %vm1533_vm1, %v3228_v41 }
 0xe2a   : > { %7552 = vmatmul.mubr.msk.f32.gmra.mrb[32].mxu1 %vm1533_vm1, %v3229_v1 }
 0xe2b   : > { %7554 = vmatprep.mubr.msk.f32.mxu1 %vm1533_vm1, %v3230_v2 }
 0xe2e   : > { %7555 = vmatmul.mubr.msk.f32.gmra.mrb[34].mxu1 %vm1533_vm1, %v3231_v3 }
 0xe2f   : > { %7557 = vmatprep.mubr.msk.f32.mxu1 %vm1533_vm1, %v3232_v45 }
 0xe32   : > { %7558 = vmatmul.mubr.msk.f32.gmra.mrb[36].mxu1 %vm1533_vm1, %v3233_v59 }
 0xe33   : > { %7560 = vmatprep.mubr.msk.f32.mxu1 %vm1533_vm1, %v3234_v4 }
 0xe36   : > { %7561 = vmatmul.mubr.msk.f32.gmra.mrb[38].mxu1 %vm1533_vm1, %v3235_v5 }
 0xe37   : > { %7563 = vmatprep.mubr.msk.f32.mxu1 %vm1533_vm1, %v3236_v6 }
 0xe3a   : > { %7564 = vmatmul.mubr.msk.f32.gmra.mrb[40].mxu1 %vm1533_vm1, %v3237_v7 }
 0xe3b   : > { %7566 = vmatprep.mubr.msk.f32.mxu1 %vm1533_vm1, %v3238_v8 }
 0xe3e   : > { %7567 = vmatmul.mubr.msk.f32.gmra.mrb[42].mxu1 %vm1533_vm1, %v3239_v10 }
 0xe3f   : > { %7569 = vmatprep.mubr.msk.f32.mxu1 %vm1533_vm1, %v3240_v11 }
 0xe42   : > { %7570 = vmatmul.mubr.msk.f32.gmra.mrb[44].mxu1 %vm1533_vm1, %v3241_v12 }
 0xe43   : > { %7572 = vmatprep.mubr.msk.f32.mxu1 %vm1533_vm1, %v3242_v13 }
 0xe46   : > { %7573 = vmatmul.mubr.msk.f32.gmra.mrb[46].mxu1 %vm1533_vm1, %v3243_v14 }
 0xe47   : > { %7575 = vmatprep.mubr.msk.f32.mxu1 %vm1533_vm1, %v3244_v15 }
 0xe4a   : > { %7576 = vmatmul.mubr.msk.f32.gmra.mrb[48].mxu1 %vm1533_vm1, %v3245_v16 }
 0xe4b   : > { %7578 = vmatprep.mubr.msk.f32.mxu1 %vm1533_vm1, %v3246_v17 }
 0xe4e   : > { %7579 = vmatmul.mubr.msk.f32.gmra.mrb[50].mxu1 %vm1533_vm1, %v3247_v18 }
 0xe4f   : > { %7581 = vmatprep.mubr.msk.f32.mxu1 %vm1533_vm1, %v3248_v31 }
 0xe52   : > { %7582 = vmatmul.mubr.msk.f32.gmra.mrb[52].mxu1 %vm1533_vm1, %v3249_v32 }
 0xe53   : > { %7584 = vmatprep.mubr.msk.f32.mxu1 %vm1533_vm1, %v3250_v37 }
 0xe9c   : > { %v3086_v38 = vpop.xlane.xlu0 %3085 }
 0xe9d   : > { %v3089_v20 = vmul.f32 0.015625, %v3086_v38  ;;  %v3083_v21 = vpop.xlane.xlu1 %3082 }
 0xe9e   : > { %v3088_v23 = vmul.f32 0.015625, %v3083_v21 }
 0xe9f   : > { %v11232_v24 = vsub.f32 %v11102_v39, %v3089_v20  ;;  %v3251_v39 = vld [vmem:[%s12439_s27 + $0xf8] sm:$0xff] }
 0xea0   : > { %v11235_v25 = vsub.f32 %v11105_v40, %v3088_v23  ;;  %v3128_v40 = vld [vmem:[%s10851_s22 + $0x20] sm:$0xff]  ;;  %7585 = vmatmul.mubr.msk.f32.gmra.mrb[54].mxu1 %vm1533_vm1, %v3251_v39  ;;  %s12443_s22 = scalar_lea.vmem [#allocation8], %s10777_s0 }
 0xea1   : > { %v3093_v26 = vmul.f32 %v11232_v24, %v11232_v24  ;;  %v8279_v44 = vpack.c.bf16 %v3129_v43, %v3128_v40  ;;  %7654 = vmatprep.mubr.msk.f32.mxu1 %vm10163_vm2, %v10162_v9 }
 0xea2   : > { %v3092_v29 = vmul.f32 %v11235_v25, %v11235_v25 }
 0xea3   : > { %v3097_v42 = vsel %vm1533_vm1, %v3093_v26, 0.0  ;;  %8280 = vmatprep.subr.bf16.mxu0 %v8279_v44 }
 0xea4   : > { %3098 = vadd.xlane.f32.xlu1 %v3097_v42  ;;  %v3094_v30 = vsel %vm1533_vm1, %v3092_v29, 0.0  ;;  %8282 = vmatpush3.bf16.msra.mxu0 %v8279_v44 }
 0xea5   : > { %3095 = vadd.xlane.f32.xlu0 %v3094_v30  ;;  %8284 = vmatprep.subr.bf16.mxu0 %v8283_v49 }
 0xea8   : > { %8286 = vmatpush3.bf16.msra.mxu0 %v8283_v49 }
 0xea9   : > { %8303 = vmatprep.subr.bf16.mxu0 %v10171_v50 }
 0xeed   : > { %v7541_v28 = vpop.f32.mrb[24].mxu1 }
 0xeee   : > { %v11276_v53 = vadd.f32 %v7541_v28, %v11273_v51  ;;  %v3429_v54 = vpop.f32.mrb[25].mxu1 }
 0xeef   : > { %v11279_v27 = vadd.f32 %v11273_v51, %v3429_v54 }
 0xef1   : > { %v8304_v55 = vpack.c.bf16 %v11276_v53, %v11279_v27  ;;  %v7544_v56 = vpop.f32.mrb[26].mxu1 }
 0xef2   : > { %v11284_v57 = vadd.f32 %v7544_v56, %v11273_v51  ;;  %v3439_v58 = vpop.f32.mrb[27].mxu1 }
 0xef3   : > { %v11287_v52 = vadd.f32 %v11273_v51, %v3439_v58 }
 0xef5   : > { %v8308_v60 = vpack.c.bf16 %v11284_v57, %v11287_v52  ;;  %v7547_v61 = vpop.f32.mrb[28].mxu1 }
 0xef6   : > { %v11292_v62 = vadd.f32 %v7547_v61, %v11273_v51  ;;  %v3449_v63 = vpop.f32.mrb[29].mxu1 }
 0xef7   : > { %v11295_v47 = vadd.f32 %v11273_v51, %v3449_v63 }
 0xef9   : > { %v8312_v0 = vpack.c.bf16 %v11292_v62, %v11295_v47  ;;  %v7550_v41 = vpop.f32.mrb[30].mxu1 }
 0xefa   : > { %v11300_v1 = vadd.f32 %v7550_v41, %v11273_v51  ;;  %v3459_v2 = vpop.f32.mrb[31].mxu1 }
 0xefb   : > { %v11303_v3 = vadd.f32 %v11273_v51, %v3459_v2 }
 0xefd   : > { %v8316_v45 = vpack.c.bf16 %v11300_v1, %v11303_v3  ;;  %v7553_v59 = vpop.f32.mrb[32].mxu1 }
 0xefe   : > { %v11308_v4 = vadd.f32 %v7553_v59, %v11273_v51  ;;  %v3469_v5 = vpop.f32.mrb[33].mxu1 }
 0xeff   : > { %v11311_v6 = vadd.f32 %v11273_v51, %v3469_v5 }
 0xf01   : > { %v8320_v7 = vpack.c.bf16 %v11308_v4, %v11311_v6  ;;  %v7556_v8 = vpop.f32.mrb[34].mxu1 }
 0xf02   : > { %v11316_v10 = vadd.f32 %v7556_v8, %v11273_v51  ;;  %v3479_v11 = vpop.f32.mrb[35].mxu1 }
 0xf03   : > { %v11319_v12 = vadd.f32 %v11273_v51, %v3479_v11 }
 0xf05   : > { %v8324_v13 = vpack.c.bf16 %v11316_v10, %v11319_v12  ;;  %v7559_v14 = vpop.f32.mrb[36].mxu1 }
 0xf06   : > { %v11324_v15 = vadd.f32 %v7559_v14, %v11273_v51  ;;  %v3489_v16 = vpop.f32.mrb[37].mxu1 }
 0xf07   : > { %v11327_v17 = vadd.f32 %v11273_v51, %v3489_v16 }
 0xf09   : > { %v8328_v18 = vpack.c.bf16 %v11324_v15, %v11327_v17  ;;  %v7562_v38 = vpop.f32.mrb[38].mxu1 }
 0xf0a   : > { %v11332_v20 = vadd.f32 %v7562_v38, %v11273_v51  ;;  %v3499_v21 = vpop.f32.mrb[39].mxu1 }
 0xf0b   : > { %v11335_v23 = vadd.f32 %v11273_v51, %v3499_v21  ;;  %v6780_v21 = vld [vmem:[%s12443_s22] ss:$0 sm:$0xff]  ;;  %s12447_s22 = sld [smem:[#allocation65_spill]] (!%p6852_p1) }
 0xf0d   : > { %v8332_v26 = vpack.c.bf16 %v11332_v20, %v11335_v23  ;;  %v7565_v29 = vpop.f32.mrb[40].mxu1 }
 0xf0e   : > { %v11340_v42 = vadd.f32 %v7565_v29, %v11273_v51  ;;  %v3509_v30 = vpop.f32.mrb[41].mxu1 }
 0xf0f   : > { %v11343_v31 = vadd.f32 %v11273_v51, %v3509_v30 }
 0xf11   : > { %v8336_v32 = vpack.c.bf16 %v11340_v42, %v11343_v31  ;;  %v7568_v33 = vpop.f32.mrb[42].mxu1 }
 0xf12   : > { %v11354_v19 = vadd.f32 %v7568_v33, %v11273_v51  ;;  %v3519_v35 = vpop.f32.mrb[43].mxu1 }
 0xf13   : > { %8338 = vmatpush3.bf16.xpose.msk.msra.mxu1 %vm11349_vm7, %v8336_v32  ;;  %v11359_v36 = vadd.f32 %v11273_v51, %v3519_v35 }
 0xf14   : > { %8339 = vmatprep.subr.bf16.mxu1 %v10171_v50 }
 0xf15   : > { %v8340_v43 = vpack.c.bf16 %v11354_v19, %v11359_v36  ;;  %v7571_v44 = vpop.f32.mrb[44].mxu1 }
 0xf16   : > { %v11365_v48 = vadd.f32 %v7571_v44, %v11273_v51  ;;  %v3529_v49 = vpop.f32.mrb[45].mxu1 }
 0xf17   : > { %v11368_v54 = vadd.f32 %v11273_v51, %v3529_v49  ;;  %v6782_v49 = vld [vmem:[%s12445_s17] ss:$0 sm:$0xff] }
 0xf19   : > { %v8344_v56 = vpack.c.bf16 %v11365_v48, %v11368_v54  ;;  %v7574_v58 = vpop.f32.mrb[46].mxu1 }
 0xf1a   : > { %v11373_v61 = vadd.f32 %v7574_v58, %v11273_v51  ;;  %v3539_v63 = vpop.f32.mrb[47].mxu1 }
 0xf1b   : > { %8342 = vmatpush3.bf16.xpose.msk.msra.mxu1 %vm11349_vm7, %v8340_v43  ;;  %v11378_v41 = vadd.f32 %v11273_v51, %v3539_v63 }
 0xf1c   : > { %8343 = vmatprep.subr.bf16.mxu1 %v10171_v50 }
 0xf1d   : > { %v8348_v2 = vpack.c.bf16 %v11373_v61, %v11378_v41  ;;  %v7577_v59 = vpop.f32.mrb[48].mxu1 }
 0xf1e   : > { %v11384_v5 = vadd.f32 %v7577_v59, %v11273_v51  ;;  %v3549_v8 = vpop.f32.mrb[49].mxu1 }
 0xf1f   : > { %v11387_v11 = vadd.f32 %v11273_v51, %v3549_v8 }
 0xf21   : > { %v8352_v14 = vpack.c.bf16 %v11384_v5, %v11387_v11  ;;  %v7580_v16 = vpop.f32.mrb[50].mxu1 }
 0xf22   : > { %v11394_v29 = vadd.f32 %v7580_v16, %v11273_v51  ;;  %v3559_v30 = vpop.f32.mrb[51].mxu1  ;;  %v11513_v16 = vld [vmem:[%s12446_s1] sm:$0xff] }
 0xf23   : > { %8346 = vmatpush3.bf16.xpose.msk.msra.mxu1 %vm11349_vm7, %v8344_v56  ;;  %v11400_v35 = vadd.f32 %v11273_v51, %v3559_v30 }
 0xf24   : > { %8347 = vmatprep.subr.bf16.mxu1 %v10171_v50 }
 0xf2b   : > { %8350 = vmatpush3.bf16.xpose.msk.msra.mxu1 %vm11349_vm7, %v8348_v2  ;;  %v11508_v2 = vld [vmem:[%s12446_s1 + $0x8] sm:$0xff] }
 0xf2c   : > { %8351 = vmatprep.subr.bf16.mxu1 %v10171_v50 }
 0xf31   : > { %v3099_v22 = vpop.xlane.xlu1 %3098 }
 0xf32   : > { %v3101_v37 = vmul.f32 0.015625, %v3099_v22  ;;  %v3096_v39 = vpop.xlane.xlu0 %3095 }
 0xf33   : > { %v3100_v40 = vmul.f32 0.015625, %v3096_v39  ;;  %8354 = vmatpush3.bf16.xpose.msk.msra.mxu1 %vm11349_vm7, %v8352_v14 }
 0xf34   : > { %v3103_v46 = vadd.f32 1e-05, %v3101_v37  ;;  %v6781_v37 = vld [vmem:[%s12444_s12] ss:$0 sm:$0xff]  ;;  %8355 = vmatprep.subr.bf16.mxu1 %v10171_v50 }
 0xf35   : > { %v3102_v28 = vadd.f32 1e-05, %v3100_v40  ;;  %v8356_v40 = vpack.c.bf16 %v11394_v29, %v11400_v35 }
 0xf36   : > { %9016 = vrsqrt.f32 %v3103_v46 }
 0xf37   : > { %9018 = vrsqrt.f32 %v3102_v28 }
 0xf3b   : > { %8358 = vmatpush3.bf16.xpose.msk.msra.mxu1 %vm11349_vm7, %v8356_v40 }
 0xf3c   : > { %8359 = vmatprep.subr.bf16.mxu1 %v10171_v50 }
 0xf40   : > { %v9017_v38 = vpop.eup %9016 }
 0xf41   : > { %v9019_v32 = vpop.eup %9018  ;;  %v3107_v33 = vmul.f32 %v9017_v38, %v11232_v24 }
 0xf42   : > { %v3106_v22 = vmul.f32 %v9019_v32, %v11235_v25  ;;  %v7583_v25 = vpop.f32.mrb[52].mxu1 }
 0xf43   : > { %v3115_v39 = vmul.f32 %v6780_v21, %v3107_v33 }
 0xf44   : > { %v3114_v43 = vmul.f32 %v6780_v21, %v3106_v22 }
 0xf45   : > { %v11410_v24 = vadd.f32 %v6781_v37, %v3115_v39 }
 0xf46   : > { %v11408_v44 = vadd.f32 %v6781_v37, %v3114_v43 }
 0xf48   : > { %7520 = vmatprep.mubr.msk.f32.mxu0 %vm1533_vm1, %v11408_v44 }
 0xf49   : > { %7521 = vmatmul.mubr.msk.f32.vlgmr.msra.gmra.mrb[14].mxu0 %vm1533_vm1, %v11410_v24 }
 0xf4a   : > { %8306 = vmatpush3.bf16.xpose.msk.msra.mxu0 %vm11349_vm7, %v8304_v55  ;;  %7619 = vmatprep.mubr.msk.f32.mxu0 %vm10163_vm2, %v10162_v9  ;;  %v11475_v55 = vadd.f32 %v7583_v25, %v11273_v51 }
 0xf4b   : > { %8307 = vmatprep.subr.bf16.mxu0 %v10171_v50 }
 0xf52   : > { %8310 = vmatpush3.bf16.xpose.msk.msra.mxu0 %vm11349_vm7, %v8308_v60  ;;  %v3569_v60 = vpop.f32.mrb[53].mxu1 }
 0xf53   : > { %8311 = vmatprep.subr.bf16.mxu0 %v10171_v50 }
 0xf5a   : > { %8314 = vmatpush3.bf16.xpose.msk.msra.mxu0 %vm11349_vm7, %v8312_v0  ;;  %v11478_v0 = vadd.f32 %v11273_v51, %v3569_v60 }
 0xf5b   : > { %8315 = vmatprep.subr.bf16.mxu0 %v10171_v50 }
 0xf62   : > { %8318 = vmatpush3.bf16.xpose.msk.msra.mxu0 %vm11349_vm7, %v8316_v45  ;;  %v8360_v45 = vpack.c.bf16 %v11475_v55, %v11478_v0 }
 0xf63   : > { %8319 = vmatprep.subr.bf16.mxu0 %v10171_v50 }
 0xf64   : > { %8362 = vmatpush3.bf16.xpose.msk.msra.mxu1 %vm11349_vm7, %v8360_v45 }
 0xf65   : > { %8363 = vmatprep.subr.bf16.mxu1 %v10171_v50 }
 0xf6a   : > { %8322 = vmatpush3.bf16.xpose.msk.msra.mxu0 %vm11349_vm7, %v8320_v7 }
 0xf6b   : > { %8323 = vmatprep.subr.bf16.mxu0 %v10171_v50 }
 0xf72   : > { %8326 = vmatpush3.bf16.xpose.msk.msra.mxu0 %vm11349_vm7, %v8324_v13 }
 0xf73   : > { %8327 = vmatprep.subr.bf16.mxu0 %v10171_v50  ;;  %v7586_v7 = vpop.f32.mrb[54].mxu1 }
 0xf74   : > { %v11486_v13 = vadd.f32 %v7586_v7, %v11273_v51 }
 0xf7a   : > { %8330 = vmatpush3.bf16.xpose.msk.msra.mxu0 %vm11349_vm7, %v8328_v18  ;;  %v3579_v18 = vpop.f32.mrb[55].mxu1 }
 0xf7b   : > { %8331 = vmatprep.subr.bf16.mxu0 %v10171_v50 }
 0xf82   : > { %8334 = vmatpush3.bf16.xpose.msk.msra.mxu0 %vm11349_vm7, %v8332_v26  ;;  %v11489_v26 = vadd.f32 %v11273_v51, %v3579_v18 }
 0xf84   : > { %v8364_v46 = vpack.c.bf16 %v11486_v13, %v11489_v26 }
 0xf86   : > { %8366 = vmatpush3.bf16.xpose.msk.msra.mxu1 %vm11349_vm7, %v8364_v46 }
0x101c   : > { %v7522_v28 = vpop.f32.mrb[14].mxu0 }
0x101d   : > { %v11497_v56 = vadd.f32 %v7522_v28, %v6782_v49  ;;  %v3211_v58 = vpop.f32.mrb[15].mxu0 }
0x101e   : > { %v11499_v63 = vadd.f32 %v6782_v49, %v3211_v58 }
0x101f   : > { %7655 = vmatmul.mubr.msk.f32.vlgmr.msra.gmra.mrb[56].mxu1 %vm1620_vm3, %v11497_v56 }
0x1020   : > { %7620 = vmatmul.mubr.msk.f32.vlgmr.msra.gmra.mrb[16].mxu0 %vm1620_vm3, %v11499_v63 }
0x10f2   : > { %v3826_v51 = vpop.f32.mrb[56].mxu1 }
0x10f3   : > { %v3831_v59 = vmul.f32 0.25, %v3826_v51  ;;  %v3705_v8 = vpop.f32.mrb[16].mxu0  ;;  %v7656_v14 = vpop.f32.mrb[57].mxu1 }
0x10f4   : > { %v3830_v38 = vmul.f32 0.25, %v3705_v8  ;;  %v7621_v21 = vpop.f32.mrb[17].mxu0 }
0x10f5   : > { %v3833_v30 = vadd.f32 %v3831_v59, %v11508_v2 }
0x10f6   : > { %v3832_v32 = vadd.f32 %v3830_v38, %v11513_v16 }
0x10f7   : > { %3836 = vmax.xlane.f32.xlu1 %v3833_v30 }
0x10f8   : > { %3834 = vmax.xlane.f32.xlu0 %v3832_v32 }
0x1184   : > { %v3837_v33 = vpop.xlane.xlu1 %3836 }
0x1185   : > { %v3839_v22 = vsub.f32 %v3833_v30, %v3837_v33  ;;  %v3835_v37 = vpop.xlane.xlu0 %3834 }
0x1186   : > { %v3838_v39 = vsub.f32 %v3832_v32, %v3835_v37 }
0x1187   : > { %v3842_v40 = vmul.f32 1.442695, %v3839_v22 }
0x1188   : > { %v3840_v43 = vmul.f32 1.442695, %v3838_v39 }
0x1189   : > { %9020 = vpow2.f32 %v3842_v40 }
0x118a   : > { %9022 = vpow2.f32 %v3840_v43 }
0x1193   : > { %v9021_v25 = vpop.eup %9020 }
0x1194   : > { %v9023_v60 = vpop.eup %9022  ;;  %3846 = vadd.xlane.f32.xlu1 %v9021_v25 }
0x1195   : > { %3844 = vadd.xlane.f32.xlu0 %v9023_v60 }
0x1221   : > { %v3847_v45 = vpop.xlane.xlu1 %3846 }
0x1222   : > { %9024 = vrcp.f32 %v3847_v45  ;;  %v3845_v7 = vpop.xlane.xlu0 %3844 }
0x1223   : > { %9026 = vrcp.f32 %v3845_v7 }
0x1228   : > { %3854 = sbr.rel (%p6852_p1) target bundleno = 4657 (0x1231), region = 188 }
0x122c   : > { %v9025_v18 = vpop.eup %9024 }
0x122d   : > { %v9027_v46 = vpop.eup %9026  ;;  %v11517_v49 = vmul.f32 %v9025_v18, %v9021_v25 }
0x122e   : > { %v11519_v28 = vmul.f32 %v9027_v46, %v9023_v60 }
0x122f   : > { %3856 = vst [vmem:[%s12447_s22 + $0x8] sm:$0xff] %v11517_v49 }
0x1230   : > { %3855 = vst [vmem:[%s12447_s22] sm:$0xff] %v11519_v28 }
0x1231 PF: > { %v11534_v58 = vpack.i.bf16 %v11276_v53, %v11279_v27  ;;  %v11538_v51 = vpack.i.bf16 %v11284_v57, %v11287_v52  ;;  %8367 = vmatprep.subr.bf16.mxu0 %v10171_v50  ;;  %8391 = vmatprep.subr.bf16.mxu1 %v10171_v50  ;;  %v11548_v59 = vpack.i.bf16 %v11340_v42, %v11343_v31  ;;  %s12448_s8 = sld [smem:[#allocation65_spill]] (!%p6852_p1) }
0x1232   : > { %v11552_v53 = vpack.i.bf16 %v11354_v19, %v11359_v36  ;;  %7689 = vmatprep.mubr.msk.f32.mxu0 %vm10163_vm2, %v10162_v9  ;;  %7724 = vmatprep.mubr.msk.f32.mxu1 %vm10163_vm2, %v10162_v9  ;;  %v11564_v27 = vpack.i.bf16 %v11292_v62, %v11295_v47  ;;  %v11568_v57 = vpack.i.bf16 %v11365_v48, %v11368_v54 }
0x1233   : > { %9029 = vrot.lane.b32.xlu0 %v11534_v58, %s10164_s15  ;;  %9039 = vrot.lane.b32.xlu1 %v11538_v51, %s10164_s15  ;;  %v11576_v52 = vpack.i.bf16 %v11300_v1, %v11303_v3  ;;  %v11580_v42 = vpack.i.bf16 %v11373_v61, %v11378_v41  ;;  %v11588_v62 = vpack.i.bf16 %v11308_v4, %v11311_v6 }
0x1234   : > { %v11592_v47 = vpack.i.bf16 %v11384_v5, %v11387_v11  ;;  %v11600_v1 = vpack.i.bf16 %v11316_v10, %v11319_v12  ;;  %v11604_v3 = vpack.i.bf16 %v11394_v29, %v11400_v35  ;;  %v11612_v4 = vpack.i.bf16 %v11324_v15, %v11327_v17 }
0x1235   : > { %v11616_v6 = vpack.i.bf16 %v11475_v55, %v11478_v0  ;;  %v11624_v10 = vpack.i.bf16 %v11332_v20, %v11335_v23  ;;  %v11628_v12 = vpack.i.bf16 %v11486_v13, %v11489_v26 }
0x1237   : > { %9034 = vrot.lane.b32.xlu0 %v11548_v59, %s10164_s15  ;;  %9044 = vrot.lane.b32.xlu1 %v11552_v53, %s10164_s15 }
0x123b   : > { %9049 = vrot.lane.b32.xlu0 %v11564_v27, %s10164_s15  ;;  %9054 = vrot.lane.b32.xlu1 %v11568_v57, %s10164_s15 }
0x123f   : > { %9059 = vrot.lane.b32.xlu0 %v11576_v52, %s10164_s15  ;;  %9064 = vrot.lane.b32.xlu1 %v11580_v42, %s10164_s15 }
0x1243   : > { %9069 = vrot.lane.b32.xlu0 %v11588_v62, %s10164_s15  ;;  %9074 = vrot.lane.b32.xlu1 %v11592_v47, %s10164_s15 }
0x1247   : > { %9079 = vrot.lane.b32.xlu0 %v11600_v1, %s10164_s15  ;;  %9084 = vrot.lane.b32.xlu1 %v11604_v3, %s10164_s15 }
0x124b   : > { %9089 = vrot.lane.b32.xlu0 %v11612_v4, %s10164_s15  ;;  %9094 = vrot.lane.b32.xlu1 %v11616_v6, %s10164_s15 }
0x124f   : > { %9099 = vrot.lane.b32.xlu0 %v11624_v10, %s10164_s15  ;;  %9104 = vrot.lane.b32.xlu1 %v11628_v12, %s10164_s15 }
0x1253   : > { %9109 = vrot.lane.b32.xlu0 %v11534_v58, %s10166_s14  ;;  %9114 = vrot.lane.b32.xlu1 %v11548_v59, %s10166_s14 }
0x1257   : > { %9119 = vrot.lane.b32.xlu0 %v11538_v51, %s10166_s14  ;;  %9124 = vrot.lane.b32.xlu1 %v11552_v53, %s10166_s14 }
0x125b   : > { %9129 = vrot.lane.b32.xlu0 %v11564_v27, %s10166_s14  ;;  %9134 = vrot.lane.b32.xlu1 %v11568_v57, %s10166_s14 }
0x125f   : > { %9139 = vrot.lane.b32.xlu0 %v11576_v52, %s10166_s14  ;;  %9144 = vrot.lane.b32.xlu1 %v11580_v42, %s10166_s14 }
0x1263   : > { %9149 = vrot.lane.b32.xlu0 %v11588_v62, %s10166_s14  ;;  %9154 = vrot.lane.b32.xlu1 %v11592_v47, %s10166_s14 }
0x1267   : > { %9159 = vrot.lane.b32.xlu0 %v11600_v1, %s10166_s14  ;;  %9164 = vrot.lane.b32.xlu1 %v11604_v3, %s10166_s14 }
0x126b   : > { %9169 = vrot.lane.b32.xlu0 %v11612_v4, %s10166_s14  ;;  %9174 = vrot.lane.b32.xlu1 %v11616_v6, %s10166_s14 }
0x126f   : > { %9179 = vrot.lane.b32.xlu0 %v11624_v10, %s10166_s14  ;;  %9184 = vrot.lane.b32.xlu1 %v11628_v12, %s10166_s14 }
0x1273   : > { %4093 = vrot.lane.b32.xlu0 %v11499_v63, %s10166_s14  ;;  %4231 = vrot.lane.b32.xlu1 %v11497_v56, %s10166_s14 }
0x12a5   : > { %v9030_v15 = vpop.permute.xlu0 %9029  ;;  %v9040_v17 = vpop.permute.xlu1 %9039 }
0x12a6   : > { %v9032_v20 = vunpack.i.h.bf16 %v9030_v15  ;;  %v9031_v23 = vunpack.i.l.bf16 %v9030_v15  ;;  %v9042_v31 = vunpack.i.h.bf16 %v9040_v17  ;;  %v9041_v19 = vunpack.i.l.bf16 %v9040_v17 }
0x12a8   : > { %v8368_v36 = vpack.c.bf16 %v9032_v20, %v9031_v23  ;;  %v8371_v48 = vpack.c.bf16 %v9042_v31, %v9041_v19 }
0x12a9   : > { %v9035_v54 = vpop.permute.xlu0 %9034  ;;  %v9045_v61 = vpop.permute.xlu1 %9044 }
0x12aa   : > { %v9037_v41 = vunpack.i.h.bf16 %v9035_v54  ;;  %v9036_v5 = vunpack.i.l.bf16 %v9035_v54  ;;  %8369 = vmatpush3.bf16.msra.mxu0 %v8368_v36  ;;  %v9047_v11 = vunpack.i.h.bf16 %v9045_v61  ;;  %v9046_v29 = vunpack.i.l.bf16 %v9045_v61 }
0x12ab   : > { %8370 = vmatprep.subr.bf16.mxu0 %v10171_v50 }
0x12ac   : > { %v8392_v35 = vpack.c.bf16 %v9037_v41, %v9036_v5  ;;  %v8395_v55 = vpack.c.bf16 %v9047_v11, %v9046_v29 }
0x12ad   : > { %v9050_v0 = vpop.permute.xlu0 %9049  ;;  %v9055_v13 = vpop.permute.xlu1 %9054 }
0x12ae   : > { %v9052_v26 = vunpack.i.h.bf16 %v9050_v0  ;;  %v9051_v8 = vunpack.i.l.bf16 %v9050_v0  ;;  %8372 = vmatpush3.bf16.msra.mxu0 %v8371_v48  ;;  %8393 = vmatpush3.bf16.msra.mxu1 %v8392_v35  ;;  %v9057_v14 = vunpack.i.h.bf16 %v9055_v13  ;;  %v9056_v38 = vunpack.i.l.bf16 %v9055_v13 }
0x12af   : > { %8373 = vmatprep.subr.bf16.mxu0 %v10171_v50  ;;  %8394 = vmatprep.subr.bf16.mxu1 %v10171_v50 }
0x12b0   : > { %v8374_v21 = vpack.c.bf16 %v9052_v26, %v9051_v8  ;;  %v8398_v30 = vpack.c.bf16 %v9057_v14, %v9056_v38 }
0x12b1   : > { %v9060_v32 = vpop.permute.xlu0 %9059  ;;  %v9065_v33 = vpop.permute.xlu1 %9064 }
0x12b2   : > { %v9062_v22 = vunpack.i.h.bf16 %v9060_v32  ;;  %v9061_v37 = vunpack.i.l.bf16 %v9060_v32  ;;  %8375 = vmatpush3.bf16.msra.mxu0 %v8374_v21  ;;  %8396 = vmatpush3.bf16.msra.mxu1 %v8395_v55  ;;  %v9067_v39 = vunpack.i.h.bf16 %v9065_v33  ;;  %v9066_v40 = vunpack.i.l.bf16 %v9065_v33 }
0x12b3   : > { %8376 = vmatprep.subr.bf16.mxu0 %v10171_v50  ;;  %8397 = vmatprep.subr.bf16.mxu1 %v10171_v50 }
0x12b4   : > { %v8377_v43 = vpack.c.bf16 %v9062_v22, %v9061_v37  ;;  %v8401_v25 = vpack.c.bf16 %v9067_v39, %v9066_v40 }
0x12b5   : > { %v9070_v60 = vpop.permute.xlu0 %9069  ;;  %v9075_v45 = vpop.permute.xlu1 %9074 }
0x12b6   : > { %v9072_v7 = vunpack.i.h.bf16 %v9070_v60  ;;  %v9071_v18 = vunpack.i.l.bf16 %v9070_v60  ;;  %8378 = vmatpush3.bf16.msra.mxu0 %v8377_v43  ;;  %8399 = vmatpush3.bf16.msra.mxu1 %v8398_v30  ;;  %v9077_v46 = vunpack.i.h.bf16 %v9075_v45  ;;  %v9076_v15 = vunpack.i.l.bf16 %v9075_v45 }
0x12b7   : > { %8379 = vmatprep.subr.bf16.mxu0 %v10171_v50  ;;  %8400 = vmatprep.subr.bf16.mxu1 %v10171_v50 }
0x12b8   : > { %v8380_v17 = vpack.c.bf16 %v9072_v7, %v9071_v18  ;;  %v8404_v20 = vpack.c.bf16 %v9077_v46, %v9076_v15 }
0x12b9   : > { %v9080_v23 = vpop.permute.xlu0 %9079  ;;  %v9085_v31 = vpop.permute.xlu1 %9084 }
0x12ba   : > { %v9082_v19 = vunpack.i.h.bf16 %v9080_v23  ;;  %v9081_v36 = vunpack.i.l.bf16 %v9080_v23  ;;  %8381 = vmatpush3.bf16.msra.mxu0 %v8380_v17  ;;  %8402 = vmatpush3.bf16.msra.mxu1 %v8401_v25  ;;  %v9087_v48 = vunpack.i.h.bf16 %v9085_v31  ;;  %v9086_v54 = vunpack.i.l.bf16 %v9085_v31 }
0x12bb   : > { %8382 = vmatprep.subr.bf16.mxu0 %v10171_v50  ;;  %8403 = vmatprep.subr.bf16.mxu1 %v10171_v50 }
0x12bc   : > { %v8383_v61 = vpack.c.bf16 %v9082_v19, %v9081_v36  ;;  %v8407_v41 = vpack.c.bf16 %v9087_v48, %v9086_v54 }
0x12bd   : > { %v9090_v5 = vpop.permute.xlu0 %9089  ;;  %v9095_v11 = vpop.permute.xlu1 %9094 }
0x12be   : > { %v9092_v29 = vunpack.i.h.bf16 %v9090_v5  ;;  %v9091_v35 = vunpack.i.l.bf16 %v9090_v5  ;;  %8384 = vmatpush3.bf16.msra.mxu0 %v8383_v61  ;;  %8405 = vmatpush3.bf16.msra.mxu1 %v8404_v20  ;;  %v9097_v55 = vunpack.i.h.bf16 %v9095_v11  ;;  %v9096_v0 = vunpack.i.l.bf16 %v9095_v11 }
0x12bf   : > { %8385 = vmatprep.subr.bf16.mxu0 %v10171_v50  ;;  %8406 = vmatprep.subr.bf16.mxu1 %v10171_v50 }
0x12c0   : > { %v8386_v13 = vpack.c.bf16 %v9092_v29, %v9091_v35  ;;  %v8410_v26 = vpack.c.bf16 %v9097_v55, %v9096_v0 }
0x12c1   : > { %v9100_v8 = vpop.permute.xlu0 %9099  ;;  %v9105_v14 = vpop.permute.xlu1 %9104 }
0x12c2   : > { %v9102_v38 = vunpack.i.h.bf16 %v9100_v8  ;;  %v9101_v21 = vunpack.i.l.bf16 %v9100_v8  ;;  %8387 = vmatpush3.bf16.msra.mxu0 %v8386_v13  ;;  %8408 = vmatpush3.bf16.msra.mxu1 %v8407_v41  ;;  %v9107_v30 = vunpack.i.h.bf16 %v9105_v14  ;;  %v9106_v32 = vunpack.i.l.bf16 %v9105_v14 }
0x12c3   : > { %8388 = vmatprep.subr.bf16.mxu0 %v10171_v50  ;;  %8409 = vmatprep.subr.bf16.mxu1 %v10171_v50 }
0x12c4   : > { %v8389_v33 = vpack.c.bf16 %v9102_v38, %v9101_v21  ;;  %v8413_v37 = vpack.c.bf16 %v9107_v30, %v9106_v32 }
0x12c5   : > { %v9110_v22 = vpop.permute.xlu0 %9109  ;;  %v9115_v43 = vpop.permute.xlu1 %9114 }
0x12c6   : > { %8390 = vmatpush3.bf16.msra.mxu0 %v8389_v33  ;;  %8411 = vmatpush3.bf16.msra.mxu1 %v8410_v26  ;;  %v9112_v39 = vunpack.i.h.bf16 %v9110_v22  ;;  %v9111_v40 = vunpack.i.l.bf16 %v9110_v22  ;;  %v9117_v60 = vunpack.i.h.bf16 %v9115_v43  ;;  %v9116_v45 = vunpack.i.l.bf16 %v9115_v43 }
0x12c7   : > { %8412 = vmatprep.subr.bf16.mxu1 %v10171_v50  ;;  %8415 = vmatprep.subr.bf16.mxu0 %v10171_v50 }
0x12c8   : > { %v8416_v25 = vpack.c.bf16 %v9112_v39, %v9111_v40  ;;  %v8448_v18 = vpack.c.bf16 %v9117_v60, %v9116_v45 }
0x12c9   : > { %7690 = vmatmul.mubr.f32.vlgmr.msra.gmra.mrb[18].mxu0 %v11519_v28  ;;  %v9120_v7 = vpop.permute.xlu0 %9119  ;;  %v9125_v15 = vpop.permute.xlu1 %9124 }
0x12ca   : > { %8414 = vmatpush3.bf16.msra.mxu1 %v8413_v37  ;;  %7759 = vmatprep.mubr.msk.f32.mxu0 %vm10163_vm2, %v10162_v9  ;;  %v9122_v28 = vunpack.i.h.bf16 %v9120_v7  ;;  %v9121_v46 = vunpack.i.l.bf16 %v9120_v7  ;;  %v9127_v20 = vunpack.i.h.bf16 %v9125_v15  ;;  %v9126_v23 = vunpack.i.l.bf16 %v9125_v15 }
0x12cb   : > { %8447 = vmatprep.subr.bf16.mxu1 %v10171_v50 }
0x12cc   : > { %v8420_v17 = vpack.c.bf16 %v9122_v28, %v9121_v46 }
0x12cd   : > { %7725 = vmatmul.mubr.f32.vlgmr.msra.gmra.mrb[58].mxu1 %v11517_v49  ;;  %v9130_v31 = vpop.permute.xlu0 %9129  ;;  %v8452_v49 = vpack.c.bf16 %v9127_v20, %v9126_v23  ;;  %v9135_v48 = vpop.permute.xlu1 %9134 }
0x12ce   : > { %7794 = vmatprep.mubr.msk.f32.mxu1 %vm10163_vm2, %v10162_v9  ;;  %v9132_v19 = vunpack.i.h.bf16 %v9130_v31  ;;  %v9131_v36 = vunpack.i.l.bf16 %v9130_v31  ;;  %v9137_v61 = vunpack.i.h.bf16 %v9135_v48  ;;  %v9136_v41 = vunpack.i.l.bf16 %v9135_v48 }
0x12cf   : > { %8418 = vmatpush3.bf16.xpose.msk.msra.mxu0 %vm11349_vm7, %v8416_v25 }
0x12d0   : > { %8419 = vmatprep.subr.bf16.mxu0 %v10171_v50  ;;  %v8424_v54 = vpack.c.bf16 %v9132_v19, %v9131_v36  ;;  %v8456_v11 = vpack.c.bf16 %v9137_v61, %v9136_v41 }
0x12d1   : > { %v9140_v5 = vpop.permute.xlu0 %9139  ;;  %v9145_v55 = vpop.permute.xlu1 %9144 }
0x12d2   : > { %v9142_v29 = vunpack.i.h.bf16 %v9140_v5  ;;  %v9141_v35 = vunpack.i.l.bf16 %v9140_v5  ;;  %v9147_v13 = vunpack.i.h.bf16 %v9145_v55  ;;  %v9146_v26 = vunpack.i.l.bf16 %v9145_v55 }
0x12d3   : > { %8450 = vmatpush3.bf16.xpose.msk.msra.mxu1 %vm11349_vm7, %v8448_v18 }
0x12d4   : > { %8451 = vmatprep.subr.bf16.mxu1 %v10171_v50  ;;  %v8428_v0 = vpack.c.bf16 %v9142_v29, %v9141_v35  ;;  %v8460_v14 = vpack.c.bf16 %v9147_v13, %v9146_v26 }
0x12d5   : > { %v9150_v8 = vpop.permute.xlu0 %9149  ;;  %v9155_v30 = vpop.permute.xlu1 %9154 }
0x12d6   : > { %v9152_v38 = vunpack.i.h.bf16 %v9150_v8  ;;  %v9151_v21 = vunpack.i.l.bf16 %v9150_v8  ;;  %v9157_v33 = vunpack.i.h.bf16 %v9155_v30  ;;  %v9156_v22 = vunpack.i.l.bf16 %v9155_v30 }
0x12d7   : > { %8422 = vmatpush3.bf16.xpose.msk.msra.mxu0 %vm11349_vm7, %v8420_v17 }
0x12d8   : > { %8423 = vmatprep.subr.bf16.mxu0 %v10171_v50  ;;  %v8432_v32 = vpack.c.bf16 %v9152_v38, %v9151_v21  ;;  %v8464_v39 = vpack.c.bf16 %v9157_v33, %v9156_v22 }
0x12d9   : > { %v9160_v37 = vpop.permute.xlu0 %9159  ;;  %v9165_v25 = vpop.permute.xlu1 %9164 }
0x12da   : > { %v9162_v40 = vunpack.i.h.bf16 %v9160_v37  ;;  %v9161_v43 = vunpack.i.l.bf16 %v9160_v37  ;;  %v9167_v45 = vunpack.i.h.bf16 %v9165_v25  ;;  %v9166_v7 = vunpack.i.l.bf16 %v9165_v25 }
0x12db   : > { %8454 = vmatpush3.bf16.xpose.msk.msra.mxu1 %vm11349_vm7, %v8452_v49 }
0x12dc   : > { %8455 = vmatprep.subr.bf16.mxu1 %v10171_v50  ;;  %v8436_v60 = vpack.c.bf16 %v9162_v40, %v9161_v43  ;;  %v8468_v28 = vpack.c.bf16 %v9167_v45, %v9166_v7 }
0x12dd   : > { %v9170_v18 = vpop.permute.xlu0 %9169  ;;  %v9175_v17 = vpop.permute.xlu1 %9174 }
0x12de   : > { %v9172_v46 = vunpack.i.h.bf16 %v9170_v18  ;;  %v9171_v15 = vunpack.i.l.bf16 %v9170_v18  ;;  %v9177_v23 = vunpack.i.h.bf16 %v9175_v17  ;;  %v9176_v31 = vunpack.i.l.bf16 %v9175_v17 }
0x12df   : > { %8426 = vmatpush3.bf16.xpose.msk.msra.mxu0 %vm11349_vm7, %v8424_v54 }
0x12e0   : > { %8427 = vmatprep.subr.bf16.mxu0 %v10171_v50  ;;  %v8440_v20 = vpack.c.bf16 %v9172_v46, %v9171_v15  ;;  %v8472_v19 = vpack.c.bf16 %v9177_v23, %v9176_v31 }
0x12e1   : > { %v9180_v49 = vpop.permute.xlu0 %9179  ;;  %v9185_v54 = vpop.permute.xlu1 %9184 }
0x12e2   : > { %v9182_v36 = vunpack.i.h.bf16 %v9180_v49  ;;  %v9181_v48 = vunpack.i.l.bf16 %v9180_v49  ;;  %v9187_v41 = vunpack.i.h.bf16 %v9185_v54  ;;  %v9186_v5 = vunpack.i.l.bf16 %v9185_v54 }
0x12e3   : > { %8458 = vmatpush3.bf16.xpose.msk.msra.mxu1 %vm11349_vm7, %v8456_v11 }
0x12e4   : > { %8459 = vmatprep.subr.bf16.mxu1 %v10171_v50  ;;  %v8444_v61 = vpack.c.bf16 %v9182_v36, %v9181_v48  ;;  %v8476_v11 = vpack.c.bf16 %v9187_v41, %v9186_v5 }
0x12e5   : > { %v4094_v29 = vpop.permute.xlu0 %4093  ;;  %v4232_v35 = vpop.permute.xlu1 %4231 }
0x12e7   : > { %8430 = vmatpush3.bf16.xpose.msk.msra.mxu0 %vm11349_vm7, %v8428_v0 }
0x12e8   : > { %8431 = vmatprep.subr.bf16.mxu0 %v10171_v50 }
0x12eb   : > { %8462 = vmatpush3.bf16.xpose.msk.msra.mxu1 %vm11349_vm7, %v8460_v14 }
0x12ec   : > { %8463 = vmatprep.subr.bf16.mxu1 %v10171_v50 }
0x12ef   : > { %8434 = vmatpush3.bf16.xpose.msk.msra.mxu0 %vm11349_vm7, %v8432_v32 }
0x12f0   : > { %8435 = vmatprep.subr.bf16.mxu0 %v10171_v50 }
0x12f3   : > { %8466 = vmatpush3.bf16.xpose.msk.msra.mxu1 %vm11349_vm7, %v8464_v39 }
0x12f4   : > { %8467 = vmatprep.subr.bf16.mxu1 %v10171_v50 }
0x12f7   : > { %8438 = vmatpush3.bf16.xpose.msk.msra.mxu0 %vm11349_vm7, %v8436_v60 }
0x12f8   : > { %8439 = vmatprep.subr.bf16.mxu0 %v10171_v50 }
0x12fb   : > { %8470 = vmatpush3.bf16.xpose.msk.msra.mxu1 %vm11349_vm7, %v8468_v28 }
0x12fc   : > { %8471 = vmatprep.subr.bf16.mxu1 %v10171_v50 }
0x12ff   : > { %8442 = vmatpush3.bf16.xpose.msk.msra.mxu0 %vm11349_vm7, %v8440_v20 }
0x1300   : > { %8443 = vmatprep.subr.bf16.mxu0 %v10171_v50 }
0x1303   : > { %8474 = vmatpush3.bf16.xpose.msk.msra.mxu1 %vm11349_vm7, %v8472_v19 }
0x1304   : > { %8475 = vmatprep.subr.bf16.mxu1 %v10171_v50 }
0x1307   : > { %8446 = vmatpush3.bf16.xpose.msk.msra.mxu0 %vm11349_vm7, %v8444_v61 }
0x130b   : > { %8478 = vmatpush3.bf16.xpose.msk.msra.mxu1 %vm11349_vm7, %v8476_v11 }
0x130e   : > { %7760 = vmatmul.mubr.msk.f32.vlgmr.msra.gmra.mrb[20].mxu0 %vm1620_vm3, %v4094_v29 }
0x1312   : > { %7795 = vmatmul.mubr.msk.f32.vlgmr.msra.gmra.mrb[60].mxu1 %vm1620_vm3, %v4232_v35 }
0x139c   : > { %v11740_v55 = vpop.f32.mrb[18].mxu0 }
0x139d   : > { %v7691_v0 = vpop.f32.mrb[19].mxu0 }
0x13a0   : > { %v11742_v13 = vpop.f32.mrb[58].mxu1 }
0x13a1   : > { %v7726_v26 = vpop.f32.mrb[59].mxu1 }
0x13e1   : > { %v4227_v8 = vpop.f32.mrb[20].mxu0 }
0x13e2   : > { %v4369_v14 = vmul.f32 0.25, %v4227_v8  ;;  %v7761_v38 = vpop.f32.mrb[21].mxu0 }
0x13e4   : > { %v4371_v21 = vadd.f32 %v4369_v14, %v11513_v16 }
0x13e5   : > { %v4365_v30 = vpop.f32.mrb[60].mxu1 }
0x13e6   : > { %v4370_v32 = vmul.f32 0.25, %v4365_v30  ;;  %v7796_v33 = vpop.f32.mrb[61].mxu1  ;;  %4373 = vmax.xlane.f32.xlu0 %v4371_v21 }
0x13e8   : > { %v4372_v22 = vadd.f32 %v4370_v32, %v11508_v2 }
0x13ea   : > { %4375 = vmax.xlane.f32.xlu1 %v4372_v22 }
0x1473   : > { %v4374_v37 = vpop.xlane.xlu0 %4373 }
0x1474   : > { %v4377_v39 = vsub.f32 %v4371_v21, %v4374_v37 }
0x1476   : > { %v4379_v40 = vmul.f32 1.442695, %v4377_v39 }
0x1477   : > { %v4376_v43 = vpop.xlane.xlu1 %4375 }
0x1478   : > { %9188 = vpow2.f32 %v4379_v40  ;;  %v4378_v25 = vsub.f32 %v4372_v22, %v4376_v43 }
0x147a   : > { %v4381_v60 = vmul.f32 1.442695, %v4378_v25 }
0x147c   : > { %9190 = vpow2.f32 %v4381_v60 }
0x1482   : > { %v9189_v45 = vpop.eup %9188 }
0x1483   : > { %4383 = vadd.xlane.f32.xlu0 %v9189_v45 }
0x1486   : > { %v9191_v7 = vpop.eup %9190 }
0x1487   : > { %4385 = vadd.xlane.f32.xlu0 %v9191_v7 }
0x1510   : > { %v4384_v18 = vpop.xlane.xlu0 %4383 }
0x1511   : > { %9192 = vrcp.f32 %v4384_v18 }
0x1514   : > { %v4386_v28 = vpop.xlane.xlu0 %4385 }
0x1515   : > { %9194 = vrcp.f32 %v4386_v28 }
0x151a   : > { %4393 = sbr.rel (%p6852_p1) target bundleno = 5411 (0x1523), region = 192 }
0x151b   : > { %v9193_v46 = vpop.eup %9192 }
0x151c   : > { %v11746_v15 = vmul.f32 %v9193_v46, %v9189_v45 }
0x151e   : > { %6888 = vst [vmem:[%s12448_s8 + $0x10] sm:$0xff] (!%p6852_p1), %v11746_v15 }
0x151f   : > { %v9195_v17 = vpop.eup %9194 }
0x1520   : > { %v11748_v20 = vmul.f32 %v9195_v17, %v9191_v7 }
0x1522   : > { %6889 = vst [vmem:[%s12448_s8 + $0x18] sm:$0xff] %v11748_v20 }
0x1523 PF: > { %8479 = vmatprep.subr.bf16.mxu0 %v10171_v50  ;;  %8503 = vmatprep.subr.bf16.mxu1 %v10171_v50  ;;  %s12449_s26 = sld [smem:[#allocation65_spill]] (!%p6852_p1) }
0x1524   : > { %9197 = vrot.lane.b32.xlu0 %v11534_v58, %s10165_s6  ;;  %9207 = vrot.lane.b32.xlu1 %v11538_v51, %s10165_s6 }
0x1525   : > { %7829 = vmatprep.mubr.msk.f32.mxu0 %vm10163_vm2, %v10162_v9  ;;  %7864 = vmatprep.mubr.msk.f32.mxu1 %vm10163_vm2, %v10162_v9 }
0x1528   : > { %9202 = vrot.lane.b32.xlu0 %v11548_v59, %s10165_s6  ;;  %9212 = vrot.lane.b32.xlu1 %v11552_v53, %s10165_s6 }
0x152c   : > { %9217 = vrot.lane.b32.xlu0 %v11564_v27, %s10165_s6  ;;  %9222 = vrot.lane.b32.xlu1 %v11568_v57, %s10165_s6 }
0x1530   : > { %9227 = vrot.lane.b32.xlu0 %v11576_v52, %s10165_s6  ;;  %9232 = vrot.lane.b32.xlu1 %v11580_v42, %s10165_s6 }
0x1534   : > { %9237 = vrot.lane.b32.xlu0 %v11588_v62, %s10165_s6  ;;  %9242 = vrot.lane.b32.xlu1 %v11592_v47, %s10165_s6 }
0x1538   : > { %9247 = vrot.lane.b32.xlu0 %v11600_v1, %s10165_s6  ;;  %9252 = vrot.lane.b32.xlu1 %v11604_v3, %s10165_s6 }
0x153c   : > { %9257 = vrot.lane.b32.xlu0 %v11612_v4, %s10165_s6  ;;  %9262 = vrot.lane.b32.xlu1 %v11616_v6, %s10165_s6 }
0x1540   : > { %9267 = vrot.lane.b32.xlu0 %v11624_v10, %s10165_s6  ;;  %9272 = vrot.lane.b32.xlu1 %v11628_v12, %s10165_s6 }
0x1544   : > { %9277 = vrot.lane.b32.xlu0 %v11534_v58, %s10168_s11  ;;  %9282 = vrot.lane.b32.xlu1 %v11548_v59, %s10168_s11 }
0x1548   : > { %9287 = vrot.lane.b32.xlu0 %v11538_v51, %s10168_s11  ;;  %9292 = vrot.lane.b32.xlu1 %v11552_v53, %s10168_s11 }
0x154c   : > { %9297 = vrot.lane.b32.xlu0 %v11564_v27, %s10168_s11  ;;  %9302 = vrot.lane.b32.xlu1 %v11568_v57, %s10168_s11 }
0x1550   : > { %9307 = vrot.lane.b32.xlu0 %v11576_v52, %s10168_s11  ;;  %9312 = vrot.lane.b32.xlu1 %v11580_v42, %s10168_s11 }
0x1554   : > { %9317 = vrot.lane.b32.xlu0 %v11588_v62, %s10168_s11  ;;  %9322 = vrot.lane.b32.xlu1 %v11592_v47, %s10168_s11 }
0x1558   : > { %9327 = vrot.lane.b32.xlu0 %v11600_v1, %s10168_s11  ;;  %9332 = vrot.lane.b32.xlu1 %v11604_v3, %s10168_s11 }
0x155c   : > { %9337 = vrot.lane.b32.xlu0 %v11612_v4, %s10168_s11  ;;  %9342 = vrot.lane.b32.xlu1 %v11616_v6, %s10168_s11 }
0x1560   : > { %9347 = vrot.lane.b32.xlu0 %v11624_v10, %s10168_s11  ;;  %9352 = vrot.lane.b32.xlu1 %v11628_v12, %s10168_s11 }
0x1564   : > { %4633 = vrot.lane.b32.xlu0 %v11499_v63, %s10168_s11  ;;  %4771 = vrot.lane.b32.xlu1 %v11497_v56, %s10168_s11 }
0x1596   : > { %v9198_v23 = vpop.permute.xlu0 %9197  ;;  %v9208_v31 = vpop.permute.xlu1 %9207 }
0x1597   : > { %v9200_v49 = vunpack.i.h.bf16 %v9198_v23  ;;  %v9199_v19 = vunpack.i.l.bf16 %v9198_v23  ;;  %v9210_v36 = vunpack.i.h.bf16 %v9208_v31  ;;  %v9209_v48 = vunpack.i.l.bf16 %v9208_v31 }
0x1599   : > { %v8480_v54 = vpack.c.bf16 %v9200_v49, %v9199_v19  ;;  %v8483_v61 = vpack.c.bf16 %v9210_v36, %v9209_v48 }
0x159a   : > { %v9203_v41 = vpop.permute.xlu0 %9202  ;;  %v9213_v5 = vpop.permute.xlu1 %9212 }
0x159b   : > { %v9205_v11 = vunpack.i.h.bf16 %v9203_v41  ;;  %v9204_v29 = vunpack.i.l.bf16 %v9203_v41  ;;  %8481 = vmatpush3.bf16.msra.mxu0 %v8480_v54  ;;  %v9215_v35 = vunpack.i.h.bf16 %v9213_v5  ;;  %v9214_v0 = vunpack.i.l.bf16 %v9213_v5 }
0x159c   : > { %8482 = vmatprep.subr.bf16.mxu0 %v10171_v50 }
0x159d   : > { %v8504_v26 = vpack.c.bf16 %v9205_v11, %v9204_v29  ;;  %v8507_v8 = vpack.c.bf16 %v9215_v35, %v9214_v0 }
0x159e   : > { %v9218_v14 = vpop.permute.xlu0 %9217  ;;  %v9223_v38 = vpop.permute.xlu1 %9222 }
0x159f   : > { %v9220_v21 = vunpack.i.h.bf16 %v9218_v14  ;;  %v9219_v30 = vunpack.i.l.bf16 %v9218_v14  ;;  %8484 = vmatpush3.bf16.msra.mxu0 %v8483_v61  ;;  %8505 = vmatpush3.bf16.msra.mxu1 %v8504_v26  ;;  %v9225_v32 = vunpack.i.h.bf16 %v9223_v38  ;;  %v9224_v33 = vunpack.i.l.bf16 %v9223_v38 }
0x15a0   : > { %8485 = vmatprep.subr.bf16.mxu0 %v10171_v50  ;;  %8506 = vmatprep.subr.bf16.mxu1 %v10171_v50 }
0x15a1   : > { %v8486_v22 = vpack.c.bf16 %v9220_v21, %v9219_v30  ;;  %v8510_v37 = vpack.c.bf16 %v9225_v32, %v9224_v33 }
0x15a2   : > { %v9228_v39 = vpop.permute.xlu0 %9227  ;;  %v9233_v40 = vpop.permute.xlu1 %9232 }
0x15a3   : > { %v9230_v43 = vunpack.i.h.bf16 %v9228_v39  ;;  %v9229_v25 = vunpack.i.l.bf16 %v9228_v39  ;;  %8487 = vmatpush3.bf16.msra.mxu0 %v8486_v22  ;;  %8508 = vmatpush3.bf16.msra.mxu1 %v8507_v8  ;;  %v9235_v60 = vunpack.i.h.bf16 %v9233_v40  ;;  %v9234_v45 = vunpack.i.l.bf16 %v9233_v40 }
0x15a4   : > { %8488 = vmatprep.subr.bf16.mxu0 %v10171_v50  ;;  %8509 = vmatprep.subr.bf16.mxu1 %v10171_v50 }
0x15a5   : > { %v8489_v7 = vpack.c.bf16 %v9230_v43, %v9229_v25  ;;  %v8513_v18 = vpack.c.bf16 %v9235_v60, %v9234_v45 }
0x15a6   : > { %v9238_v28 = vpop.permute.xlu0 %9237  ;;  %v9243_v46 = vpop.permute.xlu1 %9242 }
0x15a7   : > { %v9240_v17 = vunpack.i.h.bf16 %v9238_v28  ;;  %v9239_v23 = vunpack.i.l.bf16 %v9238_v28  ;;  %8490 = vmatpush3.bf16.msra.mxu0 %v8489_v7  ;;  %8511 = vmatpush3.bf16.msra.mxu1 %v8510_v37  ;;  %v9245_v31 = vunpack.i.h.bf16 %v9243_v46  ;;  %v9244_v49 = vunpack.i.l.bf16 %v9243_v46 }
0x15a8   : > { %8491 = vmatprep.subr.bf16.mxu0 %v10171_v50  ;;  %8512 = vmatprep.subr.bf16.mxu1 %v10171_v50 }
0x15a9   : > { %v8492_v19 = vpack.c.bf16 %v9240_v17, %v9239_v23  ;;  %v8516_v36 = vpack.c.bf16 %v9245_v31, %v9244_v49 }
0x15aa   : > { %v9248_v48 = vpop.permute.xlu0 %9247  ;;  %v9253_v54 = vpop.permute.xlu1 %9252 }
0x15ab   : > { %v9250_v61 = vunpack.i.h.bf16 %v9248_v48  ;;  %v9249_v41 = vunpack.i.l.bf16 %v9248_v48  ;;  %8493 = vmatpush3.bf16.msra.mxu0 %v8492_v19  ;;  %8514 = vmatpush3.bf16.msra.mxu1 %v8513_v18  ;;  %v9255_v5 = vunpack.i.h.bf16 %v9253_v54  ;;  %v9254_v11 = vunpack.i.l.bf16 %v9253_v54 }
0x15ac   : > { %8494 = vmatprep.subr.bf16.mxu0 %v10171_v50  ;;  %8515 = vmatprep.subr.bf16.mxu1 %v10171_v50 }
0x15ad   : > { %v8495_v29 = vpack.c.bf16 %v9250_v61, %v9249_v41  ;;  %v8519_v35 = vpack.c.bf16 %v9255_v5, %v9254_v11 }
0x15ae   : > { %v9258_v0 = vpop.permute.xlu0 %9257  ;;  %v9263_v26 = vpop.permute.xlu1 %9262 }
0x15af   : > { %v9260_v8 = vunpack.i.h.bf16 %v9258_v0  ;;  %v9259_v14 = vunpack.i.l.bf16 %v9258_v0  ;;  %8496 = vmatpush3.bf16.msra.mxu0 %v8495_v29  ;;  %8517 = vmatpush3.bf16.msra.mxu1 %v8516_v36  ;;  %v9265_v38 = vunpack.i.h.bf16 %v9263_v26  ;;  %v9264_v21 = vunpack.i.l.bf16 %v9263_v26 }
0x15b0   : > { %8497 = vmatprep.subr.bf16.mxu0 %v10171_v50  ;;  %8518 = vmatprep.subr.bf16.mxu1 %v10171_v50 }
0x15b1   : > { %v8498_v30 = vpack.c.bf16 %v9260_v8, %v9259_v14  ;;  %v8522_v32 = vpack.c.bf16 %v9265_v38, %v9264_v21 }
0x15b2   : > { %v9268_v33 = vpop.permute.xlu0 %9267  ;;  %v9273_v22 = vpop.permute.xlu1 %9272 }
0x15b3   : > { %v9270_v37 = vunpack.i.h.bf16 %v9268_v33  ;;  %v9269_v39 = vunpack.i.l.bf16 %v9268_v33  ;;  %8499 = vmatpush3.bf16.msra.mxu0 %v8498_v30  ;;  %8520 = vmatpush3.bf16.msra.mxu1 %v8519_v35  ;;  %v9275_v40 = vunpack.i.h.bf16 %v9273_v22  ;;  %v9274_v43 = vunpack.i.l.bf16 %v9273_v22 }
0x15b4   : > { %8500 = vmatprep.subr.bf16.mxu0 %v10171_v50  ;;  %8521 = vmatprep.subr.bf16.mxu1 %v10171_v50 }
0x15b5   : > { %v8501_v25 = vpack.c.bf16 %v9270_v37, %v9269_v39  ;;  %v8525_v45 = vpack.c.bf16 %v9275_v40, %v9274_v43 }
0x15b6   : > { %v9278_v60 = vpop.permute.xlu0 %9277  ;;  %v9283_v28 = vpop.permute.xlu1 %9282 }
0x15b7   : > { %8502 = vmatpush3.bf16.msra.mxu0 %v8501_v25  ;;  %8523 = vmatpush3.bf16.msra.mxu1 %v8522_v32  ;;  %v9280_v7 = vunpack.i.h.bf16 %v9278_v60  ;;  %v9279_v18 = vunpack.i.l.bf16 %v9278_v60  ;;  %v9285_v17 = vunpack.i.h.bf16 %v9283_v28  ;;  %v9284_v23 = vunpack.i.l.bf16 %v9283_v28 }
0x15b8   : > { %8524 = vmatprep.subr.bf16.mxu1 %v10171_v50  ;;  %8527 = vmatprep.subr.bf16.mxu0 %v10171_v50 }
0x15b9   : > { %v8528_v46 = vpack.c.bf16 %v9280_v7, %v9279_v18  ;;  %v8560_v49 = vpack.c.bf16 %v9285_v17, %v9284_v23 }
0x15ba   : > { %7830 = vmatmul.mubr.f32.vlgmr.msra.gmra.mrb[22].mxu0 %v11746_v15  ;;  %v9288_v31 = vpop.permute.xlu0 %9287  ;;  %v9293_v36 = vpop.permute.xlu1 %9292 }
0x15bb   : > { %8526 = vmatpush3.bf16.msra.mxu1 %v8525_v45  ;;  %7899 = vmatprep.mubr.msk.f32.mxu0 %vm10163_vm2, %v10162_v9  ;;  %v9290_v15 = vunpack.i.h.bf16 %v9288_v31  ;;  %v9289_v19 = vunpack.i.l.bf16 %v9288_v31  ;;  %v9295_v54 = vunpack.i.h.bf16 %v9293_v36  ;;  %v9294_v61 = vunpack.i.l.bf16 %v9293_v36 }
0x15bc   : > { %8559 = vmatprep.subr.bf16.mxu1 %v10171_v50 }
0x15bd   : > { %v8532_v48 = vpack.c.bf16 %v9290_v15, %v9289_v19 }
0x15be   : > { %7865 = vmatmul.mubr.f32.vlgmr.msra.gmra.mrb[62].mxu1 %v11748_v20  ;;  %v9298_v41 = vpop.permute.xlu0 %9297  ;;  %v8564_v20 = vpack.c.bf16 %v9295_v54, %v9294_v61  ;;  %v9303_v29 = vpop.permute.xlu1 %9302 }
0x15bf   : > { %7934 = vmatprep.mubr.msk.f32.mxu1 %vm10163_vm2, %v10162_v9  ;;  %v9300_v5 = vunpack.i.h.bf16 %v9298_v41  ;;  %v9299_v11 = vunpack.i.l.bf16 %v9298_v41  ;;  %v9305_v0 = vunpack.i.h.bf16 %v9303_v29  ;;  %v9304_v26 = vunpack.i.l.bf16 %v9303_v29 }
0x15c0   : > { %8530 = vmatpush3.bf16.xpose.msk.msra.mxu0 %vm11349_vm7, %v8528_v46 }
0x15c1   : > { %8531 = vmatprep.subr.bf16.mxu0 %v10171_v50  ;;  %v8536_v35 = vpack.c.bf16 %v9300_v5, %v9299_v11  ;;  %v8568_v14 = vpack.c.bf16 %v9305_v0, %v9304_v26 }
0x15c2   : > { %v9308_v8 = vpop.permute.xlu0 %9307  ;;  %v9313_v30 = vpop.permute.xlu1 %9312 }
0x15c3   : > { %v9310_v38 = vunpack.i.h.bf16 %v9308_v8  ;;  %v9309_v21 = vunpack.i.l.bf16 %v9308_v8  ;;  %v9315_v33 = vunpack.i.h.bf16 %v9313_v30  ;;  %v9314_v22 = vunpack.i.l.bf16 %v9313_v30 }
0x15c4   : > { %8562 = vmatpush3.bf16.xpose.msk.msra.mxu1 %vm11349_vm7, %v8560_v49 }
0x15c5   : > { %8563 = vmatprep.subr.bf16.mxu1 %v10171_v50  ;;  %v8540_v32 = vpack.c.bf16 %v9310_v38, %v9309_v21  ;;  %v8572_v39 = vpack.c.bf16 %v9315_v33, %v9314_v22 }
0x15c6   : > { %v9318_v37 = vpop.permute.xlu0 %9317  ;;  %v9323_v25 = vpop.permute.xlu1 %9322 }
0x15c7   : > { %v9320_v40 = vunpack.i.h.bf16 %v9318_v37  ;;  %v9319_v43 = vunpack.i.l.bf16 %v9318_v37  ;;  %v9325_v45 = vunpack.i.h.bf16 %v9323_v25  ;;  %v9324_v7 = vunpack.i.l.bf16 %v9323_v25 }
0x15c8   : > { %8534 = vmatpush3.bf16.xpose.msk.msra.mxu0 %vm11349_vm7, %v8532_v48 }
0x15c9   : > { %8535 = vmatprep.subr.bf16.mxu0 %v10171_v50  ;;  %v8544_v60 = vpack.c.bf16 %v9320_v40, %v9319_v43  ;;  %v8576_v28 = vpack.c.bf16 %v9325_v45, %v9324_v7 }
0x15ca   : > { %v9328_v18 = vpop.permute.xlu0 %9327  ;;  %v9333_v23 = vpop.permute.xlu1 %9332 }
0x15cb   : > { %v9330_v46 = vunpack.i.h.bf16 %v9328_v18  ;;  %v9329_v17 = vunpack.i.l.bf16 %v9328_v18  ;;  %v9335_v49 = vunpack.i.h.bf16 %v9333_v23  ;;  %v9334_v15 = vunpack.i.l.bf16 %v9333_v23 }
0x15cc   : > { %8566 = vmatpush3.bf16.xpose.msk.msra.mxu1 %vm11349_vm7, %v8564_v20 }
0x15cd   : > { %8567 = vmatprep.subr.bf16.mxu1 %v10171_v50  ;;  %v8548_v31 = vpack.c.bf16 %v9330_v46, %v9329_v17  ;;  %v8580_v36 = vpack.c.bf16 %v9335_v49, %v9334_v15 }
0x15ce   : > { %v9338_v19 = vpop.permute.xlu0 %9337  ;;  %v9343_v61 = vpop.permute.xlu1 %9342 }
0x15cf   : > { %v9340_v48 = vunpack.i.h.bf16 %v9338_v19  ;;  %v9339_v54 = vunpack.i.l.bf16 %v9338_v19  ;;  %v9345_v20 = vunpack.i.h.bf16 %v9343_v61  ;;  %v9344_v5 = vunpack.i.l.bf16 %v9343_v61 }
0x15d0   : > { %8538 = vmatpush3.bf16.xpose.msk.msra.mxu0 %vm11349_vm7, %v8536_v35 }
0x15d1   : > { %8539 = vmatprep.subr.bf16.mxu0 %v10171_v50  ;;  %v8552_v41 = vpack.c.bf16 %v9340_v48, %v9339_v54  ;;  %v8584_v29 = vpack.c.bf16 %v9345_v20, %v9344_v5 }
0x15d2   : > { %v9348_v11 = vpop.permute.xlu0 %9347  ;;  %v9353_v26 = vpop.permute.xlu1 %9352 }
0x15d3   : > { %v9350_v35 = vunpack.i.h.bf16 %v9348_v11  ;;  %v9349_v0 = vunpack.i.l.bf16 %v9348_v11  ;;  %v9354_v38 = vunpack.i.l.bf16 %v9353_v26 }
0x15d4   : > { %8570 = vmatpush3.bf16.xpose.msk.msra.mxu1 %vm11349_vm7, %v8568_v14  ;;  %v9355_v14 = vunpack.i.h.bf16 %v9353_v26 }
0x15d5   : > { %8571 = vmatprep.subr.bf16.mxu1 %v10171_v50  ;;  %v8556_v8 = vpack.c.bf16 %v9350_v35, %v9349_v0 }
0x15d6   : > { %v8588_v21 = vpack.c.bf16 %v9355_v14, %v9354_v38  ;;  %v4634_v30 = vpop.permute.xlu0 %4633 }
0x15d8   : > { %8542 = vmatpush3.bf16.xpose.msk.msra.mxu0 %vm11349_vm7, %v8540_v32  ;;  %v4772_v32 = vpop.permute.xlu1 %4771 }
0x15d9   : > { %8543 = vmatprep.subr.bf16.mxu0 %v10171_v50 }
0x15dc   : > { %8574 = vmatpush3.bf16.xpose.msk.msra.mxu1 %vm11349_vm7, %v8572_v39 }
0x15dd   : > { %8575 = vmatprep.subr.bf16.mxu1 %v10171_v50 }
0x15e0   : > { %8546 = vmatpush3.bf16.xpose.msk.msra.mxu0 %vm11349_vm7, %v8544_v60 }
0x15e1   : > { %8547 = vmatprep.subr.bf16.mxu0 %v10171_v50 }
0x15e4   : > { %8578 = vmatpush3.bf16.xpose.msk.msra.mxu1 %vm11349_vm7, %v8576_v28 }
0x15e5   : > { %8579 = vmatprep.subr.bf16.mxu1 %v10171_v50 }
0x15e8   : > { %8550 = vmatpush3.bf16.xpose.msk.msra.mxu0 %vm11349_vm7, %v8548_v31 }
0x15e9   : > { %8551 = vmatprep.subr.bf16.mxu0 %v10171_v50 }
0x15ec   : > { %8582 = vmatpush3.bf16.xpose.msk.msra.mxu1 %vm11349_vm7, %v8580_v36 }
0x15ed   : > { %8583 = vmatprep.subr.bf16.mxu1 %v10171_v50 }
0x15f0   : > { %8554 = vmatpush3.bf16.xpose.msk.msra.mxu0 %vm11349_vm7, %v8552_v41 }
0x15f1   : > { %8555 = vmatprep.subr.bf16.mxu0 %v10171_v50 }
0x15f4   : > { %8586 = vmatpush3.bf16.xpose.msk.msra.mxu1 %vm11349_vm7, %v8584_v29 }
0x15f5   : > { %8587 = vmatprep.subr.bf16.mxu1 %v10171_v50 }
0x15f8   : > { %8558 = vmatpush3.bf16.xpose.msk.msra.mxu0 %vm11349_vm7, %v8556_v8 }
0x15fc   : > { %8590 = vmatpush3.bf16.xpose.msk.msra.mxu1 %vm11349_vm7, %v8588_v21 }
0x15ff   : > { %7900 = vmatmul.mubr.msk.f32.vlgmr.msra.gmra.mrb[24].mxu0 %vm1620_vm3, %v4634_v30 }
0x1603   : > { %7935 = vmatmul.mubr.msk.f32.vlgmr.msra.gmra.mrb[64].mxu1 %vm1620_vm3, %v4772_v32 }
0x168d   : > { %v11904_v33 = vpop.f32.mrb[22].mxu0 }
0x168e   : > { %v7831_v22 = vpop.f32.mrb[23].mxu0 }
0x1691   : > { %v11906_v37 = vpop.f32.mrb[62].mxu1 }
0x1692   : > { %v7866_v39 = vpop.f32.mrb[63].mxu1 }
0x16d2   : > { %v4767_v40 = vpop.f32.mrb[24].mxu0 }
0x16d3   : > { %v4909_v43 = vmul.f32 0.25, %v4767_v40  ;;  %v7901_v25 = vpop.f32.mrb[25].mxu0 }
0x16d5   : > { %v4911_v60 = vadd.f32 %v4909_v43, %v11513_v16 }
0x16d6   : > { %v4905_v45 = vpop.f32.mrb[64].mxu1 }
0x16d7   : > { %v4910_v7 = vmul.f32 0.25, %v4905_v45  ;;  %v7936_v18 = vpop.f32.mrb[65].mxu1  ;;  %4913 = vmax.xlane.f32.xlu0 %v4911_v60 }
0x16d9   : > { %v4912_v28 = vadd.f32 %v4910_v7, %v11508_v2 }
0x16db   : > { %4915 = vmax.xlane.f32.xlu1 %v4912_v28 }
0x1764   : > { %v4914_v46 = vpop.xlane.xlu0 %4913 }
0x1765   : > { %v4917_v17 = vsub.f32 %v4911_v60, %v4914_v46 }
0x1767   : > { %v4919_v23 = vmul.f32 1.442695, %v4917_v17 }
0x1768   : > { %v4916_v31 = vpop.xlane.xlu1 %4915 }
0x1769   : > { %9356 = vpow2.f32 %v4919_v23  ;;  %v4918_v49 = vsub.f32 %v4912_v28, %v4916_v31 }
0x176b   : > { %v4921_v15 = vmul.f32 1.442695, %v4918_v49 }
0x176d   : > { %9358 = vpow2.f32 %v4921_v15 }
0x1773   : > { %v9357_v19 = vpop.eup %9356 }
0x1774   : > { %4923 = vadd.xlane.f32.xlu0 %v9357_v19 }
0x1777   : > { %v9359_v36 = vpop.eup %9358 }
0x1778   : > { %4925 = vadd.xlane.f32.xlu0 %v9359_v36 }
0x1801   : > { %v4924_v48 = vpop.xlane.xlu0 %4923 }
0x1802   : > { %9360 = vrcp.f32 %v4924_v48 }
0x1805   : > { %v4926_v54 = vpop.xlane.xlu0 %4925 }
0x1806   : > { %9362 = vrcp.f32 %v4926_v54 }
0x180b   : > { %4933 = sbr.rel (%p6852_p1) target bundleno = 6164 (0x1814), region = 196 }
0x180c   : > { %v9361_v61 = vpop.eup %9360 }
0x180d   : > { %v11910_v41 = vmul.f32 %v9361_v61, %v9357_v19 }
0x180f   : > { %6925 = vst [vmem:[%s12449_s26 + $0x20] sm:$0xff] (!%p6852_p1), %v11910_v41 }
0x1810   : > { %v9363_v20 = vpop.eup %9362 }
0x1811   : > { %v11912_v5 = vmul.f32 %v9363_v20, %v9359_v36 }
0x1813   : > { %6926 = vst [vmem:[%s12449_s26 + $0x28] sm:$0xff] %v11912_v5 }
0x1814 PF: > { %8591 = vmatprep.subr.bf16.mxu0 %v10171_v50  ;;  %8615 = vmatprep.subr.bf16.mxu1 %v10171_v50  ;;  %s12450_s17 = sld [smem:[#allocation65_spill]] (!%p6852_p1) }
0x1815   : > { %9365 = vrot.lane.b32.xlu0 %v11534_v58, %s10167_s28  ;;  %9375 = vrot.lane.b32.xlu1 %v11538_v51, %s10167_s28 }
0x1816   : > { %7969 = vmatprep.mubr.msk.f32.mxu0 %vm10163_vm2, %v10162_v9  ;;  %8004 = vmatprep.mubr.msk.f32.mxu1 %vm10163_vm2, %v10162_v9 }
0x1819   : > { %9370 = vrot.lane.b32.xlu0 %v11548_v59, %s10167_s28  ;;  %9380 = vrot.lane.b32.xlu1 %v11552_v53, %s10167_s28 }
0x181d   : > { %9385 = vrot.lane.b32.xlu0 %v11564_v27, %s10167_s28  ;;  %9390 = vrot.lane.b32.xlu1 %v11568_v57, %s10167_s28 }
0x1821   : > { %9395 = vrot.lane.b32.xlu0 %v11576_v52, %s10167_s28  ;;  %9400 = vrot.lane.b32.xlu1 %v11580_v42, %s10167_s28 }
0x1825   : > { %9405 = vrot.lane.b32.xlu0 %v11588_v62, %s10167_s28  ;;  %9410 = vrot.lane.b32.xlu1 %v11592_v47, %s10167_s28 }
0x1829   : > { %9415 = vrot.lane.b32.xlu0 %v11600_v1, %s10167_s28  ;;  %9420 = vrot.lane.b32.xlu1 %v11604_v3, %s10167_s28 }
0x182d   : > { %9425 = vrot.lane.b32.xlu0 %v11612_v4, %s10167_s28  ;;  %9430 = vrot.lane.b32.xlu1 %v11616_v6, %s10167_s28 }
0x1831   : > { %9435 = vrot.lane.b32.xlu0 %v11624_v10, %s10167_s28  ;;  %9440 = vrot.lane.b32.xlu1 %v11628_v12, %s10167_s28 }
0x1835   : > { %9445 = vrot.lane.b32.xlu0 %v11534_v58, %s10170_s29  ;;  %9450 = vrot.lane.b32.xlu1 %v11548_v59, %s10170_s29 }
0x1839   : > { %9455 = vrot.lane.b32.xlu0 %v11538_v51, %s10170_s29  ;;  %9460 = vrot.lane.b32.xlu1 %v11552_v53, %s10170_s29 }
0x183d   : > { %9465 = vrot.lane.b32.xlu0 %v11564_v27, %s10170_s29  ;;  %9470 = vrot.lane.b32.xlu1 %v11568_v57, %s10170_s29 }
0x1841   : > { %9475 = vrot.lane.b32.xlu0 %v11576_v52, %s10170_s29  ;;  %9480 = vrot.lane.b32.xlu1 %v11580_v42, %s10170_s29 }
0x1845   : > { %9485 = vrot.lane.b32.xlu0 %v11588_v62, %s10170_s29  ;;  %9490 = vrot.lane.b32.xlu1 %v11592_v47, %s10170_s29 }
0x1849   : > { %9495 = vrot.lane.b32.xlu0 %v11600_v1, %s10170_s29  ;;  %9500 = vrot.lane.b32.xlu1 %v11604_v3, %s10170_s29 }
0x184d   : > { %9505 = vrot.lane.b32.xlu0 %v11612_v4, %s10170_s29  ;;  %9510 = vrot.lane.b32.xlu1 %v11616_v6, %s10170_s29 }
0x1851   : > { %9515 = vrot.lane.b32.xlu0 %v11624_v10, %s10170_s29  ;;  %9520 = vrot.lane.b32.xlu1 %v11628_v12, %s10170_s29 }
0x1855   : > { %5173 = vrot.lane.b32.xlu0 %v11499_v63, %s10170_s29  ;;  %5311 = vrot.lane.b32.xlu1 %v11497_v56, %s10170_s29 }
0x1887   : > { %v9366_v11 = vpop.permute.xlu0 %9365  ;;  %v9376_v29 = vpop.permute.xlu1 %9375 }
0x1888   : > { %v9368_v35 = vunpack.i.h.bf16 %v9366_v11  ;;  %v9367_v0 = vunpack.i.l.bf16 %v9366_v11  ;;  %v9378_v26 = vunpack.i.h.bf16 %v9376_v29  ;;  %v9377_v8 = vunpack.i.l.bf16 %v9376_v29 }
0x188a   : > { %v8592_v14 = vpack.c.bf16 %v9368_v35, %v9367_v0  ;;  %v8595_v38 = vpack.c.bf16 %v9378_v26, %v9377_v8 }
0x188b   : > { %v9371_v21 = vpop.permute.xlu0 %9370  ;;  %v9381_v30 = vpop.permute.xlu1 %9380 }
0x188c   : > { %v9373_v32 = vunpack.i.h.bf16 %v9371_v21  ;;  %v9372_v22 = vunpack.i.l.bf16 %v9371_v21  ;;  %8593 = vmatpush3.bf16.msra.mxu0 %v8592_v14  ;;  %v9383_v39 = vunpack.i.h.bf16 %v9381_v30  ;;  %v9382_v40 = vunpack.i.l.bf16 %v9381_v30 }
0x188d   : > { %8594 = vmatprep.subr.bf16.mxu0 %v10171_v50 }
0x188e   : > { %v8616_v63 = vpack.c.bf16 %v9373_v32, %v9372_v22  ;;  %v8619_v43 = vpack.c.bf16 %v9383_v39, %v9382_v40 }
0x188f   : > { %v9386_v56 = vpop.permute.xlu0 %9385  ;;  %v9391_v25 = vpop.permute.xlu1 %9390 }
0x1890   : > { %v9388_v60 = vunpack.i.h.bf16 %v9386_v56  ;;  %v9387_v45 = vunpack.i.l.bf16 %v9386_v56  ;;  %8596 = vmatpush3.bf16.msra.mxu0 %v8595_v38  ;;  %8617 = vmatpush3.bf16.msra.mxu1 %v8616_v63  ;;  %v9393_v7 = vunpack.i.h.bf16 %v9391_v25  ;;  %v9392_v18 = vunpack.i.l.bf16 %v9391_v25 }
0x1891   : > { %8597 = vmatprep.subr.bf16.mxu0 %v10171_v50  ;;  %8618 = vmatprep.subr.bf16.mxu1 %v10171_v50 }
0x1892   : > { %v8598_v28 = vpack.c.bf16 %v9388_v60, %v9387_v45  ;;  %v8622_v46 = vpack.c.bf16 %v9393_v7, %v9392_v18 }
0x1893   : > { %v9396_v17 = vpop.permute.xlu0 %9395  ;;  %v9401_v23 = vpop.permute.xlu1 %9400 }
0x1894   : > { %v9398_v31 = vunpack.i.h.bf16 %v9396_v17  ;;  %v9397_v49 = vunpack.i.l.bf16 %v9396_v17  ;;  %8599 = vmatpush3.bf16.msra.mxu0 %v8598_v28  ;;  %8620 = vmatpush3.bf16.msra.mxu1 %v8619_v43  ;;  %v9403_v15 = vunpack.i.h.bf16 %v9401_v23  ;;  %v9402_v19 = vunpack.i.l.bf16 %v9401_v23 }
0x1895   : > { %8600 = vmatprep.subr.bf16.mxu0 %v10171_v50  ;;  %8621 = vmatprep.subr.bf16.mxu1 %v10171_v50 }
0x1896   : > { %v8601_v36 = vpack.c.bf16 %v9398_v31, %v9397_v49  ;;  %v8625_v48 = vpack.c.bf16 %v9403_v15, %v9402_v19 }
0x1897   : > { %v9406_v54 = vpop.permute.xlu0 %9405  ;;  %v9411_v61 = vpop.permute.xlu1 %9410 }
0x1898   : > { %v9408_v20 = vunpack.i.h.bf16 %v9406_v54  ;;  %v9407_v11 = vunpack.i.l.bf16 %v9406_v54  ;;  %8602 = vmatpush3.bf16.msra.mxu0 %v8601_v36  ;;  %8623 = vmatpush3.bf16.msra.mxu1 %v8622_v46  ;;  %v9413_v29 = vunpack.i.h.bf16 %v9411_v61  ;;  %v9412_v35 = vunpack.i.l.bf16 %v9411_v61 }
0x1899   : > { %8603 = vmatprep.subr.bf16.mxu0 %v10171_v50  ;;  %8624 = vmatprep.subr.bf16.mxu1 %v10171_v50 }
0x189a   : > { %v8604_v0 = vpack.c.bf16 %v9408_v20, %v9407_v11  ;;  %v8628_v26 = vpack.c.bf16 %v9413_v29, %v9412_v35 }
0x189b   : > { %v9416_v8 = vpop.permute.xlu0 %9415  ;;  %v9421_v14 = vpop.permute.xlu1 %9420 }
0x189c   : > { %v9418_v38 = vunpack.i.h.bf16 %v9416_v8  ;;  %v9417_v21 = vunpack.i.l.bf16 %v9416_v8  ;;  %8605 = vmatpush3.bf16.msra.mxu0 %v8604_v0  ;;  %8626 = vmatpush3.bf16.msra.mxu1 %v8625_v48  ;;  %v9423_v30 = vunpack.i.h.bf16 %v9421_v14  ;;  %v9422_v32 = vunpack.i.l.bf16 %v9421_v14 }
0x189d   : > { %8606 = vmatprep.subr.bf16.mxu0 %v10171_v50  ;;  %8627 = vmatprep.subr.bf16.mxu1 %v10171_v50 }
0x189e   : > { %v8607_v22 = vpack.c.bf16 %v9418_v38, %v9417_v21  ;;  %v8631_v39 = vpack.c.bf16 %v9423_v30, %v9422_v32 }
0x189f   : > { %v9426_v40 = vpop.permute.xlu0 %9425  ;;  %v9431_v63 = vpop.permute.xlu1 %9430 }
0x18a0   : > { %v9428_v43 = vunpack.i.h.bf16 %v9426_v40  ;;  %v9427_v56 = vunpack.i.l.bf16 %v9426_v40  ;;  %8608 = vmatpush3.bf16.msra.mxu0 %v8607_v22  ;;  %8629 = vmatpush3.bf16.msra.mxu1 %v8628_v26  ;;  %v9433_v25 = vunpack.i.h.bf16 %v9431_v63  ;;  %v9432_v60 = vunpack.i.l.bf16 %v9431_v63 }
0x18a1   : > { %8609 = vmatprep.subr.bf16.mxu0 %v10171_v50  ;;  %8630 = vmatprep.subr.bf16.mxu1 %v10171_v50 }
0x18a2   : > { %v8610_v45 = vpack.c.bf16 %v9428_v43, %v9427_v56  ;;  %v8634_v7 = vpack.c.bf16 %v9433_v25, %v9432_v60 }
0x18a3   : > { %v9436_v18 = vpop.permute.xlu0 %9435  ;;  %v9441_v28 = vpop.permute.xlu1 %9440 }
0x18a4   : > { %v9438_v46 = vunpack.i.h.bf16 %v9436_v18  ;;  %v9437_v17 = vunpack.i.l.bf16 %v9436_v18  ;;  %8611 = vmatpush3.bf16.msra.mxu0 %v8610_v45  ;;  %8632 = vmatpush3.bf16.msra.mxu1 %v8631_v39  ;;  %v9443_v23 = vunpack.i.h.bf16 %v9441_v28  ;;  %v9442_v31 = vunpack.i.l.bf16 %v9441_v28 }
0x18a5   : > { %8612 = vmatprep.subr.bf16.mxu0 %v10171_v50  ;;  %8633 = vmatprep.subr.bf16.mxu1 %v10171_v50 }
0x18a6   : > { %v8613_v49 = vpack.c.bf16 %v9438_v46, %v9437_v17  ;;  %v8637_v19 = vpack.c.bf16 %v9443_v23, %v9442_v31 }
0x18a7   : > { %v9446_v15 = vpop.permute.xlu0 %9445  ;;  %v9451_v54 = vpop.permute.xlu1 %9450 }
0x18a8   : > { %8614 = vmatpush3.bf16.msra.mxu0 %v8613_v49  ;;  %8635 = vmatpush3.bf16.msra.mxu1 %v8634_v7  ;;  %v9448_v36 = vunpack.i.h.bf16 %v9446_v15  ;;  %v9447_v48 = vunpack.i.l.bf16 %v9446_v15  ;;  %v9453_v20 = vunpack.i.h.bf16 %v9451_v54  ;;  %v9452_v11 = vunpack.i.l.bf16 %v9451_v54 }
0x18a9   : > { %8636 = vmatprep.subr.bf16.mxu1 %v10171_v50  ;;  %8639 = vmatprep.subr.bf16.mxu0 %v10171_v50 }
0x18aa   : > { %v8640_v61 = vpack.c.bf16 %v9448_v36, %v9447_v48  ;;  %v8672_v35 = vpack.c.bf16 %v9453_v20, %v9452_v11 }
0x18ab   : > { %7970 = vmatmul.mubr.f32.vlgmr.msra.gmra.mrb[26].mxu0 %v11910_v41  ;;  %v9456_v29 = vpop.permute.xlu0 %9455  ;;  %v9461_v26 = vpop.permute.xlu1 %9460 }
0x18ac   : > { %8638 = vmatpush3.bf16.msra.mxu1 %v8637_v19  ;;  %8039 = vmatprep.mubr.msk.f32.mxu0 %vm10163_vm2, %v10162_v9  ;;  %v9458_v41 = vunpack.i.h.bf16 %v9456_v29  ;;  %v9457_v0 = vunpack.i.l.bf16 %v9456_v29  ;;  %v9463_v14 = vunpack.i.h.bf16 %v9461_v26  ;;  %v9462_v38 = vunpack.i.l.bf16 %v9461_v26 }
0x18ad   : > { %8671 = vmatprep.subr.bf16.mxu1 %v10171_v50 }
0x18ae   : > { %v8644_v8 = vpack.c.bf16 %v9458_v41, %v9457_v0 }
0x18af   : > { %8005 = vmatmul.mubr.f32.vlgmr.msra.gmra.mrb[66].mxu1 %v11912_v5  ;;  %v9466_v21 = vpop.permute.xlu0 %9465  ;;  %v8676_v5 = vpack.c.bf16 %v9463_v14, %v9462_v38  ;;  %v9471_v22 = vpop.permute.xlu1 %9470 }
0x18b0   : > { %8074 = vmatprep.mubr.msk.f32.mxu1 %vm10163_vm2, %v10162_v9  ;;  %v9468_v30 = vunpack.i.h.bf16 %v9466_v21  ;;  %v9467_v32 = vunpack.i.l.bf16 %v9466_v21  ;;  %v9473_v40 = vunpack.i.h.bf16 %v9471_v22  ;;  %v9472_v63 = vunpack.i.l.bf16 %v9471_v22 }
0x18b1   : > { %8642 = vmatpush3.bf16.xpose.msk.msra.mxu0 %vm11349_vm7, %v8640_v61 }
0x18b2   : > { %8643 = vmatprep.subr.bf16.mxu0 %v10171_v50  ;;  %v8648_v39 = vpack.c.bf16 %v9468_v30, %v9467_v32  ;;  %v8680_v56 = vpack.c.bf16 %v9473_v40, %v9472_v63 }
0x18b3   : > { %v9476_v43 = vpop.permute.xlu0 %9475  ;;  %v9481_v45 = vpop.permute.xlu1 %9480 }
0x18b4   : > { %v9478_v25 = vunpack.i.h.bf16 %v9476_v43  ;;  %v9477_v60 = vunpack.i.l.bf16 %v9476_v43  ;;  %v9483_v18 = vunpack.i.h.bf16 %v9481_v45  ;;  %v9482_v28 = vunpack.i.l.bf16 %v9481_v45 }
0x18b5   : > { %8674 = vmatpush3.bf16.xpose.msk.msra.mxu1 %vm11349_vm7, %v8672_v35 }
0x18b6   : > { %8675 = vmatprep.subr.bf16.mxu1 %v10171_v50  ;;  %v8652_v7 = vpack.c.bf16 %v9478_v25, %v9477_v60  ;;  %v8684_v17 = vpack.c.bf16 %v9483_v18, %v9482_v28 }
0x18b7   : > { %v9486_v46 = vpop.permute.xlu0 %9485  ;;  %v9491_v49 = vpop.permute.xlu1 %9490 }
0x18b8   : > { %v9488_v23 = vunpack.i.h.bf16 %v9486_v46  ;;  %v9487_v31 = vunpack.i.l.bf16 %v9486_v46  ;;  %v9493_v19 = vunpack.i.h.bf16 %v9491_v49  ;;  %v9492_v36 = vunpack.i.l.bf16 %v9491_v49 }
0x18b9   : > { %8646 = vmatpush3.bf16.xpose.msk.msra.mxu0 %vm11349_vm7, %v8644_v8 }
0x18ba   : > { %8647 = vmatprep.subr.bf16.mxu0 %v10171_v50  ;;  %v8656_v15 = vpack.c.bf16 %v9488_v23, %v9487_v31  ;;  %v8688_v54 = vpack.c.bf16 %v9493_v19, %v9492_v36 }
0x18bb   : > { %v9496_v48 = vpop.permute.xlu0 %9495  ;;  %v9501_v11 = vpop.permute.xlu1 %9500 }
0x18bc   : > { %v9498_v61 = vunpack.i.h.bf16 %v9496_v48  ;;  %v9497_v20 = vunpack.i.l.bf16 %v9496_v48  ;;  %v9503_v35 = vunpack.i.h.bf16 %v9501_v11  ;;  %v9502_v41 = vunpack.i.l.bf16 %v9501_v11 }
0x18bd   : > { %8678 = vmatpush3.bf16.xpose.msk.msra.mxu1 %vm11349_vm7, %v8676_v5 }
0x18be   : > { %8679 = vmatprep.subr.bf16.mxu1 %v10171_v50  ;;  %v8660_v29 = vpack.c.bf16 %v9498_v61, %v9497_v20  ;;  %v8692_v26 = vpack.c.bf16 %v9503_v35, %v9502_v41 }
0x18bf   : > { %v9506_v0 = vpop.permute.xlu0 %9505  ;;  %v9511_v38 = vpop.permute.xlu1 %9510 }
0x18c0   : > { %v9508_v8 = vunpack.i.h.bf16 %v9506_v0  ;;  %v9507_v14 = vunpack.i.l.bf16 %v9506_v0  ;;  %v9513_v5 = vunpack.i.h.bf16 %v9511_v38  ;;  %v9512_v30 = vunpack.i.l.bf16 %v9511_v38 }
0x18c1   : > { %8650 = vmatpush3.bf16.xpose.msk.msra.mxu0 %vm11349_vm7, %v8648_v39 }
0x18c2   : > { %8651 = vmatprep.subr.bf16.mxu0 %v10171_v50  ;;  %v8664_v21 = vpack.c.bf16 %v9508_v8, %v9507_v14  ;;  %v8696_v22 = vpack.c.bf16 %v9513_v5, %v9512_v30 }
0x18c3   : > { %v9516_v32 = vpop.permute.xlu0 %9515  ;;  %v9521_v63 = vpop.permute.xlu1 %9520 }
0x18c4   : > { %v9518_v39 = vunpack.i.h.bf16 %v9516_v32  ;;  %v9517_v40 = vunpack.i.l.bf16 %v9516_v32  ;;  %v9522_v25 = vunpack.i.l.bf16 %v9521_v63 }
0x18c5   : > { %8682 = vmatpush3.bf16.xpose.msk.msra.mxu1 %vm11349_vm7, %v8680_v56  ;;  %v9523_v56 = vunpack.i.h.bf16 %v9521_v63 }
0x18c6   : > { %8683 = vmatprep.subr.bf16.mxu1 %v10171_v50  ;;  %v8668_v43 = vpack.c.bf16 %v9518_v39, %v9517_v40 }
0x18c7   : > { %v8700_v60 = vpack.c.bf16 %v9523_v56, %v9522_v25  ;;  %v5174_v45 = vpop.permute.xlu0 %5173 }
0x18c9   : > { %8654 = vmatpush3.bf16.xpose.msk.msra.mxu0 %vm11349_vm7, %v8652_v7  ;;  %v5312_v7 = vpop.permute.xlu1 %5311 }
0x18ca   : > { %8655 = vmatprep.subr.bf16.mxu0 %v10171_v50 }
0x18cd   : > { %8686 = vmatpush3.bf16.xpose.msk.msra.mxu1 %vm11349_vm7, %v8684_v17 }
0x18ce   : > { %8687 = vmatprep.subr.bf16.mxu1 %v10171_v50 }
0x18d1   : > { %8658 = vmatpush3.bf16.xpose.msk.msra.mxu0 %vm11349_vm7, %v8656_v15 }
0x18d2   : > { %8659 = vmatprep.subr.bf16.mxu0 %v10171_v50 }
0x18d5   : > { %8690 = vmatpush3.bf16.xpose.msk.msra.mxu1 %vm11349_vm7, %v8688_v54 }
0x18d6   : > { %8691 = vmatprep.subr.bf16.mxu1 %v10171_v50 }
0x18d9   : > { %8662 = vmatpush3.bf16.xpose.msk.msra.mxu0 %vm11349_vm7, %v8660_v29 }
0x18da   : > { %8663 = vmatprep.subr.bf16.mxu0 %v10171_v50 }
0x18dd   : > { %8694 = vmatpush3.bf16.xpose.msk.msra.mxu1 %vm11349_vm7, %v8692_v26 }
0x18de   : > { %8695 = vmatprep.subr.bf16.mxu1 %v10171_v50 }
0x18e1   : > { %8666 = vmatpush3.bf16.xpose.msk.msra.mxu0 %vm11349_vm7, %v8664_v21 }
0x18e2   : > { %8667 = vmatprep.subr.bf16.mxu0 %v10171_v50 }
0x18e5   : > { %8698 = vmatpush3.bf16.xpose.msk.msra.mxu1 %vm11349_vm7, %v8696_v22 }
0x18e6   : > { %8699 = vmatprep.subr.bf16.mxu1 %v10171_v50 }
0x18e9   : > { %8670 = vmatpush3.bf16.xpose.msk.msra.mxu0 %vm11349_vm7, %v8668_v43 }
0x18ed   : > { %8702 = vmatpush3.bf16.xpose.msk.msra.mxu1 %vm11349_vm7, %v8700_v60 }
0x18f0   : > { %8040 = vmatmul.mubr.msk.f32.vlgmr.msra.gmra.mrb[28].mxu0 %vm1620_vm3, %v5174_v45 }
0x18f4   : > { %8075 = vmatmul.mubr.msk.f32.vlgmr.msra.gmra.mrb[68].mxu1 %vm1620_vm3, %v5312_v7 }
0x197e   : > { %v5051_v18 = vpop.f32.mrb[26].mxu0 }
0x197f   : > { %v7971_v28 = vpop.f32.mrb[27].mxu0 }
0x1982   : > { %v5169_v46 = vpop.f32.mrb[66].mxu1 }
0x1983   : > { %v8006_v17 = vpop.f32.mrb[67].mxu1 }
0x19c3   : > { %v5307_v23 = vpop.f32.mrb[28].mxu0 }
0x19c4   : > { %v5449_v31 = vmul.f32 0.25, %v5307_v23  ;;  %v8041_v49 = vpop.f32.mrb[29].mxu0 }
0x19c6   : > { %v5451_v15 = vadd.f32 %v5449_v31, %v11513_v16 }
0x19c7   : > { %v5445_v19 = vpop.f32.mrb[68].mxu1 }
0x19c8   : > { %v5450_v36 = vmul.f32 0.25, %v5445_v19  ;;  %v8076_v48 = vpop.f32.mrb[69].mxu1  ;;  %5453 = vmax.xlane.f32.xlu0 %v5451_v15 }
0x19ca   : > { %v5452_v34 = vadd.f32 %v5450_v36, %v11508_v2 }
0x19cc   : > { %5455 = vmax.xlane.f32.xlu1 %v5452_v34 }
0x1a55   : > { %v5454_v54 = vpop.xlane.xlu0 %5453 }
0x1a56   : > { %v5457_v61 = vsub.f32 %v5451_v15, %v5454_v54 }
0x1a58   : > { %v5459_v20 = vmul.f32 1.442695, %v5457_v61 }
0x1a59   : > { %v5456_v11 = vpop.xlane.xlu1 %5455 }
0x1a5a   : > { %9524 = vpow2.f32 %v5459_v20  ;;  %v5458_v29 = vsub.f32 %v5452_v34, %v5456_v11 }
0x1a5c   : > { %v5461_v35 = vmul.f32 1.442695, %v5458_v29 }
0x1a5e   : > { %9526 = vpow2.f32 %v5461_v35 }
0x1a64   : > { %v9525_v41 = vpop.eup %9524 }
0x1a65   : > { %5463 = vadd.xlane.f32.xlu0 %v9525_v41 }
0x1a68   : > { %v9527_v0 = vpop.eup %9526 }
0x1a69   : > { %5465 = vadd.xlane.f32.xlu0 %v9527_v0 }
0x1af2   : > { %v5464_v16 = vpop.xlane.xlu0 %5463 }
0x1af3   : > { %9528 = vrcp.f32 %v5464_v16 }
0x1af6   : > { %v5466_v26 = vpop.xlane.xlu0 %5465 }
0x1af7   : > { %9530 = vrcp.f32 %v5466_v26 }
0x1afc   : > { %5473 = sbr.rel (%p6852_p1) target bundleno = 6917 (0x1b05), region = 200 }
0x1afd   : > { %v9529_v8 = vpop.eup %9528 }
0x1afe   : > { %v12070_v14 = vmul.f32 %v9529_v8, %v9525_v41 }
0x1b00   : > { %6962 = vst [vmem:[%s12450_s17 + $0x30] sm:$0xff] (!%p6852_p1), %v12070_v14 }
0x1b01   : > { %v9531_v2 = vpop.eup %9530 }
0x1b02   : > { %v12072_v38 = vmul.f32 %v9531_v2, %v9527_v0 }
0x1b04   : > { %6963 = vst [vmem:[%s12450_s17 + $0x38] sm:$0xff] %v12072_v38 }
0x1b05 PF: > { %8703 = vmatprep.subr.bf16.mxu0 %v10171_v50  ;;  %8727 = vmatprep.subr.bf16.mxu1 %v10171_v50  ;;  %s12457_s8 = scalar_lea.vmem [#allocation23], %s10777_s0  ;;  %s12458_s11 = sld [smem:[#allocation62_spill]] (!%p6852_p1) }
0x1b06   : > { %9533 = vrot.lane.b32.xlu0 %v11534_v58, %s10169_s20  ;;  %9543 = vrot.lane.b32.xlu1 %v11538_v51, %s10169_s20 }
0x1b07   : > { %8109 = vmatprep.mubr.msk.f32.mxu0 %vm10163_vm2, %v10162_v9  ;;  %8144 = vmatprep.mubr.msk.f32.mxu1 %vm10163_vm2, %v10162_v9 }
0x1b0a   : > { %9538 = vrot.lane.b32.xlu0 %v11548_v59, %s10169_s20  ;;  %9548 = vrot.lane.b32.xlu1 %v11552_v53, %s10169_s20 }
0x1b0e   : > { %9553 = vrot.lane.b32.xlu0 %v11564_v27, %s10169_s20  ;;  %9558 = vrot.lane.b32.xlu1 %v11568_v57, %s10169_s20 }
0x1b12   : > { %9563 = vrot.lane.b32.xlu0 %v11576_v52, %s10169_s20  ;;  %9568 = vrot.lane.b32.xlu1 %v11580_v42, %s10169_s20 }
0x1b16   : > { %9573 = vrot.lane.b32.xlu0 %v11588_v62, %s10169_s20  ;;  %9578 = vrot.lane.b32.xlu1 %v11592_v47, %s10169_s20 }
0x1b1a   : > { %9583 = vrot.lane.b32.xlu0 %v11600_v1, %s10169_s20  ;;  %9588 = vrot.lane.b32.xlu1 %v11604_v3, %s10169_s20 }
0x1b1e   : > { %9593 = vrot.lane.b32.xlu0 %v11612_v4, %s10169_s20  ;;  %9598 = vrot.lane.b32.xlu1 %v11616_v6, %s10169_s20 }
0x1b22   : > { %9603 = vrot.lane.b32.xlu0 %v11624_v10, %s10169_s20  ;;  %9608 = vrot.lane.b32.xlu1 %v11628_v12, %s10169_s20 }
0x1b26   : > { %5715 = vrot.lane.b32.xlu0 %v11904_v33, %s10169_s20  ;;  %5717 = vrot.lane.b32.xlu1 %v11906_v37, %s10169_s20  ;;  %s12455_s20 = scalar_lea.vmem [#allocation20], %s10777_s0 }
0x1b2a   : > { %5723 = vrot.lane.b32.xlu0 %v5051_v18, %s10167_s28  ;;  %5725 = vrot.lane.b32.xlu1 %v5169_v46, %s10167_s28  ;;  %s12454_s28 = scalar_lea.vmem [#allocation18], %s10777_s0 }
0x1b78   : > { %v9534_v9 = vpop.permute.xlu0 %9533  ;;  %v9544_v58 = vpop.permute.xlu1 %9543 }
0x1b79   : > { %v9536_v51 = vunpack.i.h.bf16 %v9534_v9  ;;  %v9535_v59 = vunpack.i.l.bf16 %v9534_v9  ;;  %v9546_v53 = vunpack.i.h.bf16 %v9544_v58  ;;  %v9545_v27 = vunpack.i.l.bf16 %v9544_v58 }
0x1b7b   : > { %v8704_v57 = vpack.c.bf16 %v9536_v51, %v9535_v59  ;;  %v8707_v52 = vpack.c.bf16 %v9546_v53, %v9545_v27 }
0x1b7c   : > { %v9539_v42 = vpop.permute.xlu0 %9538  ;;  %v9549_v62 = vpop.permute.xlu1 %9548 }
0x1b7d   : > { %v9541_v47 = vunpack.i.h.bf16 %v9539_v42  ;;  %v9540_v1 = vunpack.i.l.bf16 %v9539_v42  ;;  %8705 = vmatpush3.bf16.msra.mxu0 %v8704_v57  ;;  %v9551_v3 = vunpack.i.h.bf16 %v9549_v62  ;;  %v9550_v4 = vunpack.i.l.bf16 %v9549_v62  ;;  %v5744_v42 = vld [vmem:[%s10861_s24 + $0x8] sm:$0xff]  ;;  %v5745_v62 = vld [vmem:[%s10861_s24 + $0x10] sm:$0xff] }
0x1b7e   : > { %8706 = vmatprep.subr.bf16.mxu0 %v10171_v50 }
0x1b7f   : > { %v8728_v6 = vpack.c.bf16 %v9541_v47, %v9540_v1  ;;  %v8731_v10 = vpack.c.bf16 %v9551_v3, %v9550_v4  ;;  %v5746_v1 = vld [vmem:[%s10861_s24 + $0x18] sm:$0xff]  ;;  %v5747_v4 = vld [vmem:[%s10861_s24 + $0x20] sm:$0xff] }
0x1b80   : > { %v9554_v12 = vpop.permute.xlu0 %9553  ;;  %v9559_v33 = vpop.permute.xlu1 %9558  ;;  %v8755_v3 = vpack.c.bf16 %v5746_v1, %v5745_v62  ;;  %v5988_v62 = vld [vmem:[%s10871_s7 + $0x28] sm:$0xff]  ;;  %v5989_v1 = vld [vmem:[%s10871_s7 + $0x30] sm:$0xff] }
0x1b81   : > { %v9556_v37 = vunpack.i.h.bf16 %v9554_v12  ;;  %v9555_v21 = vunpack.i.l.bf16 %v9554_v12  ;;  %8708 = vmatpush3.bf16.msra.mxu0 %v8707_v52  ;;  %8729 = vmatpush3.bf16.msra.mxu1 %v8728_v6  ;;  %v9561_v5 = vunpack.i.h.bf16 %v9559_v33  ;;  %v9560_v30 = vunpack.i.l.bf16 %v9559_v33  ;;  %v5743_v52 = vld [vmem:[%s10861_s24] sm:$0xff]  ;;  %v5748_v6 = vld [vmem:[%s10861_s24 + $0x28] sm:$0xff] }
0x1b82   : > { %8709 = vmatprep.subr.bf16.mxu0 %v10171_v50  ;;  %8730 = vmatprep.subr.bf16.mxu1 %v10171_v50  ;;  %v8751_v47 = vpack.c.bf16 %v5744_v42, %v5743_v52  ;;  %v5987_v42 = vld [vmem:[%s10871_s7 + $0x20] sm:$0xff] }
0x1b83   : > { %v8710_v32 = vpack.c.bf16 %v9556_v37, %v9555_v21  ;;  %v8734_v22 = vpack.c.bf16 %v9561_v5, %v9560_v30 }
0x1b84   : > { %v9564_v39 = vpop.permute.xlu0 %9563  ;;  %v9569_v40 = vpop.permute.xlu1 %9568 }
0x1b85   : > { %v9566_v63 = vunpack.i.h.bf16 %v9564_v39  ;;  %v9565_v43 = vunpack.i.l.bf16 %v9564_v39  ;;  %8711 = vmatpush3.bf16.msra.mxu0 %v8710_v32  ;;  %8732 = vmatpush3.bf16.msra.mxu1 %v8731_v10  ;;  %v9571_v56 = vunpack.i.h.bf16 %v9569_v40  ;;  %v9570_v25 = vunpack.i.l.bf16 %v9569_v40 }
0x1b86   : > { %8712 = vmatprep.subr.bf16.mxu0 %v10171_v50  ;;  %8733 = vmatprep.subr.bf16.mxu1 %v10171_v50  ;;  %v8759_v10 = vpack.c.bf16 %v5748_v6, %v5747_v4  ;;  %v5991_v6 = vld [vmem:[%s10871_s7 + $0x40] sm:$0xff] }
0x1b87   : > { %v8713_v60 = vpack.c.bf16 %v9566_v63, %v9565_v43  ;;  %v8737_v45 = vpack.c.bf16 %v9571_v56, %v9570_v25 }
0x1b88   : > { %v9574_v7 = vpop.permute.xlu0 %9573  ;;  %v9579_v18 = vpop.permute.xlu1 %9578 }
0x1b89   : > { %v9576_v28 = vunpack.i.h.bf16 %v9574_v7  ;;  %v9575_v46 = vunpack.i.l.bf16 %v9574_v7  ;;  %8714 = vmatpush3.bf16.msra.mxu0 %v8713_v60  ;;  %8735 = vmatpush3.bf16.msra.mxu1 %v8734_v22  ;;  %v9581_v17 = vunpack.i.h.bf16 %v9579_v18  ;;  %v9580_v23 = vunpack.i.l.bf16 %v9579_v18 }
0x1b8a   : > { %8715 = vmatprep.subr.bf16.mxu0 %v10171_v50  ;;  %8736 = vmatprep.subr.bf16.mxu1 %v10171_v50 }
0x1b8b   : > { %v8716_v31 = vpack.c.bf16 %v9576_v28, %v9575_v46  ;;  %v8740_v49 = vpack.c.bf16 %v9581_v17, %v9580_v23 }
0x1b8c   : > { %v9584_v15 = vpop.permute.xlu0 %9583  ;;  %v9589_v19 = vpop.permute.xlu1 %9588 }
0x1b8d   : > { %v9586_v36 = vunpack.i.h.bf16 %v9584_v15  ;;  %v9585_v48 = vunpack.i.l.bf16 %v9584_v15  ;;  %8717 = vmatpush3.bf16.msra.mxu0 %v8716_v31  ;;  %8738 = vmatpush3.bf16.msra.mxu1 %v8737_v45  ;;  %v9591_v34 = vunpack.i.h.bf16 %v9589_v19  ;;  %v9590_v54 = vunpack.i.l.bf16 %v9589_v19 }
0x1b8e   : > { %8718 = vmatprep.subr.bf16.mxu0 %v10171_v50  ;;  %8739 = vmatprep.subr.bf16.mxu1 %v10171_v50 }
0x1b8f   : > { %v8719_v61 = vpack.c.bf16 %v9586_v36, %v9585_v48  ;;  %v8743_v20 = vpack.c.bf16 %v9591_v34, %v9590_v54 }
0x1b90   : > { %v9594_v11 = vpop.permute.xlu0 %9593  ;;  %v9599_v29 = vpop.permute.xlu1 %9598 }
0x1b91   : > { %v9596_v35 = vunpack.i.h.bf16 %v9594_v11  ;;  %v9595_v41 = vunpack.i.l.bf16 %v9594_v11  ;;  %8720 = vmatpush3.bf16.msra.mxu0 %v8719_v61  ;;  %8741 = vmatpush3.bf16.msra.mxu1 %v8740_v49  ;;  %v9601_v0 = vunpack.i.h.bf16 %v9599_v29  ;;  %v9600_v16 = vunpack.i.l.bf16 %v9599_v29  ;;  %v5886_v11 = vld [vmem:[%s10866_s2 + $0x8] sm:$0xff] }
0x1b92   : > { %8721 = vmatprep.subr.bf16.mxu0 %v10171_v50  ;;  %8742 = vmatprep.subr.bf16.mxu1 %v10171_v50 }
0x1b93   : > { %v8722_v26 = vpack.c.bf16 %v9596_v35, %v9595_v41  ;;  %v8746_v8 = vpack.c.bf16 %v9601_v0, %v9600_v16  ;;  %v5887_v35 = vld [vmem:[%s10866_s2 + $0x10] sm:$0xff]  ;;  %v5888_v41 = vld [vmem:[%s10866_s2 + $0x18] sm:$0xff]  ;;  %v5889_v0 = vld [vmem:[%s10866_s2 + $0x20] sm:$0xff] }
0x1b94   : > { %v9604_v2 = vpop.permute.xlu0 %9603  ;;  %v9609_v9 = vpop.permute.xlu1 %9608  ;;  %v8771_v16 = vpack.c.bf16 %v5888_v41, %v5887_v35 }
0x1b95   : > { %v9606_v58 = vunpack.i.h.bf16 %v9604_v2  ;;  %v9605_v51 = vunpack.i.l.bf16 %v9604_v2  ;;  %8723 = vmatpush3.bf16.msra.mxu0 %v8722_v26  ;;  %8744 = vmatpush3.bf16.msra.mxu1 %v8743_v20  ;;  %v9611_v59 = vunpack.i.h.bf16 %v9609_v9  ;;  %v9610_v53 = vunpack.i.l.bf16 %v9609_v9  ;;  %v5885_v20 = vld [vmem:[%s10866_s2] sm:$0xff]  ;;  %v5890_v26 = vld [vmem:[%s10866_s2 + $0x28] sm:$0xff]  ;;  %v5891_v2 = vld [vmem:[%s10866_s2 + $0x30] sm:$0xff] }
0x1b96   : > { %8724 = vmatprep.subr.bf16.mxu0 %v10171_v50  ;;  %8745 = vmatprep.subr.bf16.mxu1 %v10171_v50  ;;  %v8767_v29 = vpack.c.bf16 %v5886_v11, %v5885_v20  ;;  %v5892_v9 = vld [vmem:[%s10866_s2 + $0x38] sm:$0xff]  ;;  %s12452_s2 = scalar_lea.vmem [#allocation15], %s10777_s0 }
0x1b97   : > { %v8725_v27 = vpack.c.bf16 %v9606_v58, %v9605_v51  ;;  %v8749_v57 = vpack.c.bf16 %v9611_v59, %v9610_v53  ;;  %v8779_v58 = vpack.c.bf16 %v5892_v9, %v5891_v2  ;;  %v5983_v51 = vld [vmem:[%s10871_s7] sm:$0xff]  ;;  %v5984_v59 = vld [vmem:[%s10871_s7 + $0x8] sm:$0xff]  ;;  %v5985_v53 = vld [vmem:[%s10871_s7 + $0x10] sm:$0xff] }
0x1b98   : > { %v5716_v5 = vpop.permute.xlu0 %5715  ;;  %v5718_v30 = vpop.permute.xlu1 %5717 }
0x1b99   : > { %8726 = vmatpush3.bf16.msra.mxu0 %v8725_v27  ;;  %8747 = vmatpush3.bf16.msra.mxu1 %v8746_v8  ;;  %v5737_v22 = vsel %vm1620_vm3, %v11740_v55, %v5716_v5  ;;  %v5738_v43 = vsel %vm1620_vm3, %v11742_v13, %v5718_v30  ;;  %v8775_v8 = vpack.c.bf16 %v5890_v26, %v5889_v0 }
0x1b9a   : > { %8748 = vmatprep.subr.bf16.mxu1 %v10171_v50  ;;  %8752 = vmatprep.subr.bf16.mxu0 %v8751_v47  ;;  %v5749_v50 = vld [vmem:[%s10861_s24 + $0x30] sm:$0xff]  ;;  %v8783_v27 = vpack.c.bf16 %v5984_v59, %v5983_v51 }
0x1b9c   : > { %8110 = vmatmul.mubr.f32.vlgmr.msra.gmra.mrb[30].mxu0 %v12070_v14  ;;  %v5750_v14 = vld [vmem:[%s10861_s24 + $0x38] sm:$0xff]  ;;  %v5724_v32 = vpop.permute.xlu0 %5723  ;;  %v5726_v40 = vpop.permute.xlu1 %5725  ;;  %s12451_s24 = scalar_lea.vmem [#allocation14], %s10777_s0 }
0x1b9d   : > { %8750 = vmatpush3.bf16.msra.mxu1 %v8749_v57  ;;  %8754 = vmatpush3.bf16.msra.mxu0 %v8751_v47  ;;  %v5739_v39 = vsel %vm2975_vm5, %v5737_v22, %v5724_v32  ;;  %v5740_v25 = vsel %vm2975_vm5, %v5738_v43, %v5726_v40  ;;  %v6964_v55 = vld [vmem:[%s12451_s24] ss:$0 sm:$0xff]  ;;  %v5986_v57 = vld [vmem:[%s10871_s7 + $0x18] sm:$0xff]  ;;  %v8791_v47 = vpack.c.bf16 %v5988_v62, %v5987_v42 }
0x1b9e   : > { %8756 = vmatprep.subr.bf16.mxu0 %v8755_v3  ;;  %8768 = vmatprep.subr.bf16.mxu1 %v8767_v29  ;;  %v8787_v52 = vpack.c.bf16 %v5986_v57, %v5985_v53  ;;  %v6967_v43 = vld [vmem:[%s12452_s2] ss:$0 sm:$0xff] }
0x1ba0   : > { %8145 = vmatmul.mubr.f32.vlgmr.msra.gmra.mrb[70].mxu1 %v12072_v38  ;;  %v8763_v38 = vpack.c.bf16 %v5750_v14, %v5749_v50  ;;  %v5993_v14 = vld [vmem:[%s10871_s7 + $0x50] sm:$0xff] }
0x1ba1   : > { %8758 = vmatpush3.bf16.msra.mxu0 %v8755_v3  ;;  %8770 = vmatpush3.bf16.msra.mxu1 %v8767_v29  ;;  %v5990_v3 = vld [vmem:[%s10871_s7 + $0x38] sm:$0xff] }
0x1ba2   : > { %8760 = vmatprep.subr.bf16.mxu0 %v8759_v10  ;;  %8772 = vmatprep.subr.bf16.mxu1 %v8771_v16  ;;  %v8795_v4 = vpack.c.bf16 %v5990_v3, %v5989_v1 }
0x1ba5   : > { %8762 = vmatpush3.bf16.msra.mxu0 %v8759_v10  ;;  %8774 = vmatpush3.bf16.msra.mxu1 %v8771_v16  ;;  %v5992_v10 = vld [vmem:[%s10871_s7 + $0x48] sm:$0xff] }
0x1ba6   : > { %8764 = vmatprep.subr.bf16.mxu0 %v8763_v38  ;;  %8776 = vmatprep.subr.bf16.mxu1 %v8775_v8  ;;  %v8799_v50 = vpack.c.bf16 %v5992_v10, %v5991_v6  ;;  %v6974_v6 = vld [vmem:[%s12457_s8] ss:$0 sm:$0xff] }
0x1ba9   : > { %8766 = vmatpush3.bf16.msra.mxu0 %v8763_v38  ;;  %8778 = vmatpush3.bf16.msra.mxu1 %v8775_v8  ;;  %v5994_v38 = vld [vmem:[%s10871_s7 + $0x58] sm:$0xff] }
0x1baa   : > { %8780 = vmatprep.subr.bf16.mxu1 %v8779_v58  ;;  %8784 = vmatprep.subr.bf16.mxu0 %v8783_v27 }
0x1bad   : > { %8782 = vmatpush3.bf16.msra.mxu1 %v8779_v58 }
0x1c6f   : > { %v5591_v12 = vpop.f32.mrb[30].mxu0 }
0x1c70   : > { %5731 = vrot.lane.b32.xlu0 %v5591_v12, %s10165_s6  ;;  %v8111_v33 = vpop.f32.mrb[31].mxu0  ;;  %v8803_v12 = vpack.c.bf16 %v5994_v38, %v5993_v14 }
0x1c71   : > { %v5995_v33 = vld [vmem:[%s10871_s7 + $0x60] sm:$0xff] }
0x1c73   : > { %v5709_v37 = vpop.f32.mrb[70].mxu1 }
0x1c74   : > { %5733 = vrot.lane.b32.xlu1 %v5709_v37, %s10165_s6  ;;  %v8146_v21 = vpop.f32.mrb[71].mxu1  ;;  %v5996_v37 = vld [vmem:[%s10871_s7 + $0x68] sm:$0xff]  ;;  %s12453_s6 = scalar_lea.vmem [#allocation17], %s10777_s0 }
0x1c75   : > { %v8807_v21 = vpack.c.bf16 %v5996_v37, %v5995_v33  ;;  %v6132_v33 = vld [vmem:[%s12458_s11] sm:$0xff] (!%p6852_p1)  ;;  %v6133_v37 = vld [vmem:[%s12458_s11 + $0x8] sm:$0xff] (!%p6852_p1) }
0x1ce2   : > { %v5732_v63 = vpop.permute.xlu0 %5731 }
0x1ce3   : > { %v5741_v56 = vsel %vm2978_vm6, %v5739_v39, %v5732_v63 }
0x1ce4   : > { %8163 = vmatprep.mubr.msk.f32.mxu0 %vm1533_vm1, %v5741_v56 }
0x1ce6   : > { %v5734_v60 = vpop.permute.xlu1 %5733 }
0x1ce7   : > { %v5742_v45 = vsel %vm2978_vm6, %v5740_v25, %v5734_v60  ;;  %v6968_v25 = vld [vmem:[%s12453_s6] ss:$0 sm:$0xff] }
0x1ce8   : > { %8164 = vmatmul.mubr.msk.f32.vlgmr.msra.gmra.mrb[32].mxu0 %vm1533_vm1, %v5742_v45 }
0x1ce9   : > { %8786 = vmatpush3.bf16.msra.mxu0 %v8783_v27 }
0x1cea   : > { %8788 = vmatprep.subr.bf16.mxu0 %v8787_v52 }
0x1ced   : > { %8790 = vmatpush3.bf16.msra.mxu0 %v8787_v52 }
0x1cee   : > { %8792 = vmatprep.subr.bf16.mxu0 %v8791_v47 }
0x1cf1   : > { %8794 = vmatpush3.bf16.msra.mxu0 %v8791_v47 }
0x1cf2   : > { %8796 = vmatprep.subr.bf16.mxu0 %v8795_v4 }
0x1cf5   : > { %8798 = vmatpush3.bf16.msra.mxu0 %v8795_v4 }
0x1cf6   : > { %8800 = vmatprep.subr.bf16.mxu0 %v8799_v50 }
0x1cf9   : > { %8802 = vmatpush3.bf16.msra.mxu0 %v8799_v50 }
0x1cfa   : > { %8804 = vmatprep.subr.bf16.mxu0 %v8803_v12 }
0x1cfd   : > { %8806 = vmatpush3.bf16.msra.mxu0 %v8803_v12 }
0x1cfe   : > { %8808 = vmatprep.subr.bf16.mxu0 %v8807_v21 }
0x1d01   : > { %8810 = vmatpush3.bf16.msra.mxu0 %v8807_v21  ;;  %v6134_v21 = vld [vmem:[%s12458_s11 + $0x10] sm:$0xff] (!%p6852_p1) }
0x1dbb   : > { %v8165_v7 = vpop.f32.mrb[32].mxu0 }
0x1dbc   : > { %v5836_v18 = vadd.f32 %v8165_v7, %v6964_v55  ;;  %v5830_v28 = vpop.f32.mrb[33].mxu0 }
0x1dbd   : > { %v5831_v46 = vadd.f32 %v6964_v55, %v5830_v28 }
0x1dbe   : > { %v5840_v17 = vadd.f32 %v5836_v18, %v11410_v24 }
0x1dbf   : > { %v5839_v13 = vadd.f32 %v5831_v46, %v11408_v44  ;;  %v5997_v46 = vld [vmem:[%s10871_s7 + $0x70] sm:$0xff] }
0x1dc0   : > { %v5846_v23 = vsel %vm1533_vm1, %v5840_v17, 0.0 }
0x1dc1   : > { %5847 = vadd.xlane.f32.xlu1 %v5846_v23  ;;  %v5843_v31 = vsel %vm1533_vm1, %v5839_v13, 0.0  ;;  %v6969_v23 = vld [vmem:[%s12454_s28] ss:$0 sm:$0xff] }
0x1dc2   : > { %5844 = vadd.xlane.f32.xlu0 %v5843_v31 }
0x1e4e   : > { %v5848_v49 = vpop.xlane.xlu1 %5847 }
0x1e4f   : > { %v5850_v15 = vmul.f32 0.015625, %v5848_v49  ;;  %v5845_v19 = vpop.xlane.xlu0 %5844 }
0x1e50   : > { %v5849_v36 = vmul.f32 0.015625, %v5845_v19 }
0x1e51   : > { %v12170_v48 = vsub.f32 %v5840_v17, %v5850_v15  ;;  %v5998_v17 = vld [vmem:[%s10871_s7 + $0x78] sm:$0xff]  ;;  %s12456_s7 = scalar_lea.vmem [#allocation21], %s10777_s0 }
0x1e52   : > { %v12172_v24 = vsub.f32 %v5839_v13, %v5849_v36  ;;  %v8811_v13 = vpack.c.bf16 %v5998_v17, %v5997_v46  ;;  %v6973_v1 = vld [vmem:[%s12456_s7] ss:$0 sm:$0xff] }
0x1e53   : > { %v5854_v54 = vmul.f32 %v12170_v48, %v12170_v48 }
0x1e54   : > { %v5853_v44 = vmul.f32 %v12172_v24, %v12172_v24  ;;  %8812 = vmatprep.subr.bf16.mxu0 %v8811_v13 }
0x1e55   : > { %v5858_v61 = vsel %vm1533_vm1, %v5854_v54, 0.0  ;;  %8814 = vmatpush3.bf16.msra.mxu0 %v8811_v13 }
0x1e56   : > { %v5855_v34 = vsel %vm1533_vm1, %v5853_v44, 0.0 }
0x1e57   : > { %5856 = vadd.xlane.f32.xlu0 %v5855_v34 }
0x1e5b   : > { %5859 = vadd.xlane.f32.xlu0 %v5858_v61 }
0x1ee4   : > { %v5857_v5 = vpop.xlane.xlu0 %5856 }
0x1ee5   : > { %v5861_v30 = vmul.f32 0.015625, %v5857_v5  ;;  %v8815_v5 = vpack.c.bf16 (!%p6852_p1), %v6133_v37, %v6132_v33 }
0x1ee7   : > { %v5863_v32 = vadd.f32 1e-05, %v5861_v30  ;;  %v6135_v30 = vld [vmem:[%s12458_s11 + $0x18] sm:$0xff] (!%p6852_p1)  ;;  %8816 = vmatprep.subr.bf16.mxu0 (!%p6852_p1), %v8815_v5 }
0x1ee8   : > { %v5860_v22 = vpop.xlane.xlu0 %5859 }
0x1ee9   : > { %9612 = vrsqrt.f32 %v5863_v32  ;;  %v5862_v39 = vmul.f32 0.015625, %v5860_v22  ;;  %v8819_v32 = vpack.c.bf16 (!%p6852_p1), %v6135_v30, %v6134_v21  ;;  %v6136_v22 = vld [vmem:[%s12458_s11 + $0x20] sm:$0xff] (!%p6852_p1) }
0x1eeb   : > { %v5864_v40 = vadd.f32 1e-05, %v5862_v39  ;;  %v6137_v39 = vld [vmem:[%s12458_s11 + $0x28] sm:$0xff] (!%p6852_p1) }
0x1eed   : > { %9614 = vrsqrt.f32 %v5864_v40  ;;  %v8823_v40 = vpack.c.bf16 (!%p6852_p1), %v6137_v39, %v6136_v22 }
0x1ef3   : > { %v9613_v63 = vpop.eup %9612 }
0x1ef4   : > { %v5867_v56 = vmul.f32 %v9613_v63, %v12172_v24  ;;  %v6972_v24 = vld [vmem:[%s12455_s20] ss:$0 sm:$0xff]  ;;  %v6138_v63 = vld [vmem:[%s12458_s11 + $0x30] sm:$0xff] (!%p6852_p1) }
0x1ef6   : > { %v5875_v60 = vmul.f32 %v6967_v43, %v5867_v56 }
0x1ef7   : > { %v9615_v45 = vpop.eup %9614 }
0x1ef8   : > { %v5868_v55 = vmul.f32 %v9615_v45, %v12170_v48  ;;  %v5883_v7 = vadd.f32 %v6968_v25, %v5875_v60 }
0x1efa   : > { %v5876_v18 = vmul.f32 %v6967_v43, %v5868_v55  ;;  %8182 = vmatprep.mubr.msk.f32.mxu1 %vm1533_vm1, %v5883_v7  ;;  %v6139_v43 = vld [vmem:[%s12458_s11 + $0x38] sm:$0xff] (!%p6852_p1) }
0x1efb   : > { %v8827_v56 = vpack.c.bf16 (!%p6852_p1), %v6139_v43, %v6138_v63 }
0x1efc   : > { %v5884_v28 = vadd.f32 %v6968_v25, %v5876_v18  ;;  %v6976_v25 = vld [vmem:[#allocation24] ss:$0 sm:$0xff] (!%p6852_p1) }
0x1efe   : > { %8183 = vmatmul.mubr.msk.f32.vlgmr.msra.gmra.mrb[72].mxu1 %vm1533_vm1, %v5884_v28 }
0x1fd1   : > { %v8184_v31 = vpop.f32.mrb[72].mxu1 }
0x1fd2   : > { %v5978_v49 = vadd.f32 %v8184_v31, %v6969_v23  ;;  %v5972_v15 = vpop.f32.mrb[73].mxu1 }
0x1fd3   : > { %v5973_v19 = vadd.f32 %v6969_v23, %v5972_v15 }
0x1fd4   : > { %v5982_v48 = vmax.f32 %v5978_v49, 0.0 }
0x1fd5   : > { %v5981_v36 = vmax.f32 %v5973_v19, 0.0 }
0x1fd7   : > { %8217 = vmatprep.mubr.f32.mxu0 %v5981_v36 }
0x1fd8   : > { %8218 = vmatmul.mubr.f32.vlgmr.msra.gmra.mrb[34].mxu0 %v5982_v48 }
0x1fd9   : > { %8818 = vmatpush3.bf16.msra.mxu0 (!%p6852_p1), %v8815_v5 }
0x1fda   : > { %8820 = vmatprep.subr.bf16.mxu0 (!%p6852_p1), %v8819_v32 }
0x1fdd   : > { %8822 = vmatpush3.bf16.msra.mxu0 (!%p6852_p1), %v8819_v32 }
0x1fde   : > { %8824 = vmatprep.subr.bf16.mxu0 (!%p6852_p1), %v8823_v40 }
0x1fe1   : > { %8826 = vmatpush3.bf16.msra.mxu0 (!%p6852_p1), %v8823_v40 }
0x1fe2   : > { %8828 = vmatprep.subr.bf16.mxu0 (!%p6852_p1), %v8827_v56 }
0x1fe5   : > { %8830 = vmatpush3.bf16.msra.mxu0 (!%p6852_p1), %v8827_v56 }
0x20ab   : > { %v8219_v44 = vpop.f32.mrb[34].mxu0 }
0x20ac   : > { %v6078_v34 = vadd.f32 %v8219_v44, %v6972_v24  ;;  %v6072_v54 = vpop.f32.mrb[35].mxu0 }
0x20ad   : > { %v6073_v61 = vadd.f32 %v6972_v24, %v6072_v54 }
0x20ae   : > { %v6082_v20 = vadd.f32 %v6078_v34, %v5884_v28 }
0x20af   : > { %v6081_v11 = vadd.f32 %v6073_v61, %v5883_v7 }
0x20b0   : > { %v6088_v29 = vsel %vm1533_vm1, %v6082_v20, 0.0 }
0x20b1   : > { %6089 = vadd.xlane.f32.xlu0 %v6088_v29  ;;  %v6085_v35 = vsel %vm1533_vm1, %v6081_v11, 0.0 }
0x20b2   : > { %6086 = vadd.xlane.f32.xlu1 %v6085_v35 }
0x213e   : > { %v6090_v41 = vpop.xlane.xlu0 %6089 }
0x213f   : > { %v6092_v0 = vmul.f32 0.015625, %v6090_v41  ;;  %v6087_v16 = vpop.xlane.xlu1 %6086 }
0x2140   : > { %v6091_v26 = vmul.f32 0.015625, %v6087_v16 }
0x2141   : > { %v6094_v8 = vsub.f32 %v6082_v20, %v6092_v0 }
0x2142   : > { %v6093_v2 = vsub.f32 %v6081_v11, %v6091_v26 }
0x2143   : > { %v6096_v9 = vmul.f32 %v6094_v8, %v6094_v8 }
0x2144   : > { %v6095_v58 = vmul.f32 %v6093_v2, %v6093_v2 }
0x2145   : > { %v6100_v51 = vsel %vm1533_vm1, %v6096_v9, 0.0 }
0x2146   : > { %6101 = vadd.xlane.f32.xlu0 %v6100_v51  ;;  %v6097_v59 = vsel %vm1533_vm1, %v6095_v58, 0.0 }
0x2147   : > { %6098 = vadd.xlane.f32.xlu1 %v6097_v59 }
0x21d3   : > { %v6102_v53 = vpop.xlane.xlu0 %6101 }
0x21d4   : > { %v6104_v27 = vmul.f32 0.015625, %v6102_v53  ;;  %v6099_v57 = vpop.xlane.xlu1 %6098 }
0x21d5   : > { %v6103_v52 = vmul.f32 0.015625, %v6099_v57 }
0x21d6   : > { %v6106_v42 = vadd.f32 1e-05, %v6104_v27 }
0x21d7   : > { %v6105_v62 = vadd.f32 1e-05, %v6103_v52 }
0x21d8   : > { %9616 = vrsqrt.f32 %v6106_v42 }
0x21d9   : > { %9618 = vrsqrt.f32 %v6105_v62 }
0x21e2   : > { %v9617_v47 = vpop.eup %9616 }
0x21e3   : > { %v9619_v3 = vpop.eup %9618  ;;  %v6110_v4 = vmul.f32 %v9617_v47, %v6094_v8 }
0x21e4   : > { %v6109_v10 = vmul.f32 %v9619_v3, %v6093_v2  ;;  %6131 = sbr.rel (%p6852_p1) target bundleno = 8899 (0x22c3), region = 204 }
0x21e5   : > { %v6118_v50 = vmul.f32 %v6973_v1, %v6110_v4 }
0x21e6   : > { %v6117_v14 = vmul.f32 %v6973_v1, %v6109_v10 }
0x21e7   : > { %v6126_v38 = vadd.f32 %v6974_v6, %v6118_v50 }
0x21e8   : > { %v6125_v12 = vadd.f32 %v6974_v6, %v6117_v14 }
0x21e9   : > { %6128 = vst.msk [vmem:[#allocation2 + $0x8] sm:$0xff] %vm1533_vm1, %v6126_v38 }
0x21ea   : > { %6127 = vst.msk [vmem:[#allocation2] sm:$0xff] %vm1533_vm1, %v6125_v12  ;;  %8236 = vmatprep.mubr.msk.f32.mxu0 (!%p6852_p1), %vm1533_vm1, %v6125_v12 }
0x21eb   : > { %8237 = vmatmul.mubr.msk.f32.vlgmr.msra.gmra.mrb[0].mxu0 %vm1533_vm1, %v6126_v38 }
0x22be   : > { %v8238_v60 = vpop.f32.mrb[0].mxu0 }
0x22bf   : > { %v6225_v45 = vadd.f32 %v8238_v60, %v6976_v25  ;;  %v6219_v55 = vpop.f32.mrb[1].mxu0 }
0x22c0   : > { %v6220_v7 = vadd.f32 %v6976_v25, %v6219_v55 }
0x22c1   : > { %6229 = vst [vmem:[#allocation26 + $0x8] sm:$0xff] %v6225_v45 }
0x22c2   : > { %6228 = vst [vmem:[#allocation26] sm:$0xff] %v6220_v7 }
0x22c3 PF: > { %p8920_p12 = scmp.eq.s32.totalorder %s10546_s10, 1  ;;  %s10172_s28 = smov [#allocation26]  }
0x22c4   : > { %s6244_s20 = sshll.u32 %s10172_s28, 4  ;;  %s6245_s20 = int_to_ptr.vmem [resolvable:$true] %s6244_s20 }
0x22c5   : > { %s10038_s7 = scalar_lea.vmem %s6245_s20, 256  ;;  %p10045_p6 = scmp.lt.s32.totalorder %s6245_s20, %s6245_s20 }
0x22c6   : > { %p10039_p8 = scmp.ne.s32.totalorder %s6245_s20, %s10038_s7  ;;  %p10046_p7 = scmp.lt.s32.totalorder %s10038_s7, %s10038_s7 }
0x22c8   : > { %p10040_p3 = pnand %p10039_p8, %p8920_p12  ;;  %p10047_p13 = por %p10046_p7, %p10045_p6 }
0x22ca   : > { %p10041_p0 = pneg %p10040_p3 }
0x22cc   : > { %p10048_p2 = pnand %p10047_p13, %p10041_p0 }
0x22ce   : > { %10051 = shalt.err (!%p10048_p2)
}
0x22cf   : > { %s12459_s3 = sld [smem:[#allocation64_spill]] }
0x22d5   : > { %s10052_s13 = scalar_lea.hbm %s12459_s3, 256 }
0x22d6   : > { %p10053_p11 = scmp.ne.s32.totalorder %s12459_s3, %s10052_s13  ;;  %p10058_p4 = scmp.lt.u32.totalorder %s10052_s13, %s12459_s3 }
0x22d8   : > { %p10054_p9 = pnand %p10053_p11, %p8920_p12 }
0x22da   : > { %p10055_p10 = pneg %p10054_p9 }
0x22dc   : > { %p10060_p5 = pnand %p10058_p4, %p10055_p10 }
0x22de   : > { %10063 = shalt.err (!%p10060_p5)
}
0x22df   : > { %s10173_s29 = smov 128   ;;  %s10174_s30 = smov 8  }
0x22e0   : > { %8870 = dma.vmem_to_hbm [thread:$0]  (%p8920_p12), %s6245_s20, 256, %s12459_s3, [#allocation5], %s10173_s29, %s10173_s29, %s10174_s30  }
0x22e1   : > { %10121 = dma.done.wait (%p8920_p12), [#allocation5], 256  }
0x22e2   : > { %10123 = vsyncadd (%p8920_p12), [#allocation5], 4294967040 }
0x22e3 PF: > { %s61_s5 = sadd.s32 1, %s10146_s5   ;;  %s12460_s15 = sld [smem:[#allocation36_spill]] }
0x22e4   : > { %p58_p1 = scmp.ge.s32.totalorder %s61_s5, 4   ;;  %s12461_s8 = sld [smem:[#allocation39_spill]] }
0x22e5   : > { %s12462_s30 = sld [smem:[#allocation37_spill]]  ;;  %s12463_s9 = sld [smem:[#allocation38_spill]] }
0x22e6   : > { %s12464_s7 = smov %s10130_s4  ;;  %60 = sbr.rel (!%p58_p1) target bundleno = 45 (0x2d), region = 382 }
0x22e9   : > { %s12465_s4 = smov %s12460_s15 }
0x22ed   :  { %6272 = vsyncpa [#allocation4], 1 }
0x22ee   :  { %6274 = vsyncpa [#allocation4 + $0x1], 1 }
0x22ef   :  { %6275 = vsyncpa [#allocation7], 1 }
0x22f0   :  { %6277 = vsyncpa [#allocation7 + $0x1], 1 }
0x22f1   :  { %6278 = vsyncpa [#allocation10], 1 }
0x22f2   :  { %6280 = vsyncpa [#allocation10 + $0x1], 1 }
0x22f3   :  { %6281 = vsyncpa [#allocation13], 1 }
0x22f4   :  { %6283 = vsyncpa [#allocation13 + $0x1], 1 }
0x22f5   :  { %6284 = vsyncpa [#allocation16], 1 }
0x22f6   :  { %6286 = vsyncpa [#allocation16 + $0x1], 1 }
0x22f7   :  { %6287 = vsyncpa [#allocation19], 1 }
0x22f8   :  { %6289 = vsyncpa [#allocation19 + $0x1], 1 }
0x22f9   :  { %6290 = vsyncpa [#allocation22], 1 }
0x22fa   :  { %6292 = vsyncpa [#allocation22 + $0x1], 1 }
0x22fb   :  { %6293 = vsyncpa [#allocation25], 1 }
0x22fc   :  { %6294 = vsyncpa [#allocation5], 1 }
0x22fd   :  { %6296 = vsyncpa [#allocation5 + $0x1], 1 }

</bundles_post_ra>
